<compile_context>
chip_gen: v6e
topology: v6e:2x2x1
jax: 0.10.0
libtpu: 0.0.40
codegen_flags: <defaults>
</compile_context>

<pallas_src>
import numpy as np
import jax
import jax.numpy as jnp
from jax.experimental import pallas as pl
from jax.experimental.pallas import tpu as pltpu


# ----------------------------------------------------------------------------
# generate_anchors (deterministic setup glue, identical to the classic numpy
# reference used by the PyTorch module's __init__).
# ----------------------------------------------------------------------------
def _whctrs(anchor):
    w = anchor[2] - anchor[0] + 1
    h = anchor[3] - anchor[1] + 1
    x_ctr = anchor[0] + 0.5 * (w - 1)
    y_ctr = anchor[1] + 0.5 * (h - 1)
    return w, h, x_ctr, y_ctr


def _mkanchors(ws, hs, x_ctr, y_ctr):
    ws = ws[:, np.newaxis]
    hs = hs[:, np.newaxis]
    return np.hstack((x_ctr - 0.5 * (ws - 1),
                      y_ctr - 0.5 * (hs - 1),
                      x_ctr + 0.5 * (ws - 1),
                      y_ctr + 0.5 * (hs - 1)))


def _ratio_enum(anchor, ratios):
    w, h, x_ctr, y_ctr = _whctrs(anchor)
    size = w * h
    size_ratios = size / ratios
    ws = np.round(np.sqrt(size_ratios))
    hs = np.round(ws * ratios)
    return _mkanchors(ws, hs, x_ctr, y_ctr)


def _scale_enum(anchor, scales):
    w, h, x_ctr, y_ctr = _whctrs(anchor)
    ws = w * scales
    hs = h * scales
    return _mkanchors(ws, hs, x_ctr, y_ctr)


def generate_anchors(base_size=16, ratios=np.array([0.5, 1, 2]),
                     scales=2 ** np.arange(3, 6)):
    base_anchor = np.array([1, 1, base_size, base_size], dtype=np.float64) - 1
    ratio_anchors = _ratio_enum(base_anchor, ratios)
    return np.vstack([_scale_enum(ratio_anchors[i, :], scales)
                      for i in range(ratio_anchors.shape[0])])


def _cdiv(a, b):
    return -(-a // b)


# ----------------------------------------------------------------------------
# Fused kernel: phase 0 = per-gt max IoU accumulation, phase 1 = labels /
# bbox targets / weight masks.  One (b, phase, tile) grid step per invocation.
# ----------------------------------------------------------------------------
def _make_fused_kernel(tn, n_gt):
    def kernel(plane_ref, gt_ref, out_ref, gtmax_ref):
        p = pl.program_id(1)
        t = pl.program_id(2)
        n_t = pl.num_programs(2)

        # anchor tile: one dynamic leading-axis load from the resident plane.
        tile = plane_ref[t]                       # (8, tn)
        ax1 = tile[0:1, :]
        ay1 = tile[1:2, :]
        ax2 = tile[2:3, :]
        ay2 = tile[3:4, :]
        ex_cx = tile[4:5, :]
        ex_cy = tile[5:6, :]
        s_inv_w = tile[6:7, :]                    # sign carries the inside flag
        inv_ah = tile[7:8, :]
        inside = s_inv_w > 0.0                    # (1, tn) bool
        inv_aw = jnp.abs(s_inv_w)
        a_area = (ax2 - ax1 + 1.0) * (ay2 - ay1 + 1.0)

        gt = gt_ref[0]                            # (G, 16)
        gx1 = gt[:, 0:1]
        gy1 = gt[:, 1:2]
        gx2 = gt[:, 2:3]
        gy2 = gt[:, 3:4]
        g_area = gt[:, 4:5]
        g_zero = gt[:, 5:6] > 0.0

        # IoU (identical code executed in both phases -> bit-identical values,
        # so the exact-equality tie detection below is safe).
        iw = jnp.maximum(jnp.minimum(ax2, gx2) - jnp.maximum(ax1, gx1) + 1.0, 0.0)
        ih = jnp.maximum(jnp.minimum(ay2, gy2) - jnp.maximum(ay1, gy1) + 1.0, 0.0)
        inter = iw * ih
        ua = a_area + g_area - inter
        ov = inter / ua                           # exact divide (0.3/0.7 thresholds)
        ov = jnp.where(g_zero, 0.0, ov)           # zero-area gt rows -> 0 (reference)

        # ---- phase 0: per-gt max IoU over inside anchors of this tile ----
        ov_in = jnp.where(inside, ov, -1.0)
        tile_max = jnp.max(ov_in, axis=1, keepdims=True)          # (G, 1)

        @pl.when((p == 0) & (t == 0))
        def _():
            gtmax_ref[...] = tile_max

        @pl.when((p == 0) & (t > 0))
        def _():
            gtmax_ref[...] = jnp.maximum(gtmax_ref[...], tile_max)

        @pl.when((p == 0) & (t == n_t - 1))
        def _():
            gm = gtmax_ref[...]
            gtmax_ref[...] = jnp.where(gm == 0.0, 1e-5, gm)        # reference fixup

        # ---- phase 1: labels, bbox targets and weight masks ----
        @pl.when(p == 1)
        def _():
            max_ov = jnp.max(ov, axis=0, keepdims=True)            # (1, tn)
            g_iota = jax.lax.broadcasted_iota(jnp.int32, ov.shape, 0)
            argmax = jnp.min(jnp.where(ov == max_ov, g_iota, n_gt),
                             axis=0, keepdims=True)                # (1, tn)

            gt_max = gtmax_ref[...]                                # (G, 1)
            keep_cnt = jnp.sum((ov == gt_max).astype(jnp.float32),
                               axis=0, keepdims=True)              # (1, tn)

            # label order matches the module: keep / >=0.7 -> 1, then
            # <0.3 -> 0 (clobbers), then outside anchors -> -1 (_unmap fill).
            label = jnp.where((max_ov >= 0.7) | (keep_cnt > 0.0), 1.0, -1.0)
            label = jnp.where(max_ov < 0.3, 0.0, label)
            # TODO(synk): random fg/bg quota subsampling skipped.
            label = jnp.where(inside, label, -1.0)

            # exact f32 one-hot gather of the argmax gt params (VPU + sublane
            # reduce; exactly one nonzero term per column -> exact selection).
            onehot = (g_iota == argmax).astype(jnp.float32)        # (G, tn)
            sel_w = jnp.sum(onehot * gt[:, 6:7], axis=0, keepdims=True)
            sel_h = jnp.sum(onehot * gt[:, 7:8], axis=0, keepdims=True)
            sel_cx = jnp.sum(onehot * gt[:, 8:9], axis=0, keepdims=True)
            sel_cy = jnp.sum(onehot * gt[:, 9:10], axis=0, keepdims=True)

            dx = jnp.where(inside, (sel_cx - ex_cx) * inv_aw, 0.0)
            dy = jnp.where(inside, (sel_cy - ex_cy) * inv_ah, 0.0)
            dw = jnp.where(inside, jnp.log(sel_w * inv_aw), 0.0)
            dh = jnp.where(inside, jnp.log(sel_h * inv_ah), 0.0)
            inw = jnp.where(label == 1.0, 1.0, 0.0)                # inside weight
            om = jnp.where(label >= 0.0, 1.0, 0.0)                 # outside mask

            # Compose the 8 output rows into one (8, tn) value and issue a
            # single unmasked full-block store (replaces 8 sublane-masked
            # stores; avoids relying on sublane concat lowering).
            row_id = jax.lax.broadcasted_iota(jnp.int32, (8, tn), 0)
            packed = jnp.zeros((8, tn), dtype=jnp.float32)
            for r, v in enumerate((label, dx, dy, dw, dh, inw, om)):
                packed = packed + jnp.where(row_id == r, v, 0.0)
            out_ref[...] = packed[None]                            # (1, 8, tn)

    return kernel


# ----------------------------------------------------------------------------
# Wrapper: anchor/shift setup, packed-plane + gt-aux precompute, one fused
# pallas_call, and a reshape-only NCHW epilogue.
# ----------------------------------------------------------------------------
def anchor_target_forward(rpn_cls_score, gt_boxes, im_info, num_boxes,
                          feat_stride=16, scales=(8, 16, 32),
                          ratios=(0.5, 1, 2), tile_n=4096):
    del num_boxes  # not used by the reference forward either
    B = gt_boxes.shape[0]
    H, W = int(rpn_cls_score.shape[2]), int(rpn_cls_score.shape[3])
    G = int(gt_boxes.shape[1])

    anchors_base = generate_anchors(scales=np.array(scales),
                                    ratios=np.array(ratios)).astype(np.float32)
    A = anchors_base.shape[0]

    shift_x = np.arange(0, W) * feat_stride
    shift_y = np.arange(0, H) * feat_stride
    sx, sy = np.meshgrid(shift_x, shift_y)
    shifts = np.stack([sx.ravel(), sy.ravel(), sx.ravel(), sy.ravel()],
                      axis=1).astype(np.float32)                    # (K, 4), K=H*W
    K = shifts.shape[0]
    # A-major anchor ordering (a, h, w): per-anchor results are order
    # independent, and the NCHW epilogue below becomes reshape-only.
    all_anchors = (anchors_base[:, None, :] + shifts[None, :, :]) \
        .reshape(A * K, 4).astype(np.float32)
    N = A * K

    # anchor-axis tiling (lane-dense tiles, minimal padding)
    num_tiles = max(1, _cdiv(N, tile_n))
    tn = _cdiv(_cdiv(N, num_tiles), 128) * 128
    n_pad = tn * num_tiles

    # ---- packed batch-invariant anchor plane, 8 rows:
    # 0..3 x1,y1,x2,y2 | 4 ctr_x | 5 ctr_y | 6 signed 1/w (inside flag) | 7 1/h
    coords = np.zeros((4, n_pad), np.float32)
    coords[:, :N] = all_anchors.T
    ax1, ay1, ax2, ay2 = coords[0], coords[1], coords[2], coords[3]
    aw = ax2 - ax1 + 1.0
    ah = ay2 - ay1 + 1.0
    base_rows = np.stack([ax1, ay1, ax2, ay2,
                          ax1 + 0.5 * aw, ay1 + 0.5 * ah,
                          1.0 / aw, 1.0 / ah], axis=0).astype(np.float32)
    # (num_tiles, 8, tn) layout so the kernel indexes the resident plane by
    # tile on the leading axis (static numpy transpose, free at trace time).
    base3 = np.ascontiguousarray(
        base_rows.reshape(8, num_tiles, tn).transpose(1, 0, 2))
    valid = np.zeros((n_pad,), np.float32)
    valid[:N] = 1.0

    gt_boxes = gt_boxes.astype(jnp.float32)
    im_info = im_info.astype(jnp.float32)
    im_h = jnp.floor(im_info[0, 0])        # reference: int(im_info[0][0/1])
    im_w = jnp.floor(im_info[0, 1])
    c = jnp.asarray(coords)
    inside_row = ((c[0] >= 0.0) & (c[1] >= 0.0) &
                  (c[2] < im_w) & (c[3] < im_h) &
                  (jnp.asarray(valid) > 0.0))
    sign3 = jnp.where(inside_row, 1.0, -1.0).reshape(num_tiles, tn)
    plane3 = jnp.asarray(base3).at[:, 6, :].multiply(sign3)         # (T, 8, tn)

    # ---- per-batch gt aux (B, G, 16):
    # 0..3 x1,y1,x2,y2 | 4 area | 5 zero | 6 w | 7 h | 8 ctr_x | 9 ctr_y | pad
    gx1 = gt_boxes[:, :, 0]
    gy1 = gt_boxes[:, :, 1]
    gx2 = gt_boxes[:, :, 2]
    gy2 = gt_boxes[:, :, 3]
    gw = gx2 - gx1 + 1.0
    gh = gy2 - gy1 + 1.0
    g_area = gw * gh
    g_zero = ((gw == 1.0) & (gh == 1.0)).astype(jnp.float32)
    gcx = gx1 + 0.5 * gw
    gcy = gy1 + 0.5 * gh
    zero_col = jnp.zeros_like(gw)
    gt_aux = jnp.stack([gx1, gy1, gx2, gy2, g_area, g_zero,
                        gw, gh, gcx, gcy,
                        zero_col, zero_col, zero_col,
                        zero_col, zero_col, zero_col], axis=-1)      # (B, G, 16)

    kernel = _make_fused_kernel(tn, G)

    # Fused pass.  The plane has a constant block index -> DMA'd once per core;
    # the gt aux block index only changes with b.  Output blocks are only
    # visited/written in phase 1 (index t*p pins them to block 0 in phase 0).
    packed = pl.pallas_call(
        kernel,
        out_shape=jax.ShapeDtypeStruct((B, 8, n_pad), jnp.float32),
        grid_spec=pltpu.PrefetchScalarGridSpec(
            num_scalar_prefetch=0,
            grid=(B, 2, num_tiles),
            in_specs=[
                pl.BlockSpec((num_tiles, 8, tn), lambda b, p, t: (0, 0, 0)),
                pl.BlockSpec((1, G, 16), lambda b, p, t: (b, 0, 0)),
            ],
            out_specs=pl.BlockSpec((1, 8, tn), lambda b, p, t: (b, 0, t * p)),
            scratch_shapes=[pltpu.VMEM((G, 1), jnp.float32)],
        ),
        compiler_params=pltpu.CompilerParams(
            dimension_semantics=("parallel", "arbitrary", "arbitrary")),
    )(plane3, gt_aux)

    # ---- epilogue (A-major anchor axis -> reshape-only, 4x broadcast last) ----
    labels_full = packed[:, 0, :N]                                   # (B, N)
    labels = labels_full.reshape(B, 1, A * H, W)

    tgt = packed[:, 1:5, :N]                                         # (B, 4, N)
    bbox_targets = tgt.reshape(B, 4, A, H, W).transpose(0, 2, 1, 3, 4) \
                      .reshape(B, 4 * A, H, W)

    inw = packed[:, 5, :N].reshape(B, A, 1, H, W)
    bbox_inside_weights = jnp.broadcast_to(inw, (B, A, 4, H, W)) \
        .reshape(B, 4 * A, H, W)

    # reference bug reproduction: num_examples from the LAST batch element
    # (leaked loop variable `i`), applied to every batch.
    cnt = jnp.sum((labels_full[B - 1] >= 0.0).astype(jnp.float32))
    outw = (packed[:, 6, :N] * (1.0 / cnt)).reshape(B, A, 1, H, W)
    bbox_outside_weights = jnp.broadcast_to(outw, (B, A, 4, H, W)) \
        .reshape(B, 4 * A, H, W)

    return [labels, bbox_targets, bbox_inside_weights, bbox_outside_weights]


if __name__ == "__main__":
    key = jax.random.PRNGKey(0)
    B, A, H, W = 2, 9, 16, 16
    feat_stride = 16
    G = 8

    k0, k1, k2 = jax.random.split(key, 3)
    rpn_cls_score = jax.random.normal(k0, (B, 2 * A, H, W), dtype=jnp.float32)

    # deterministic gt boxes inside a 256x256 image; last 3 rows are zero padding
    xy1 = jax.random.uniform(k1, (B, G, 2), minval=0.0, maxval=100.0)
    wh = jax.random.uniform(k2, (B, G, 2), minval=60.0, maxval=160.0)
    xy2 = jnp.minimum(xy1 + wh, 255.0)
    cls = jnp.ones((B, G, 1), dtype=jnp.float32)
    gt = jnp.concatenate([xy1, xy2, cls], axis=-1)
    valid = (jnp.arange(G) < 5).astype(jnp.float32)[None, :, None]
    gt_boxes = gt * valid                                            # (B, G, 5)

    im_info = jnp.array([[H * feat_stride, W * feat_stride, 1.0]] * B,
                        dtype=jnp.float32)                           # (B, 3)
    num_boxes = jnp.array([5, 5], dtype=jnp.int32)

    fwd = jax.jit(lambda r, g, i, n: anchor_target_forward(
        r, g, i, n, feat_stride=feat_stride, scales=(8, 16, 32),
        ratios=(0.5, 1, 2)))

    outs = fwd(rpn_cls_score, gt_boxes, im_info, num_boxes)
    for o in outs:
        jax.block_until_ready(o)

    assert outs[0].shape == (B, 1, A * H, W)
    assert outs[1].shape == (B, A * 4, H, W)
    assert outs[2].shape == (B, 4 * A, H, W)
    assert outs[3].shape == (B, 4 * A, H, W)
    assert bool(jnp.all(jnp.isfinite(outs[1])))
    assert bool(jnp.all(jnp.isfinite(outs[3])))
    print("KERNEL_OK")
</pallas_src>

<mosaic_0001>
module attributes {stable_mosaic.version = 11 : i64} {
  func.func @kernel(%arg0: i32, %arg1: i32, %arg2: i32, %arg3: memref<1x8x2304xf32, #tpu.memory_space<vmem>>, %arg4: memref<1x8x16xf32, #tpu.memory_space<vmem>>, %arg5: memref<1x8x2304xf32, #tpu.memory_space<vmem>>, %arg6: memref<8x1xf32, #tpu.memory_space<vmem>>) attributes {dimension_semantics = [#tpu.dimension_semantics<parallel>, #tpu.dimension_semantics<arbitrary>, #tpu.dimension_semantics<arbitrary>], iteration_bounds = array<i64: 2, 2, 1>, scalar_prefetch = 0 : i64, scratch_operands = 1 : i64, tpu.core_type = #tpu.core_type<tc>, window_params = [{pipeline_mode = #tpu.pipeline_mode<synchronous>, transform_indices = @transform_0, window_bounds = array<i64: 1, 8, 2304>}, {transform_indices = @transform_1, window_bounds = array<i64: 1, 8, 16>}, {transform_indices = @transform_2, window_bounds = array<i64: 1, 8, 2304>}]} {
    %0 = arith.index_cast %arg2 : i32 to index
    %c0 = arith.constant 0 : index
    %c0_0 = arith.constant 0 : index
    %1 = vector.load %arg3[%0, %c0, %c0_0] : memref<1x8x2304xf32, #tpu.memory_space<vmem>>, vector<1x8x2304xf32>
    %2 = vector.shape_cast %1 : vector<1x8x2304xf32> to vector<8x2304xf32>
    %3 = vector.extract_strided_slice %2 {offsets = [0, 0], sizes = [1, 2304], strides = [1, 1]} : vector<8x2304xf32> to vector<1x2304xf32>
    %4 = vector.extract_strided_slice %2 {offsets = [1, 0], sizes = [1, 2304], strides = [1, 1]} : vector<8x2304xf32> to vector<1x2304xf32>
    %5 = vector.extract_strided_slice %2 {offsets = [2, 0], sizes = [1, 2304], strides = [1, 1]} : vector<8x2304xf32> to vector<1x2304xf32>
    %6 = vector.extract_strided_slice %2 {offsets = [3, 0], sizes = [1, 2304], strides = [1, 1]} : vector<8x2304xf32> to vector<1x2304xf32>
    %7 = vector.extract_strided_slice %2 {offsets = [4, 0], sizes = [1, 2304], strides = [1, 1]} : vector<8x2304xf32> to vector<1x2304xf32>
    %8 = vector.extract_strided_slice %2 {offsets = [5, 0], sizes = [1, 2304], strides = [1, 1]} : vector<8x2304xf32> to vector<1x2304xf32>
    %9 = vector.extract_strided_slice %2 {offsets = [6, 0], sizes = [1, 2304], strides = [1, 1]} : vector<8x2304xf32> to vector<1x2304xf32>
    %10 = vector.extract_strided_slice %2 {offsets = [7, 0], sizes = [1, 2304], strides = [1, 1]} : vector<8x2304xf32> to vector<1x2304xf32>
    %cst = arith.constant 0.000000e+00 : f32
    %11 = vector.broadcast %cst : f32 to vector<1x2304xf32>
    %12 = arith.cmpf ogt, %9, %11 : vector<1x2304xf32>
    %13 = math.absf %9 : vector<1x2304xf32>
    %14 = arith.subf %5, %3 : vector<1x2304xf32>
    %cst_1 = arith.constant 1.000000e+00 : f32
    %15 = vector.broadcast %cst_1 : f32 to vector<1x2304xf32>
    %16 = arith.addf %14, %15 : vector<1x2304xf32>
    %17 = arith.subf %6, %4 : vector<1x2304xf32>
    %cst_2 = arith.constant 1.000000e+00 : f32
    %18 = vector.broadcast %cst_2 : f32 to vector<1x2304xf32>
    %19 = arith.addf %17, %18 : vector<1x2304xf32>
    %20 = arith.mulf %16, %19 : vector<1x2304xf32>
    %c0_3 = arith.constant 0 : index
    %c0_4 = arith.constant 0 : index
    %c0_5 = arith.constant 0 : index
    %21 = vector.load %arg4[%c0_3, %c0_4, %c0_5] : memref<1x8x16xf32, #tpu.memory_space<vmem>>, vector<1x8x16xf32>
    %22 = vector.shape_cast %21 : vector<1x8x16xf32> to vector<8x16xf32>
    %23 = vector.extract_strided_slice %22 {offsets = [0, 0], sizes = [8, 1], strides = [1, 1]} : vector<8x16xf32> to vector<8x1xf32>
    %24 = vector.extract_strided_slice %22 {offsets = [0, 1], sizes = [8, 1], strides = [1, 1]} : vector<8x16xf32> to vector<8x1xf32>
    %25 = vector.extract_strided_slice %22 {offsets = [0, 2], sizes = [8, 1], strides = [1, 1]} : vector<8x16xf32> to vector<8x1xf32>
    %26 = vector.extract_strided_slice %22 {offsets = [0, 3], sizes = [8, 1], strides = [1, 1]} : vector<8x16xf32> to vector<8x1xf32>
    %27 = vector.extract_strided_slice %22 {offsets = [0, 4], sizes = [8, 1], strides = [1, 1]} : vector<8x16xf32> to vector<8x1xf32>
    %28 = vector.extract_strided_slice %22 {offsets = [0, 5], sizes = [8, 1], strides = [1, 1]} : vector<8x16xf32> to vector<8x1xf32>
    %cst_6 = arith.constant 0.000000e+00 : f32
    %29 = vector.broadcast %cst_6 : f32 to vector<8x1xf32>
    %30 = arith.cmpf ogt, %28, %29 : vector<8x1xf32>
    %31 = vector.broadcast %5 : vector<1x2304xf32> to vector<8x2304xf32>
    %32 = vector.broadcast %25 : vector<8x1xf32> to vector<8x2304xf32>
    %33 = arith.minimumf %31, %32 : vector<8x2304xf32>
    %34 = vector.broadcast %3 : vector<1x2304xf32> to vector<8x2304xf32>
    %35 = vector.broadcast %23 : vector<8x1xf32> to vector<8x2304xf32>
    %36 = arith.maximumf %34, %35 : vector<8x2304xf32>
    %37 = arith.subf %33, %36 : vector<8x2304xf32>
    %cst_7 = arith.constant 1.000000e+00 : f32
    %38 = vector.broadcast %cst_7 : f32 to vector<8x2304xf32>
    %39 = arith.addf %37, %38 : vector<8x2304xf32>
    %cst_8 = arith.constant 0.000000e+00 : f32
    %40 = vector.broadcast %cst_8 : f32 to vector<8x2304xf32>
    %41 = arith.maximumf %39, %40 : vector<8x2304xf32>
    %42 = vector.broadcast %6 : vector<1x2304xf32> to vector<8x2304xf32>
    %43 = vector.broadcast %26 : vector<8x1xf32> to vector<8x2304xf32>
    %44 = arith.minimumf %42, %43 : vector<8x2304xf32>
    %45 = vector.broadcast %4 : vector<1x2304xf32> to vector<8x2304xf32>
    %46 = vector.broadcast %24 : vector<8x1xf32> to vector<8x2304xf32>
    %47 = arith.maximumf %45, %46 : vector<8x2304xf32>
    %48 = arith.subf %44, %47 : vector<8x2304xf32>
    %cst_9 = arith.constant 1.000000e+00 : f32
    %49 = vector.broadcast %cst_9 : f32 to vector<8x2304xf32>
    %50 = arith.addf %48, %49 : vector<8x2304xf32>
    %cst_10 = arith.constant 0.000000e+00 : f32
    %51 = vector.broadcast %cst_10 : f32 to vector<8x2304xf32>
    %52 = arith.maximumf %50, %51 : vector<8x2304xf32>
    %53 = arith.mulf %41, %52 : vector<8x2304xf32>
    %54 = vector.broadcast %20 : vector<1x2304xf32> to vector<8x2304xf32>
    %55 = vector.broadcast %27 : vector<8x1xf32> to vector<8x2304xf32>
    %56 = arith.addf %54, %55 : vector<8x2304xf32>
    %57 = arith.subf %56, %53 : vector<8x2304xf32>
    %58 = arith.divf %53, %57 : vector<8x2304xf32>
    %cst_11 = arith.constant 0.000000e+00 : f32
    %59 = vector.shape_cast %30 : vector<8x1xi1> to vector<8x1xi1>
    %60 = vector.broadcast %59 : vector<8x1xi1> to vector<8x2304xi1>
    %61 = vector.broadcast %cst_11 : f32 to vector<8x2304xf32>
    %62 = arith.select %60, %61, %58 : vector<8x2304xi1>, vector<8x2304xf32>
    %cst_12 = arith.constant -1.000000e+00 : f32
    %63 = vector.shape_cast %12 : vector<1x2304xi1> to vector<1x2304xi1>
    %64 = vector.broadcast %63 : vector<1x2304xi1> to vector<8x2304xi1>
    %65 = vector.broadcast %cst_12 : f32 to vector<8x2304xf32>
    %66 = arith.select %64, %62, %65 : vector<8x2304xi1>, vector<8x2304xf32>
    %cst_13 = arith.constant dense<0xFF800000> : vector<8xf32>
    %67 = vector.multi_reduction <maximumf>, %66, %cst_13 [1] : vector<8x2304xf32> to vector<8xf32>
    %68 = vector.shape_cast %67 : vector<8xf32> to vector<8x1xf32>
    %c0_i32 = arith.constant 0 : i32
    %69 = arith.cmpi eq, %arg1, %c0_i32 : i32
    %c0_i32_14 = arith.constant 0 : i32
    %70 = arith.cmpi eq, %arg2, %c0_i32_14 : i32
    %71 = arith.andi %69, %70 : i1
    %72 = arith.extui %71 : i1 to i32
    %c0_i32_15 = arith.constant 0 : i32
    %73 = arith.cmpi ne, %72, %c0_i32_15 : i32
    scf.if %73 {
      %c0_23 = arith.constant 0 : index
      %c0_24 = arith.constant 0 : index
      %87 = vector.load %arg6[%c0_23, %c0_24] : memref<8x1xf32, #tpu.memory_space<vmem>>, vector<8x1xf32>
      tpu.vector_store %arg6[%c0_23, %c0_24], %68 {strides = array<i32>} : memref<8x1xf32, #tpu.memory_space<vmem>>, vector<8x1xf32>,
    } else {
    }
    %c0_i32_16 = arith.constant 0 : i32
    %74 = arith.cmpi eq, %arg1, %c0_i32_16 : i32
    %c0_i32_17 = arith.constant 0 : i32
    %75 = arith.cmpi sgt, %arg2, %c0_i32_17 : i32
    %76 = arith.andi %74, %75 : i1
    %77 = arith.extui %76 : i1 to i32
    %c0_i32_18 = arith.constant 0 : i32
    %78 = arith.cmpi ne, %77, %c0_i32_18 : i32
    scf.if %78 {
      %c0_23 = arith.constant 0 : index
      %c0_24 = arith.constant 0 : index
      %87 = vector.load %arg6[%c0_23, %c0_24] : memref<8x1xf32, #tpu.memory_space<vmem>>, vector<8x1xf32>
      %88 = arith.maximumf %87, %68 : vector<8x1xf32>
      %c0_25 = arith.constant 0 : index
      %c0_26 = arith.constant 0 : index
      %89 = vector.load %arg6[%c0_25, %c0_26] : memref<8x1xf32, #tpu.memory_space<vmem>>, vector<8x1xf32>
      tpu.vector_store %arg6[%c0_25, %c0_26], %88 {strides = array<i32>} : memref<8x1xf32, #tpu.memory_space<vmem>>, vector<8x1xf32>,
    } else {
    }
    %c0_i32_19 = arith.constant 0 : i32
    %79 = arith.cmpi eq, %arg1, %c0_i32_19 : i32
    %c0_i32_20 = arith.constant 0 : i32
    %80 = arith.cmpi eq, %arg2, %c0_i32_20 : i32
    %81 = arith.andi %79, %80 : i1
    %82 = arith.extui %81 : i1 to i32
    %c0_i32_21 = arith.constant 0 : i32
    %83 = arith.cmpi ne, %82, %c0_i32_21 : i32
    scf.if %83 {
      %c0_23 = arith.constant 0 : index
      %c0_24 = arith.constant 0 : index
      %87 = vector.load %arg6[%c0_23, %c0_24] : memref<8x1xf32, #tpu.memory_space<vmem>>, vector<8x1xf32>
      %cst_25 = arith.constant 0.000000e+00 : f32
      %88 = vector.broadcast %cst_25 : f32 to vector<8x1xf32>
      %89 = arith.cmpf oeq, %87, %88 : vector<8x1xf32>
      %cst_26 = arith.constant 9.99999974E-6 : f32
      %90 = vector.broadcast %cst_26 : f32 to vector<8x1xf32>
      %91 = arith.select %89, %90, %87 : vector<8x1xi1>, vector<8x1xf32>
      %c0_27 = arith.constant 0 : index
      %c0_28 = arith.constant 0 : index
      %92 = vector.load %arg6[%c0_27, %c0_28] : memref<8x1xf32, #tpu.memory_space<vmem>>, vector<8x1xf32>
      tpu.vector_store %arg6[%c0_27, %c0_28], %91 {strides = array<i32>} : memref<8x1xf32, #tpu.memory_space<vmem>>, vector<8x1xf32>,
    } else {
    }
    %c1_i32 = arith.constant 1 : i32
    %84 = arith.cmpi eq, %arg1, %c1_i32 : i32
    %85 = arith.extui %84 : i1 to i32
    %c0_i32_22 = arith.constant 0 : i32
    %86 = arith.cmpi ne, %85, %c0_i32_22 : i32
    scf.if %86 {
      %cst_23 = arith.constant dense<0xFF800000> : vector<2304xf32>
      %87 = vector.multi_reduction <maximumf>, %62, %cst_23 [0] : vector<8x2304xf32> to vector<2304xf32>
      %88 = vector.shape_cast %87 : vector<2304xf32> to vector<1x2304xf32>
      %89 = tpu.iota {dimensions = array<i32: 0>} : vector<8x2304xi32>
      %90 = vector.broadcast %88 : vector<1x2304xf32> to vector<8x2304xf32>
      %91 = arith.cmpf oeq, %62, %90 : vector<8x2304xf32>
      %c8_i32 = arith.constant 8 : i32
      %92 = vector.broadcast %c8_i32 : i32 to vector<8x2304xi32>
      %93 = arith.select %91, %89, %92 : vector<8x2304xi1>, vector<8x2304xi32>
      %cst_24 = arith.constant dense<2147483647> : vector<2304xi32>
      %94 = vector.multi_reduction <minsi>, %93, %cst_24 [0] : vector<8x2304xi32> to vector<2304xi32>
      %95 = vector.shape_cast %94 : vector<2304xi32> to vector<1x2304xi32>
      %c0_25 = arith.constant 0 : index
      %c0_26 = arith.constant 0 : index
      %96 = vector.load %arg6[%c0_25, %c0_26] : memref<8x1xf32, #tpu.memory_space<vmem>>, vector<8x1xf32>
      %97 = vector.broadcast %96 : vector<8x1xf32> to vector<8x2304xf32>
      %98 = arith.cmpf oeq, %62, %97 : vector<8x2304xf32>
      %99 = arith.extui %98 : vector<8x2304xi1> to vector<8x2304xi32>
      %100 = arith.sitofp %99 : vector<8x2304xi32> to vector<8x2304xf32>
      %cst_27 = arith.constant dense<0.000000e+00> : vector<2304xf32>
      %101 = vector.multi_reduction <add>, %100, %cst_27 [0] : vector<8x2304xf32> to vector<2304xf32>
      %102 = vector.shape_cast %101 : vector<2304xf32> to vector<1x2304xf32>
      %cst_28 = arith.constant 0.699999988 : f32
      %103 = vector.broadcast %cst_28 : f32 to vector<1x2304xf32>
      %104 = arith.cmpf oge, %88, %103 : vector<1x2304xf32>
      %cst_29 = arith.constant 0.000000e+00 : f32
      %105 = vector.broadcast %cst_29 : f32 to vector<1x2304xf32>
      %106 = arith.cmpf ogt, %102, %105 : vector<1x2304xf32>
      %107 = arith.ori %104, %106 : vector<1x2304xi1>
      %cst_30 = arith.constant 1.000000e+00 : f32
      %cst_31 = arith.constant -1.000000e+00 : f32
      %108 = vector.broadcast %cst_30 : f32 to vector<1x2304xf32>
      %109 = vector.broadcast %cst_31 : f32 to vector<1x2304xf32>
      %110 = arith.select %107, %108, %109 : vector<1x2304xi1>, vector<1x2304xf32>
      %cst_32 = arith.constant 3.000000e-01 : f32
      %111 = vector.broadcast %cst_32 : f32 to vector<1x2304xf32>
      %112 = arith.cmpf olt, %88, %111 : vector<1x2304xf32>
      %cst_33 = arith.constant 0.000000e+00 : f32
      %113 = vector.broadcast %cst_33 : f32 to vector<1x2304xf32>
      %114 = arith.select %112, %113, %110 : vector<1x2304xi1>, vector<1x2304xf32>
      %cst_34 = arith.constant -1.000000e+00 : f32
      %115 = vector.broadcast %cst_34 : f32 to vector<1x2304xf32>
      %116 = arith.select %12, %114, %115 : vector<1x2304xi1>, vector<1x2304xf32>
      %117 = vector.broadcast %95 : vector<1x2304xi32> to vector<8x2304xi32>
      %118 = arith.cmpi eq, %89, %117 : vector<8x2304xi32>
      %119 = arith.extui %118 : vector<8x2304xi1> to vector<8x2304xi32>
      %120 = arith.sitofp %119 : vector<8x2304xi32> to vector<8x2304xf32>
      %121 = vector.extract_strided_slice %22 {offsets = [0, 6], sizes = [8, 1], strides = [1, 1]} : vector<8x16xf32> to vector<8x1xf32>
      %122 = vector.broadcast %121 : vector<8x1xf32> to vector<8x2304xf32>
      %123 = arith.mulf %120, %122 : vector<8x2304xf32>
      %cst_35 = arith.constant dense<0.000000e+00> : vector<2304xf32>
      %124 = vector.multi_reduction <add>, %123, %cst_35 [0] : vector<8x2304xf32> to vector<2304xf32>
      %125 = vector.shape_cast %124 : vector<2304xf32> to vector<1x2304xf32>
      %126 = vector.extract_strided_slice %22 {offsets = [0, 7], sizes = [8, 1], strides = [1, 1]} : vector<8x16xf32> to vector<8x1xf32>
      %127 = vector.broadcast %126 : vector<8x1xf32> to vector<8x2304xf32>
      %128 = arith.mulf %120, %127 : vector<8x2304xf32>
      %cst_36 = arith.constant dense<0.000000e+00> : vector<2304xf32>
      %129 = vector.multi_reduction <add>, %128, %cst_36 [0] : vector<8x2304xf32> to vector<2304xf32>
      %130 = vector.shape_cast %129 : vector<2304xf32> to vector<1x2304xf32>
      %131 = vector.extract_strided_slice %22 {offsets = [0, 8], sizes = [8, 1], strides = [1, 1]} : vector<8x16xf32> to vector<8x1xf32>
      %132 = vector.broadcast %131 : vector<8x1xf32> to vector<8x2304xf32>
      %133 = arith.mulf %120, %132 : vector<8x2304xf32>
      %cst_37 = arith.constant dense<0.000000e+00> : vector<2304xf32>
      %134 = vector.multi_reduction <add>, %133, %cst_37 [0] : vector<8x2304xf32> to vector<2304xf32>
      %135 = vector.shape_cast %134 : vector<2304xf32> to vector<1x2304xf32>
      %136 = vector.extract_strided_slice %22 {offsets = [0, 9], sizes = [8, 1], strides = [1, 1]} : vector<8x16xf32> to vector<8x1xf32>
      %137 = vector.broadcast %136 : vector<8x1xf32> to vector<8x2304xf32>
      %138 = arith.mulf %120, %137 : vector<8x2304xf32>
      %cst_38 = arith.constant dense<0.000000e+00> : vector<2304xf32>
      %139 = vector.multi_reduction <add>, %138, %cst_38 [0] : vector<8x2304xf32> to vector<2304xf32>
      %140 = vector.shape_cast %139 : vector<2304xf32> to vector<1x2304xf32>
      %141 = arith.subf %135, %7 : vector<1x2304xf32>
      %142 = arith.mulf %141, %13 : vector<1x2304xf32>
      %cst_39 = arith.constant 0.000000e+00 : f32
      %143 = vector.broadcast %cst_39 : f32 to vector<1x2304xf32>
      %144 = arith.select %12, %142, %143 : vector<1x2304xi1>, vector<1x2304xf32>
      %145 = arith.subf %140, %8 : vector<1x2304xf32>
      %146 = arith.mulf %145, %10 : vector<1x2304xf32>
      %cst_40 = arith.constant 0.000000e+00 : f32
      %147 = vector.broadcast %cst_40 : f32 to vector<1x2304xf32>
      %148 = arith.select %12, %146, %147 : vector<1x2304xi1>, vector<1x2304xf32>
      %149 = arith.mulf %125, %13 : vector<1x2304xf32>
      %150 = math.log %149 : vector<1x2304xf32>
      %cst_41 = arith.constant 0.000000e+00 : f32
      %151 = vector.broadcast %cst_41 : f32 to vector<1x2304xf32>
      %152 = arith.select %12, %150, %151 : vector<1x2304xi1>, vector<1x2304xf32>
      %153 = arith.mulf %130, %10 : vector<1x2304xf32>
      %154 = math.log %153 : vector<1x2304xf32>
      %cst_42 = arith.constant 0.000000e+00 : f32
      %155 = vector.broadcast %cst_42 : f32 to vector<1x2304xf32>
      %156 = arith.select %12, %154, %155 : vector<1x2304xi1>, vector<1x2304xf32>
      %cst_43 = arith.constant 1.000000e+00 : f32
      %157 = vector.broadcast %cst_43 : f32 to vector<1x2304xf32>
      %158 = arith.cmpf oeq, %116, %157 : vector<1x2304xf32>
      %cst_44 = arith.constant 1.000000e+00 : f32
      %cst_45 = arith.constant 0.000000e+00 : f32
      %159 = vector.broadcast %cst_44 : f32 to vector<1x2304xf32>
      %160 = vector.broadcast %cst_45 : f32 to vector<1x2304xf32>
      %161 = arith.select %158, %159, %160 : vector<1x2304xi1>, vector<1x2304xf32>
      %cst_46 = arith.constant 0.000000e+00 : f32
      %162 = vector.broadcast %cst_46 : f32 to vector<1x2304xf32>
      %163 = arith.cmpf oge, %116, %162 : vector<1x2304xf32>
      %cst_47 = arith.constant 1.000000e+00 : f32
      %cst_48 = arith.constant 0.000000e+00 : f32
      %164 = vector.broadcast %cst_47 : f32 to vector<1x2304xf32>
      %165 = vector.broadcast %cst_48 : f32 to vector<1x2304xf32>
      %166 = arith.select %163, %164, %165 : vector<1x2304xi1>, vector<1x2304xf32>
      %167 = tpu.iota {dimensions = array<i32: 0>} : vector<8x2304xi32>
      %cst_49 = arith.constant 0.000000e+00 : f32
      %168 = vector.broadcast %cst_49 : f32 to vector<8x2304xf32>
      %c0_i32_50 = arith.constant 0 : i32
      %169 = vector.broadcast %c0_i32_50 : i32 to vector<8x2304xi32>
      %170 = arith.cmpi eq, %167, %169 : vector<8x2304xi32>
      %cst_51 = arith.constant 0.000000e+00 : f32
      %171 = vector.shape_cast %116 : vector<1x2304xf32> to vector<1x2304xf32>
      %172 = vector.broadcast %171 : vector<1x2304xf32> to vector<8x2304xf32>
      %173 = vector.broadcast %cst_51 : f32 to vector<8x2304xf32>
      %174 = arith.select %170, %172, %173 : vector<8x2304xi1>, vector<8x2304xf32>
      %175 = arith.addf %168, %174 : vector<8x2304xf32>
      %c1_i32_52 = arith.constant 1 : i32
      %176 = vector.broadcast %c1_i32_52 : i32 to vector<8x2304xi32>
      %177 = arith.cmpi eq, %167, %176 : vector<8x2304xi32>
      %cst_53 = arith.constant 0.000000e+00 : f32
      %178 = vector.shape_cast %144 : vector<1x2304xf32> to vector<1x2304xf32>
      %179 = vector.broadcast %178 : vector<1x2304xf32> to vector<8x2304xf32>
      %180 = vector.broadcast %cst_53 : f32 to vector<8x2304xf32>
      %181 = arith.select %177, %179, %180 : vector<8x2304xi1>, vector<8x2304xf32>
      %182 = arith.addf %175, %181 : vector<8x2304xf32>
      %c2_i32 = arith.constant 2 : i32
      %183 = vector.broadcast %c2_i32 : i32 to vector<8x2304xi32>
      %184 = arith.cmpi eq, %167, %183 : vector<8x2304xi32>
      %cst_54 = arith.constant 0.000000e+00 : f32
      %185 = vector.shape_cast %148 : vector<1x2304xf32> to vector<1x2304xf32>
      %186 = vector.broadcast %185 : vector<1x2304xf32> to vector<8x2304xf32>
      %187 = vector.broadcast %cst_54 : f32 to vector<8x2304xf32>
      %188 = arith.select %184, %186, %187 : vector<8x2304xi1>, vector<8x2304xf32>
      %189 = arith.addf %182, %188 : vector<8x2304xf32>
      %c3_i32 = arith.constant 3 : i32
      %190 = vector.broadcast %c3_i32 : i32 to vector<8x2304xi32>
      %191 = arith.cmpi eq, %167, %190 : vector<8x2304xi32>
      %cst_55 = arith.constant 0.000000e+00 : f32
      %192 = vector.shape_cast %152 : vector<1x2304xf32> to vector<1x2304xf32>
      %193 = vector.broadcast %192 : vector<1x2304xf32> to vector<8x2304xf32>
      %194 = vector.broadcast %cst_55 : f32 to vector<8x2304xf32>
      %195 = arith.select %191, %193, %194 : vector<8x2304xi1>, vector<8x2304xf32>
      %196 = arith.addf %189, %195 : vector<8x2304xf32>
      %c4_i32 = arith.constant 4 : i32
      %197 = vector.broadcast %c4_i32 : i32 to vector<8x2304xi32>
      %198 = arith.cmpi eq, %167, %197 : vector<8x2304xi32>
      %cst_56 = arith.constant 0.000000e+00 : f32
      %199 = vector.shape_cast %156 : vector<1x2304xf32> to vector<1x2304xf32>
      %200 = vector.broadcast %199 : vector<1x2304xf32> to vector<8x2304xf32>
      %201 = vector.broadcast %cst_56 : f32 to vector<8x2304xf32>
      %202 = arith.select %198, %200, %201 : vector<8x2304xi1>, vector<8x2304xf32>
      %203 = arith.addf %196, %202 : vector<8x2304xf32>
      %c5_i32 = arith.constant 5 : i32
      %204 = vector.broadcast %c5_i32 : i32 to vector<8x2304xi32>
      %205 = arith.cmpi eq, %167, %204 : vector<8x2304xi32>
      %cst_57 = arith.constant 0.000000e+00 : f32
      %206 = vector.shape_cast %161 : vector<1x2304xf32> to vector<1x2304xf32>
      %207 = vector.broadcast %206 : vector<1x2304xf32> to vector<8x2304xf32>
      %208 = vector.broadcast %cst_57 : f32 to vector<8x2304xf32>
      %209 = arith.select %205, %207, %208 : vector<8x2304xi1>, vector<8x2304xf32>
      %210 = arith.addf %203, %209 : vector<8x2304xf32>
      %c6_i32 = arith.constant 6 : i32
      %211 = vector.broadcast %c6_i32 : i32 to vector<8x2304xi32>
      %212 = arith.cmpi eq, %167, %211 : vector<8x2304xi32>
      %cst_58 = arith.constant 0.000000e+00 : f32
      %213 = vector.shape_cast %166 : vector<1x2304xf32> to vector<1x2304xf32>
      %214 = vector.broadcast %213 : vector<1x2304xf32> to vector<8x2304xf32>
      %215 = vector.broadcast %cst_58 : f32 to vector<8x2304xf32>
      %216 = arith.select %212, %214, %215 : vector<8x2304xi1>, vector<8x2304xf32>
      %217 = arith.addf %210, %216 : vector<8x2304xf32>
      %218 = vector.shape_cast %217 : vector<8x2304xf32> to vector<1x8x2304xf32>
      %c0_59 = arith.constant 0 : index
      %c0_60 = arith.constant 0 : index
      %c0_61 = arith.constant 0 : index
      %219 = vector.load %arg5[%c0_59, %c0_60, %c0_61] : memref<1x8x2304xf32, #tpu.memory_space<vmem>>, vector<1x8x2304xf32>
      tpu.vector_store %arg5[%c0_59, %c0_60, %c0_61], %218 {strides = array<i32>} : memref<1x8x2304xf32, #tpu.memory_space<vmem>>, vector<1x8x2304xf32>,
    } else {
    }
    return
  }
  func.func @transform_0(%arg0: i32, %arg1: i32, %arg2: i32) -> (i32, i32, i32) {
    %c0_i32 = arith.constant 0 : i32
    %c0_i32_0 = arith.constant 0 : i32
    %c0_i32_1 = arith.constant 0 : i32
    %c0_i32_2 = arith.constant 0 : i32
    return %c0_i32, %c0_i32_0, %c0_i32_1 : i32, i32, i32
  }
  func.func @transform_1(%arg0: i32, %arg1: i32, %arg2: i32) -> (i32, i32, i32) {
    %c0_i32 = arith.constant 0 : i32
    %c0_i32_0 = arith.constant 0 : i32
    %c0_i32_1 = arith.constant 0 : i32
    return %arg0, %c0_i32, %c0_i32_0 : i32, i32, i32
  }
  func.func @transform_2(%arg0: i32, %arg1: i32, %arg2: i32) -> (i32, i32, i32) {
    %0 = arith.muli %arg2, %arg1 : i32
    %c0_i32 = arith.constant 0 : i32
    %c0_i32_0 = arith.constant 0 : i32
    return %arg0, %c0_i32, %0 : i32, i32, i32
  }
}

</mosaic_0001>

<bundles_post_ra>
// kernel: mul.3
= control target key start
LH: loop header
LB: loop body
LE: loop exit
PB: predicated region body
PF: predicated region fallthrough
CT: control target
= control target key end

     0   :  { %s56_s0 = inlined_call_operand.vmem [shape: f32[2,8,1], index: 0, kind: input, shape index: {}]   ;;  %s57_s1 = inlined_call_operand.vmem [shape: f32[2,8,1], index: 1, kind: input, shape index: {}]   ;;  %s58_s2 = inlined_call_operand.vmem [shape: f32[2,8,1], index: 2, kind: output, shape index: {}]  }
   0x1   :  { %v3_v0 = vld [vmem:[%s56_s0] sm:$0xff]  ;;  %v20_v2 = vld [vmem:[%s56_s0 + $0x8] sm:$0xff] }
   0x2   :  { %v4_v1 = vld [vmem:[%s57_s1] sm:$0xff]  ;;  %v21_v4 = vld [vmem:[%s57_s1 + $0x8] sm:$0xff] }
   0x3   :  { %v7_v3 = vmul.f32 %v4_v1, %v3_v0  ;;  %v16_v5 = vmul.f32 %v21_v4, %v20_v2 }
   0x5   :  { %9 = vst [vmem:[%s58_s2] sm:$0xff] %v7_v3  ;;  %22 = vst [vmem:[%s58_s2 + $0x8] sm:$0xff] %v16_v5 }

// kernel: squeeze.18
= control target key start
LH: loop header
LB: loop body
LE: loop exit
PB: predicated region body
PF: predicated region fallthrough
CT: control target
= control target key end

     0   :  { %vm92_vm0 = vcmask 130048   ;;  %vm182_vm1 = vcmask 1047556   ;;  %s810_s14 = smov 112   ;;  %s811_s19 = smov 96   ;;  %s1381_s0 = inlined_call_operand.vmem [shape: f32[2,2304], index: 0, kind: input, shape index: {}]   ;;  %s1382_s1 = inlined_call_operand.vmem [shape: f32[2,1,144,16], index: 1, kind: output, shape index: {}]  }
   0x1   :  { %v671_v0 = vld [vmem:[%s1381_s0 + $0x22] sm:$0x3]  ;;  %v672_v1 = vld [vmem:[%s1381_s0 + $0x20] sm:$0x3]  ;;  %v677_v2 = vld [vmem:[%s1381_s0 + $0x16] sm:$0x3] }
   0x2   :  { %9 = vst [vmem:[#allocation0 + $0x88] sm:$0x3] %v671_v0  ;;  %14 = vst [vmem:[#allocation0 + $0x80] sm:$0x3] %v672_v1  ;;  %v678_v3 = vld [vmem:[%s1381_s0 + $0x14] sm:$0x3] }
   0x3   :  { %v679_v4 = vld [vmem:[%s1381_s0 + $0x12] sm:$0x3]  ;;  %39 = vst [vmem:[#allocation0 + $0x58] sm:$0x3] %v677_v2  ;;  %44 = vst [vmem:[#allocation0 + $0x50] sm:$0x3] %v678_v3 }
   0x4   :  { %49 = vst [vmem:[#allocation0 + $0x48] sm:$0x3] %v679_v4  ;;  %v680_v5 = vld [vmem:[%s1381_s0 + $0x10] sm:$0x3]  ;;  %v685_v6 = vld [vmem:[%s1381_s0 + $0x6] sm:$0x3] }
   0x5   :  { %54 = vst [vmem:[#allocation0 + $0x40] sm:$0x3] %v680_v5  ;;  %79 = vst [vmem:[#allocation0 + $0x18] sm:$0x3] %v685_v6  ;;  %v686_v7 = vld [vmem:[%s1381_s0 + $0x4] sm:$0x3] }
   0x6   :  { %v687_v8 = vld [vmem:[%s1381_s0 + $0x2] sm:$0x3]  ;;  %v89_v9 = vld [vmem:[%s1381_s0] sm:$0x3]  ;;  %84 = vst [vmem:[#allocation0 + $0x10] sm:$0x3] %v686_v7 }
   0x7   :  { %88 = vst [vmem:[#allocation0 + $0x8] sm:$0x3] %v687_v8  ;;  %90 = vst [vmem:[#allocation0] sm:$0x3] %v89_v9  ;;  %v673_v10 = vld [vmem:[%s1381_s0 + $0x1e] sm:$0x3] }
   0x8   :  { %v674_v11 = vld [vmem:[%s1381_s0 + $0x1c] sm:$0x3]  ;;  %v675_v12 = vld [vmem:[%s1381_s0 + $0x1a] sm:$0x3]  ;;  %19 = vst [vmem:[#allocation0 + $0x78] sm:$0x3] %v673_v10 }
   0x9   :  { %24 = vst [vmem:[#allocation0 + $0x70] sm:$0x3] %v674_v11  ;;  %29 = vst [vmem:[#allocation0 + $0x68] sm:$0x3] %v675_v12  ;;  %v676_v13 = vld [vmem:[%s1381_s0 + $0x18] sm:$0x3] }
   0xa   :  { %v681_v14 = vld [vmem:[%s1381_s0 + $0xe] sm:$0x3]  ;;  %v682_v15 = vld [vmem:[%s1381_s0 + $0xc] sm:$0x3]  ;;  %34 = vst [vmem:[#allocation0 + $0x60] sm:$0x3] %v676_v13 }
   0xb   :  { %59 = vst [vmem:[#allocation0 + $0x38] sm:$0x3] %v681_v14  ;;  %64 = vst [vmem:[#allocation0 + $0x30] sm:$0x3] %v682_v15  ;;  %v683_v16 = vld [vmem:[%s1381_s0 + $0xa] sm:$0x3] }
   0xc   :  { %v684_v17 = vld [vmem:[%s1381_s0 + $0x8] sm:$0x3]  ;;  %69 = vst [vmem:[#allocation0 + $0x28] sm:$0x3] %v683_v16  ;;  %v170_v18 = vld [vmem:[#allocation0 + $0x80] sm:$0x3]  }
   0xd   :  { %74 = vst [vmem:[#allocation0 + $0x20] sm:$0x3] %v684_v17  ;;  %v881_v19 = vld.sshfl [vmem:[#allocation0 + $0x80] sm:$0xff pattern:$0x99999180]   ;;  %s812_s20 = smov 80  }
   0xe   :  { %703 = vst.msk [vmem:[%s1382_s1 + $0x80] ss:$144 sm:$0x3] %vm92_vm0, %v170_v18   ;;  %240 = vrot.lane.b32.xlu0 %v881_v19, %s810_s14  ;;  %v175_v20 = vld [vmem:[#allocation0 + $0x88] sm:$0x3]   ;;  %s813_s21 = smov 64  }
   0xf   :  { %v135_v21 = vld [vmem:[#allocation0 + $0x48] sm:$0x3]   ;;  %v140_v22 = vld [vmem:[#allocation0 + $0x50] sm:$0x3]   ;;  %v130_v23 = vld [vmem:[#allocation0 + $0x40] sm:$0x3]  }
  0x10   :  { %704 = vst.msk [vmem:[%s1382_s1 + $0x88] ss:$144 sm:$0x3] %vm92_vm0, %v175_v20   ;;  %696 = vst.msk [vmem:[%s1382_s1 + $0x48] ss:$144 sm:$0x3] %vm92_vm0, %v135_v21  }
  0x11   :  { %697 = vst.msk [vmem:[%s1382_s1 + $0x50] ss:$144 sm:$0x3] %vm92_vm0, %v140_v22   ;;  %v209_v24 = vld.sshfl [vmem:[#allocation0 + $0x40] sm:$0xff pattern:$0x99999180]  }
  0x12   :  { %695 = vst.msk [vmem:[%s1382_s1 + $0x40] ss:$144 sm:$0x3] %vm92_vm0, %v130_v23   ;;  %v211_v25 = vld.sshfl [vmem:[#allocation0 + $0x50] sm:$0xff pattern:$0x80911111]  }
  0x13   :  { %v145_v26 = vld [vmem:[#allocation0 + $0x58] sm:$0x3]   ;;  %v906_v27 = vsel %vm182_vm1, %v211_v25, %v209_v24  ;;  %v179_v28 = vld.sshfl [vmem:[#allocation0] sm:$0xff pattern:$0x99999180]   ;;  %s814_s22 = smov 48  }
  0x14   :  { %698 = vst.msk [vmem:[%s1382_s1 + $0x58] ss:$144 sm:$0x3] %vm92_vm0, %v145_v26   ;;  %v181_v29 = vld.sshfl [vmem:[#allocation0 + $0x10] sm:$0xff pattern:$0x80911111]   ;;  %214 = vrot.lane.b32.xlu1 %v906_v27, %s810_s14 }
  0x15   :  { %v915_v30 = vsel %vm182_vm1, %v181_v29, %v179_v28  ;;  %v160_v31 = vld [vmem:[#allocation0 + $0x70] sm:$0x3]   ;;  %v224_v32 = vld.sshfl [vmem:[#allocation0 + $0x60] sm:$0xff pattern:$0x99999180]   ;;  %s815_s23 = smov 32  }
  0x16   :  { %184 = vrot.lane.b32.xlu0 %v915_v30, %s810_s14  ;;  %701 = vst.msk [vmem:[%s1382_s1 + $0x70] ss:$144 sm:$0x3] %vm92_vm0, %v160_v31   ;;  %v226_v33 = vld.sshfl [vmem:[#allocation0 + $0x70] sm:$0xff pattern:$0x80911111]  }
  0x17   :  { %v165_v34 = vld [vmem:[#allocation0 + $0x78] sm:$0x3]   ;;  %v228_v35 = vsel %vm182_vm1, %v226_v33, %v224_v32  ;;  %v120_v36 = vld [vmem:[#allocation0 + $0x30] sm:$0x3]   ;;  %v91_v43 = vld [vmem:[#allocation0] sm:$0x3]  }
  0x18   :  { %702 = vst.msk [vmem:[%s1382_s1 + $0x78] ss:$144 sm:$0x3] %vm92_vm0, %v165_v34   ;;  %v125_v37 = vld [vmem:[#allocation0 + $0x38] sm:$0x3]   ;;  %229 = vrot.lane.b32.xlu1 %v228_v35, %s810_s14  ;;  %s816_s24 = smov 16  }
  0x19   :  { %v100_v38 = vld [vmem:[#allocation0 + $0x10] sm:$0x3]   ;;  %693 = vst.msk [vmem:[%s1382_s1 + $0x30] ss:$144 sm:$0x3] %vm92_vm0, %v120_v36  }
  0x1a   :  { %694 = vst.msk [vmem:[%s1382_s1 + $0x38] ss:$144 sm:$0x3] %vm92_vm0, %v125_v37   ;;  %v194_v39 = vld.sshfl [vmem:[#allocation0 + $0x20] sm:$0xff pattern:$0x99999180]  }
  0x1b   :  { %v196_v40 = vld.sshfl [vmem:[#allocation0 + $0x30] sm:$0xff pattern:$0x80911111]   ;;  %689 = vst.msk [vmem:[%s1382_s1 + $0x10] ss:$144 sm:$0x3] %vm92_vm0, %v100_v38  }
  0x1c   :  { %v198_v41 = vsel %vm182_vm1, %v196_v40, %v194_v39  ;;  %v105_v42 = vld [vmem:[#allocation0 + $0x18] sm:$0x3]   ;;  %v95_v44 = vld [vmem:[#allocation0 + $0x8] sm:$0x3]   ;;  %v110_v45 = vld [vmem:[#allocation0 + $0x20] sm:$0x3]   ;;  %252 = vrot.lane.b32.xlu1 %v915_v30, %s811_s19 }
  0x1d   :  { %199 = vrot.lane.b32.xlu0 %v198_v41, %s810_s14  ;;  %690 = vst.msk [vmem:[%s1382_s1 + $0x18] ss:$144 sm:$0x3] %vm92_vm0, %v105_v42   ;;  %93 = vst.msk [vmem:[%s1382_s1] ss:$144 sm:$0x3] %vm92_vm0, %v91_v43  }
  0x1e   :  { %688 = vst.msk [vmem:[%s1382_s1 + $0x8] ss:$144 sm:$0x3] %vm92_vm0, %v95_v44   ;;  %v115_v46 = vld [vmem:[#allocation0 + $0x28] sm:$0x3]  }
  0x1f   :  { %v150_v47 = vld [vmem:[#allocation0 + $0x60] sm:$0x3]   ;;  %691 = vst.msk [vmem:[%s1382_s1 + $0x20] ss:$144 sm:$0x3] %vm92_vm0, %v110_v45  }
  0x20   :  { %692 = vst.msk [vmem:[%s1382_s1 + $0x28] ss:$144 sm:$0x3] %vm92_vm0, %v115_v46   ;;  %699 = vst.msk [vmem:[%s1382_s1 + $0x60] ss:$144 sm:$0x3] %vm92_vm0, %v150_v47   ;;  %282 = vrot.lane.b32.xlu1 %v906_v27, %s811_s19 }
  0x21   :  { %v155_v48 = vld [vmem:[#allocation0 + $0x68] sm:$0x3]   ;;  %267 = vrot.lane.b32.xlu0 %v198_v41, %s811_s19 }
  0x22   :  { %700 = vst.msk [vmem:[%s1382_s1 + $0x68] ss:$144 sm:$0x3] %vm92_vm0, %v155_v48  }
  0x24   :  { %308 = vrot.lane.b32.xlu1 %v881_v19, %s811_s19 }
  0x25   :  { %297 = vrot.lane.b32.xlu0 %v228_v35, %s811_s19 }
  0x28   :  { %335 = vrot.lane.b32.xlu1 %v198_v41, %s812_s20 }
  0x29   :  { %320 = vrot.lane.b32.xlu0 %v915_v30, %s812_s20 }
  0x2c   :  { %365 = vrot.lane.b32.xlu1 %v228_v35, %s812_s20 }
  0x2d   :  { %350 = vrot.lane.b32.xlu0 %v906_v27, %s812_s20 }
  0x30   :  { %388 = vrot.lane.b32.xlu1 %v915_v30, %s813_s21 }
  0x31   :  { %376 = vrot.lane.b32.xlu0 %v881_v19, %s812_s20 }
  0x34   :  { %418 = vrot.lane.b32.xlu1 %v906_v27, %s813_s21 }
  0x35   :  { %403 = vrot.lane.b32.xlu0 %v198_v41, %s813_s21 }
  0x38   :  { %444 = vrot.lane.b32.xlu1 %v881_v19, %s813_s21 }
  0x39   :  { %433 = vrot.lane.b32.xlu0 %v228_v35, %s813_s21 }
  0x3c   :  { %471 = vrot.lane.b32.xlu1 %v198_v41, %s814_s22 }
  0x3d   :  { %456 = vrot.lane.b32.xlu0 %v915_v30, %s814_s22 }
  0x40   :  { %501 = vrot.lane.b32.xlu1 %v228_v35, %s814_s22 }
  0x41   :  { %486 = vrot.lane.b32.xlu0 %v906_v27, %s814_s22 }
  0x44   :  { %524 = vrot.lane.b32.xlu1 %v915_v30, %s815_s23 }
  0x45   :  { %512 = vrot.lane.b32.xlu0 %v881_v19, %s814_s22 }
  0x48   :  { %554 = vrot.lane.b32.xlu1 %v906_v27, %s815_s23 }
  0x49   :  { %539 = vrot.lane.b32.xlu0 %v198_v41, %s815_s23 }
  0x4c   :  { %580 = vrot.lane.b32.xlu1 %v881_v19, %s815_s23 }
  0x4d   :  { %569 = vrot.lane.b32.xlu0 %v228_v35, %s815_s23 }
  0x50   :  { %607 = vrot.lane.b32.xlu1 %v198_v41, %s816_s24 }
  0x51   :  { %592 = vrot.lane.b32.xlu0 %v915_v30, %s816_s24 }
  0x54   :  { %637 = vrot.lane.b32.xlu1 %v228_v35, %s816_s24 }
  0x55   :  { %622 = vrot.lane.b32.xlu0 %v906_v27, %s816_s24 }
  0x59   :  { %648 = vrot.lane.b32.xlu0 %v881_v19, %s816_s24 }
  0x80   :  { %v241_v49 = vpop.permute.xlu0 %240  }
  0x81   :  { %717 = vst.msk [vmem:[%s1382_s1 + $0x81] ss:$8 sm:$0x3] %vm92_vm0, %v241_v49   ;;  %718 = vst.msk [vmem:[%s1382_s1 + $0x101] ss:$8 sm:$0xc] %vm92_vm0, %v241_v49  }
  0x86   :  { %v215_v50 = vpop.permute.xlu1 %214  }
  0x87   :  { %711 = vst.msk [vmem:[%s1382_s1 + $0x41] ss:$8 sm:$0x3] %vm92_vm0, %v215_v50   ;;  %712 = vst.msk [vmem:[%s1382_s1 + $0xc1] ss:$8 sm:$0x3c] %vm92_vm0, %v215_v50  }
  0x88   :  { %713 = vst.msk [vmem:[%s1382_s1 + $0x21] ss:$8 sm:$0xc0] %vm92_vm0, %v215_v50   ;;  %v185_v51 = vpop.permute.xlu0 %184  }
  0x89   :  { %705 = vst.msk [vmem:[%s1382_s1 + $0x1] ss:$8 sm:$0x3] %vm92_vm0, %v185_v51   ;;  %706 = vst.msk [vmem:[%s1382_s1 + $0x81] ss:$8 sm:$0x3c] %vm92_vm0, %v185_v51  }
  0x8a   :  { %707 = vst.msk [vmem:[%s1382_s1 - $0x1f] ss:$8 sm:$0xc0] %vm92_vm0, %v185_v51   ;;  %v230_v52 = vpop.permute.xlu1 %229  }
  0x8b   :  { %714 = vst.msk [vmem:[%s1382_s1 + $0x61] ss:$8 sm:$0x3] %vm92_vm0, %v230_v52   ;;  %715 = vst.msk [vmem:[%s1382_s1 + $0xe1] ss:$8 sm:$0x3c] %vm92_vm0, %v230_v52  }
  0x8c   :  { %716 = vst.msk [vmem:[%s1382_s1 + $0x41] ss:$8 sm:$0xc0] %vm92_vm0, %v230_v52  }
  0x8e   :  { %v253_v54 = vpop.permute.xlu1 %252  }
  0x8f   :  { %v200_v53 = vpop.permute.xlu0 %199   ;;  %719 = vst.msk [vmem:[%s1382_s1 + $0x2] ss:$8 sm:$0x3] %vm92_vm0, %v253_v54   ;;  %720 = vst.msk [vmem:[%s1382_s1 + $0x82] ss:$8 sm:$0x3c] %vm92_vm0, %v253_v54  }
  0x90   :  { %708 = vst.msk [vmem:[%s1382_s1 + $0x21] ss:$8 sm:$0x3] %vm92_vm0, %v200_v53   ;;  %709 = vst.msk [vmem:[%s1382_s1 + $0xa1] ss:$8 sm:$0x3c] %vm92_vm0, %v200_v53  }
  0x91   :  { %710 = vst.msk [vmem:[%s1382_s1 + $0x1] ss:$8 sm:$0xc0] %vm92_vm0, %v200_v53   ;;  %721 = vst.msk [vmem:[%s1382_s1 - $0x1e] ss:$8 sm:$0xc0] %vm92_vm0, %v253_v54  }
  0x92   :  { %v283_v56 = vpop.permute.xlu1 %282  }
  0x93   :  { %v268_v55 = vpop.permute.xlu0 %267   ;;  %725 = vst.msk [vmem:[%s1382_s1 + $0x42] ss:$8 sm:$0x3] %vm92_vm0, %v283_v56   ;;  %726 = vst.msk [vmem:[%s1382_s1 + $0xc2] ss:$8 sm:$0x3c] %vm92_vm0, %v283_v56  }
  0x94   :  { %722 = vst.msk [vmem:[%s1382_s1 + $0x22] ss:$8 sm:$0x3] %vm92_vm0, %v268_v55   ;;  %723 = vst.msk [vmem:[%s1382_s1 + $0xa2] ss:$8 sm:$0x3c] %vm92_vm0, %v268_v55  }
  0x95   :  { %724 = vst.msk [vmem:[%s1382_s1 + $0x2] ss:$8 sm:$0xc0] %vm92_vm0, %v268_v55   ;;  %727 = vst.msk [vmem:[%s1382_s1 + $0x22] ss:$8 sm:$0xc0] %vm92_vm0, %v283_v56  }
  0x96   :  { %v309_v58 = vpop.permute.xlu1 %308  }
  0x97   :  { %v298_v57 = vpop.permute.xlu0 %297   ;;  %731 = vst.msk [vmem:[%s1382_s1 + $0x82] ss:$8 sm:$0x3] %vm92_vm0, %v309_v58   ;;  %732 = vst.msk [vmem:[%s1382_s1 + $0x102] ss:$8 sm:$0xc] %vm92_vm0, %v309_v58  }
  0x98   :  { %728 = vst.msk [vmem:[%s1382_s1 + $0x62] ss:$8 sm:$0x3] %vm92_vm0, %v298_v57   ;;  %729 = vst.msk [vmem:[%s1382_s1 + $0xe2] ss:$8 sm:$0x3c] %vm92_vm0, %v298_v57  }
  0x99   :  { %730 = vst.msk [vmem:[%s1382_s1 + $0x42] ss:$8 sm:$0xc0] %vm92_vm0, %v298_v57  }
  0x9a   :  { %v336_v60 = vpop.permute.xlu1 %335  }
  0x9b   :  { %v321_v59 = vpop.permute.xlu0 %320   ;;  %736 = vst.msk [vmem:[%s1382_s1 + $0x23] ss:$8 sm:$0x3] %vm92_vm0, %v336_v60   ;;  %737 = vst.msk [vmem:[%s1382_s1 + $0xa3] ss:$8 sm:$0x3c] %vm92_vm0, %v336_v60  }
  0x9c   :  { %733 = vst.msk [vmem:[%s1382_s1 + $0x3] ss:$8 sm:$0x3] %vm92_vm0, %v321_v59   ;;  %734 = vst.msk [vmem:[%s1382_s1 + $0x83] ss:$8 sm:$0x3c] %vm92_vm0, %v321_v59  }
  0x9d   :  { %735 = vst.msk [vmem:[%s1382_s1 - $0x1d] ss:$8 sm:$0xc0] %vm92_vm0, %v321_v59   ;;  %738 = vst.msk [vmem:[%s1382_s1 + $0x3] ss:$8 sm:$0xc0] %vm92_vm0, %v336_v60  }
  0x9e   :  { %v366_v62 = vpop.permute.xlu1 %365  }
  0x9f   :  { %v351_v61 = vpop.permute.xlu0 %350   ;;  %742 = vst.msk [vmem:[%s1382_s1 + $0x63] ss:$8 sm:$0x3] %vm92_vm0, %v366_v62   ;;  %743 = vst.msk [vmem:[%s1382_s1 + $0xe3] ss:$8 sm:$0x3c] %vm92_vm0, %v366_v62  }
  0xa0   :  { %739 = vst.msk [vmem:[%s1382_s1 + $0x43] ss:$8 sm:$0x3] %vm92_vm0, %v351_v61   ;;  %740 = vst.msk [vmem:[%s1382_s1 + $0xc3] ss:$8 sm:$0x3c] %vm92_vm0, %v351_v61  }
  0xa1   :  { %741 = vst.msk [vmem:[%s1382_s1 + $0x23] ss:$8 sm:$0xc0] %vm92_vm0, %v351_v61   ;;  %744 = vst.msk [vmem:[%s1382_s1 + $0x43] ss:$8 sm:$0xc0] %vm92_vm0, %v366_v62  }
  0xa2   :  { %v389_v0 = vpop.permute.xlu1 %388  }
  0xa3   :  { %v377_v63 = vpop.permute.xlu0 %376   ;;  %747 = vst.msk [vmem:[%s1382_s1 + $0x4] ss:$8 sm:$0x3] %vm92_vm0, %v389_v0   ;;  %748 = vst.msk [vmem:[%s1382_s1 + $0x84] ss:$8 sm:$0x3c] %vm92_vm0, %v389_v0  }
  0xa4   :  { %745 = vst.msk [vmem:[%s1382_s1 + $0x83] ss:$8 sm:$0x3] %vm92_vm0, %v377_v63   ;;  %746 = vst.msk [vmem:[%s1382_s1 + $0x103] ss:$8 sm:$0xc] %vm92_vm0, %v377_v63  }
  0xa5   :  { %749 = vst.msk [vmem:[%s1382_s1 - $0x1c] ss:$8 sm:$0xc0] %vm92_vm0, %v389_v0  }
  0xa6   :  { %v419_v2 = vpop.permute.xlu1 %418  }
  0xa7   :  { %v404_v1 = vpop.permute.xlu0 %403   ;;  %753 = vst.msk [vmem:[%s1382_s1 + $0x44] ss:$8 sm:$0x3] %vm92_vm0, %v419_v2   ;;  %754 = vst.msk [vmem:[%s1382_s1 + $0xc4] ss:$8 sm:$0x3c] %vm92_vm0, %v419_v2  }
  0xa8   :  { %750 = vst.msk [vmem:[%s1382_s1 + $0x24] ss:$8 sm:$0x3] %vm92_vm0, %v404_v1   ;;  %751 = vst.msk [vmem:[%s1382_s1 + $0xa4] ss:$8 sm:$0x3c] %vm92_vm0, %v404_v1  }
  0xa9   :  { %752 = vst.msk [vmem:[%s1382_s1 + $0x4] ss:$8 sm:$0xc0] %vm92_vm0, %v404_v1   ;;  %755 = vst.msk [vmem:[%s1382_s1 + $0x24] ss:$8 sm:$0xc0] %vm92_vm0, %v419_v2  }
  0xaa   :  { %v445_v4 = vpop.permute.xlu1 %444  }
  0xab   :  { %v434_v3 = vpop.permute.xlu0 %433   ;;  %759 = vst.msk [vmem:[%s1382_s1 + $0x84] ss:$8 sm:$0x3] %vm92_vm0, %v445_v4   ;;  %760 = vst.msk [vmem:[%s1382_s1 + $0x104] ss:$8 sm:$0xc] %vm92_vm0, %v445_v4  }
  0xac   :  { %756 = vst.msk [vmem:[%s1382_s1 + $0x64] ss:$8 sm:$0x3] %vm92_vm0, %v434_v3   ;;  %757 = vst.msk [vmem:[%s1382_s1 + $0xe4] ss:$8 sm:$0x3c] %vm92_vm0, %v434_v3  }
  0xad   :  { %758 = vst.msk [vmem:[%s1382_s1 + $0x44] ss:$8 sm:$0xc0] %vm92_vm0, %v434_v3  }
  0xae   :  { %v472_v6 = vpop.permute.xlu1 %471  }
  0xaf   :  { %v457_v5 = vpop.permute.xlu0 %456   ;;  %764 = vst.msk [vmem:[%s1382_s1 + $0x25] ss:$8 sm:$0x3] %vm92_vm0, %v472_v6   ;;  %765 = vst.msk [vmem:[%s1382_s1 + $0xa5] ss:$8 sm:$0x3c] %vm92_vm0, %v472_v6  }
  0xb0   :  { %761 = vst.msk [vmem:[%s1382_s1 + $0x5] ss:$8 sm:$0x3] %vm92_vm0, %v457_v5   ;;  %762 = vst.msk [vmem:[%s1382_s1 + $0x85] ss:$8 sm:$0x3c] %vm92_vm0, %v457_v5  }
  0xb1   :  { %763 = vst.msk [vmem:[%s1382_s1 - $0x1b] ss:$8 sm:$0xc0] %vm92_vm0, %v457_v5   ;;  %766 = vst.msk [vmem:[%s1382_s1 + $0x5] ss:$8 sm:$0xc0] %vm92_vm0, %v472_v6  }
  0xb2   :  { %v502_v8 = vpop.permute.xlu1 %501  }
  0xb3   :  { %v487_v7 = vpop.permute.xlu0 %486   ;;  %770 = vst.msk [vmem:[%s1382_s1 + $0x65] ss:$8 sm:$0x3] %vm92_vm0, %v502_v8   ;;  %771 = vst.msk [vmem:[%s1382_s1 + $0xe5] ss:$8 sm:$0x3c] %vm92_vm0, %v502_v8  }
  0xb4   :  { %767 = vst.msk [vmem:[%s1382_s1 + $0x45] ss:$8 sm:$0x3] %vm92_vm0, %v487_v7   ;;  %768 = vst.msk [vmem:[%s1382_s1 + $0xc5] ss:$8 sm:$0x3c] %vm92_vm0, %v487_v7  }
  0xb5   :  { %769 = vst.msk [vmem:[%s1382_s1 + $0x25] ss:$8 sm:$0xc0] %vm92_vm0, %v487_v7   ;;  %772 = vst.msk [vmem:[%s1382_s1 + $0x45] ss:$8 sm:$0xc0] %vm92_vm0, %v502_v8  }
  0xb6   :  { %v525_v10 = vpop.permute.xlu1 %524  }
  0xb7   :  { %v513_v9 = vpop.permute.xlu0 %512   ;;  %775 = vst.msk [vmem:[%s1382_s1 + $0x6] ss:$8 sm:$0x3] %vm92_vm0, %v525_v10   ;;  %776 = vst.msk [vmem:[%s1382_s1 + $0x86] ss:$8 sm:$0x3c] %vm92_vm0, %v525_v10  }
  0xb8   :  { %773 = vst.msk [vmem:[%s1382_s1 + $0x85] ss:$8 sm:$0x3] %vm92_vm0, %v513_v9   ;;  %774 = vst.msk [vmem:[%s1382_s1 + $0x105] ss:$8 sm:$0xc] %vm92_vm0, %v513_v9  }
  0xb9   :  { %777 = vst.msk [vmem:[%s1382_s1 - $0x1a] ss:$8 sm:$0xc0] %vm92_vm0, %v525_v10  }
  0xba   :  { %v555_v12 = vpop.permute.xlu1 %554  }
  0xbb   :  { %v540_v11 = vpop.permute.xlu0 %539   ;;  %781 = vst.msk [vmem:[%s1382_s1 + $0x46] ss:$8 sm:$0x3] %vm92_vm0, %v555_v12   ;;  %782 = vst.msk [vmem:[%s1382_s1 + $0xc6] ss:$8 sm:$0x3c] %vm92_vm0, %v555_v12  }
  0xbc   :  { %778 = vst.msk [vmem:[%s1382_s1 + $0x26] ss:$8 sm:$0x3] %vm92_vm0, %v540_v11   ;;  %779 = vst.msk [vmem:[%s1382_s1 + $0xa6] ss:$8 sm:$0x3c] %vm92_vm0, %v540_v11  }
  0xbd   :  { %780 = vst.msk [vmem:[%s1382_s1 + $0x6] ss:$8 sm:$0xc0] %vm92_vm0, %v540_v11   ;;  %783 = vst.msk [vmem:[%s1382_s1 + $0x26] ss:$8 sm:$0xc0] %vm92_vm0, %v555_v12  }
  0xbe   :  { %v581_v14 = vpop.permute.xlu1 %580  }
  0xbf   :  { %v570_v13 = vpop.permute.xlu0 %569   ;;  %787 = vst.msk [vmem:[%s1382_s1 + $0x86] ss:$8 sm:$0x3] %vm92_vm0, %v581_v14   ;;  %788 = vst.msk [vmem:[%s1382_s1 + $0x106] ss:$8 sm:$0xc] %vm92_vm0, %v581_v14  }
  0xc0   :  { %784 = vst.msk [vmem:[%s1382_s1 + $0x66] ss:$8 sm:$0x3] %vm92_vm0, %v570_v13   ;;  %785 = vst.msk [vmem:[%s1382_s1 + $0xe6] ss:$8 sm:$0x3c] %vm92_vm0, %v570_v13  }
  0xc1   :  { %786 = vst.msk [vmem:[%s1382_s1 + $0x46] ss:$8 sm:$0xc0] %vm92_vm0, %v570_v13  }
  0xc2   :  { %v608_v16 = vpop.permute.xlu1 %607  }
  0xc3   :  { %v593_v15 = vpop.permute.xlu0 %592   ;;  %792 = vst.msk [vmem:[%s1382_s1 + $0x27] ss:$8 sm:$0x3] %vm92_vm0, %v608_v16   ;;  %793 = vst.msk [vmem:[%s1382_s1 + $0xa7] ss:$8 sm:$0x3c] %vm92_vm0, %v608_v16  }
  0xc4   :  { %789 = vst.msk [vmem:[%s1382_s1 + $0x7] ss:$8 sm:$0x3] %vm92_vm0, %v593_v15   ;;  %790 = vst.msk [vmem:[%s1382_s1 + $0x87] ss:$8 sm:$0x3c] %vm92_vm0, %v593_v15  }
  0xc5   :  { %791 = vst.msk [vmem:[%s1382_s1 - $0x19] ss:$8 sm:$0xc0] %vm92_vm0, %v593_v15   ;;  %794 = vst.msk [vmem:[%s1382_s1 + $0x7] ss:$8 sm:$0xc0] %vm92_vm0, %v608_v16  }
  0xc6   :  { %v638_v18 = vpop.permute.xlu1 %637  }
  0xc7   :  { %v623_v17 = vpop.permute.xlu0 %622   ;;  %798 = vst.msk [vmem:[%s1382_s1 + $0x67] ss:$8 sm:$0x3] %vm92_vm0, %v638_v18   ;;  %799 = vst.msk [vmem:[%s1382_s1 + $0xe7] ss:$8 sm:$0x3c] %vm92_vm0, %v638_v18  }
  0xc8   :  { %795 = vst.msk [vmem:[%s1382_s1 + $0x47] ss:$8 sm:$0x3] %vm92_vm0, %v623_v17   ;;  %796 = vst.msk [vmem:[%s1382_s1 + $0xc7] ss:$8 sm:$0x3c] %vm92_vm0, %v623_v17  }
  0xc9   :  { %797 = vst.msk [vmem:[%s1382_s1 + $0x27] ss:$8 sm:$0xc0] %vm92_vm0, %v623_v17   ;;  %800 = vst.msk [vmem:[%s1382_s1 + $0x47] ss:$8 sm:$0xc0] %vm92_vm0, %v638_v18  }
  0xcb   :  { %v649_v19 = vpop.permute.xlu0 %648  }
  0xcc   :  { %801 = vst.msk [vmem:[%s1382_s1 + $0x87] ss:$8 sm:$0x3] %vm92_vm0, %v649_v19   ;;  %802 = vst.msk [vmem:[%s1382_s1 + $0x107] ss:$8 sm:$0xc] %vm92_vm0, %v649_v19  }

// kernel: _lambda_.1
= control target key start
LH: loop header
LB: loop body
LE: loop exit
PB: predicated region body
PF: predicated region fallthrough
CT: control target
= control target key end

     0   :  { %s4159_s9 = smov 0   ;;  %s4161_s10 = smov 0   ;;  %s7914_s0 = inlined_call_operand.vmem [shape: f32[1,8,2304], index: 0, kind: input, shape index: {}]   ;;  %s7915_s1 = inlined_call_operand.vmem [shape: f32[2,8,16], index: 1, kind: input, shape index: {}]   ;;  %s7916_s2 = inlined_call_operand.vmem [shape: f32[2,8,2304], index: 2, kind: output, shape index: {}]  }
   0x1   :  { %s4163_s11 = smov 0   ;;  %s4165_s12 = smov 0  }
   0x2   :  { %s4167_s13 = smov 0  }
   0x3 LB: > { %s27_s14 = sadd.s32 1, %s4121_s11  ;;  %s31_s15 = sadd.s32 1, %s4125_s12  ;;  %s4129_s13 = sphi %s4167_s13, %s12_s13   ;;  %s4125_s12 = sphi %s4165_s12, %s9193_s12   ;;  %s4121_s11 = sphi %s4163_s11, %s9192_s11   ;;  %s4117_s10 = sphi %s4161_s10, %s9191_s10   ;;  %s4113_s9 = sphi %s4159_s9, %s9190_s9  }
   0x4   : > { %p29_p0 = scmp.ge.s32.totalorder %s27_s14, 2  ;;  %p3873_p1 = scmp.ge.s32.totalorder %s4129_s13, 1 }
   0x5   : > { %p134_p2 = scmp.lt.s32.totalorder %s4129_s13, 5 }
   0x6   : > { %s9195_s14 = smov (%p29_p0, %s27_s14), 0  ;;  %s9197_s15 = smov (!%p29_p0, %s31_s15), %s4125_s12 }
   0x7   : > { %p135_p3 = pnand %p3873_p1, %p134_p2  ;;  %p33_p4 = scmp.ge.s32.totalorder %s9197_s15, 2 }
   0x9   : > { %s9199_s15 = smov (%p33_p4, %s9197_s15), 0  ;;  %138 = sbr.rel (%p135_p3) target bundleno = 969 (0x3c9), region = 28 }
   0xe   : > { %p160_p5 = scmp.lt.s32.totalorder %s4117_s10, 1  ;;  %v4131_v0 = vmov 3   ;;  %v4132_v1 = vmov 2   ;;  %v4133_v3 = vmov 1   ;;  %v7917_v4 = vmov 0   ;;  %v4211_v6 = vld [vmem:[%s7914_s0] sm:$0xff] }
   0xf   : > { %3973 = vset.pattern.permute.xlu1 %v4131_v0  ;;  %3971 = vset.pattern.permute.xlu0 %v4132_v1  ;;  %8174 = vst [vmem:[#allocation4_spill] sm:$0xff] %v4211_v6  ;;  %v4216_v7 = vld [vmem:[%s7914_s0 + $0x8] sm:$0xff]  ;;  %v4221_v8 = vld [vmem:[%s7914_s0 + $0x10] sm:$0xff]  ;;  %v4226_v9 = vld [vmem:[%s7914_s0 + $0x18] sm:$0xff]  ;;  %v4135_v11 = vmov 4   ;;  %v4136_v12 = vmov 5   ;;  %v397_v44 = vlaneseq }
  0x10   : > { %s9201_s10 = smov (!%p160_p5, %s4117_s10), 1  ;;  %8175 = vst [vmem:[#allocation5_spill] sm:$0xff] %v4216_v7  ;;  %8176 = vst [vmem:[#allocation6_spill] sm:$0xff] %v4221_v8  ;;  %v4231_v10 = vld [vmem:[%s7914_s0 + $0x20] sm:$0xff]  ;;  %v4236_v13 = vld [vmem:[%s7914_s0 + $0x28] sm:$0xff]  ;;  %v251_v45 = vrot.slane %v4211_v6, 6 }
  0x11   : > { %s3874_s16 = sshll.u32 %s9201_s10, 3  ;;  %s3917_s17 = smul.u32 144, %s9201_s10  ;;  %8177 = vst [vmem:[#allocation7_spill] sm:$0xff] %v4226_v9  ;;  %8178 = vst [vmem:[#allocation8_spill] sm:$0xff] %v4231_v10  ;;  %v4241_v14 = vld [vmem:[%s7914_s0 + $0x30] sm:$0xff]  ;;  %v4246_v15 = vld [vmem:[%s7914_s0 + $0x38] sm:$0xff] }
  0x12   : > { %s163_s20 = scalar_lea.vmem %s7915_s1, %s3874_s16  ;;  %8179 = vst [vmem:[#allocation9_spill] sm:$0xff] %v4236_v13  ;;  %8180 = vst [vmem:[#allocation10_spill] sm:$0xff] %v4241_v14  ;;  %v4252_v16 = vld [vmem:[%s7914_s0 + $0x40] sm:$0xff]  ;;  %v4257_v17 = vld [vmem:[%s7914_s0 + $0x48] sm:$0xff]  ;;  %v252_v46 = vrot.slane %v4216_v7, 6  ;;  %v253_v47 = vrot.slane %v4221_v8, 6  ;;  %v287_v56 = vsub.f32 %v4211_v6, %v251_v45 }
  0x13   : > { %s4197_s23 = scalar_lea.vmem %s7916_s2, %s3917_s17  ;;  %v4199_v2 = vld [vmem:[%s163_s20] sm:$0xff]  ;;  %8181 = vst [vmem:[#allocation11_spill] sm:$0xff] %v4246_v15  ;;  %8182 = vst [vmem:[#allocation12_spill] sm:$0xff] %v4252_v16  ;;  %v4262_v18 = vld [vmem:[%s7914_s0 + $0x50] sm:$0xff]  ;;  %v4320_v48 = vshrl.u32 %v397_v44, 7  ;;  %v254_v49 = vrot.slane %v4226_v9, 6 }
  0x14   : > { %8173 = vst [vmem:[#allocation3_spill] sm:$0xff] %v4199_v2  ;;  %713 = vperm.xlu1 %3973, %v4199_v2   ;;  %471 = vperm.xlu0 %3971, %v4199_v2   ;;  %vm396_vm0 = vcmp.gt.f32.partialorder %v4199_v2, 0.0  ;;  %8183 = vst [vmem:[#allocation13_spill] sm:$0xff] %v4257_v17  ;;  %v4269_v21 = vld [vmem:[%s7914_s0 + $0x58] sm:$0xff]  ;;  %v4274_v22 = vld [vmem:[%s7914_s0 + $0x60] sm:$0xff]  ;;  %v255_v50 = vrot.slane %v4231_v10, 6  ;;  %v288_v60 = vsub.f32 %v4216_v7, %v252_v46 }
  0x15   : > { %v1048_v5 = vsel %vm396_vm0, 1, %v7917_v4  ;;  %8184 = vst [vmem:[#allocation14_spill] sm:$0xff] %v4262_v18  ;;  %8185 = vst [vmem:[#allocation15_spill] sm:$0xff] %v4269_v21  ;;  %v4279_v23 = vld [vmem:[%s7914_s0 + $0x68] sm:$0xff]  ;;  %v4287_v27 = vld [vmem:[%s7914_s0 + $0x70] sm:$0xff]  ;;  %v256_v51 = vrot.slane %v4236_v13, 6 }
  0x16   : > { %8186 = vst [vmem:[#allocation16_spill] sm:$0xff] %v4274_v22  ;;  %8187 = vst [vmem:[#allocation17_spill] sm:$0xff] %v4279_v23  ;;  %v4292_v28 = vld [vmem:[%s7914_s0 + $0x78] sm:$0xff]  ;;  %v4297_v29 = vld [vmem:[%s7914_s0 + $0x80] sm:$0xff]  ;;  %v257_v52 = vrot.slane %v4241_v14, 6  ;;  %v258_v53 = vrot.slane %v4246_v15, 6 }
  0x17   : > { %8188 = vst [vmem:[#allocation18_spill] sm:$0xff] %v4287_v27  ;;  %8189 = vst [vmem:[#allocation19_spill] sm:$0xff] %v4292_v28  ;;  %v4305_v33 = vld [vmem:[%s7914_s0 + $0x88] sm:$0xff]  ;;  %v259_v54 = vrot.slane %v4252_v16, 6  ;;  %v260_v55 = vrot.slane %v4257_v17, 6  ;;  %v261_v57 = vrot.slane %v4262_v18, 6 }
  0x18   : > { %3974 = vset.pattern.permute.xlu1 %v4133_v3  ;;  %3972 = vset.pattern.permute.xlu0 %v7917_v4  ;;  %8190 = vst [vmem:[#allocation20_spill] sm:$0xff] %v4297_v29  ;;  %8191 = vst [vmem:[#allocation21_spill] sm:$0xff] %v4305_v33  ;;  %v262_v58 = vrot.slane %v4269_v21, 6  ;;  %v263_v59 = vrot.slane %v4274_v22, 6  ;;  %v264_v61 = vrot.slane %v4279_v23, 6  ;;  %v265_v62 = vrot.slane %v4287_v27, 6 }
  0x19   : > { %807 = vperm.xlu1 %3974, %v4199_v2   ;;  %565 = vperm.xlu0 %3972, %v4199_v2   ;;  %8192 = vst [vmem:[#allocation22_spill] sm:$0xff] %v4320_v48  ;;  %v266_v63 = vrot.slane %v4292_v28, 6  ;;  %v267_v0 = vrot.slane %v4297_v29, 6  ;;  %v268_v1 = vrot.slane %v4305_v33, 6  ;;  %v289_v3 = vsub.f32 %v4221_v8, %v253_v47  ;;  %p1216_p6 = scmp.eq.s32.totalorder %s4113_s9, 0 }
  0x1a   : > { %v293_v44 = vsub.f32 %v4241_v14, %v257_v52  ;;  %v294_v45 = vsub.f32 %v4246_v15, %v258_v53  ;;  %v305_v46 = vadd.f32 1.0, %v287_v56  ;;  %v295_v43 = vsub.f32 %v4252_v16, %v259_v54 }
  0x1b   : > { %v296_v42 = vsub.f32 %v4257_v17, %v260_v55  ;;  %v297_v41 = vsub.f32 %v4262_v18, %v261_v57  ;;  %v306_v40 = vadd.f32 1.0, %v288_v60  ;;  %v298_v47 = vsub.f32 %v4269_v21, %v262_v58 }
  0x1c   : > { %v302_v52 = vsub.f32 %v4292_v28, %v266_v63  ;;  %v303_v53 = vsub.f32 %v4297_v29, %v267_v0  ;;  %v304_v56 = vsub.f32 %v4305_v33, %v268_v1  ;;  %v307_v54 = vadd.f32 1.0, %v289_v3 }
  0x1d   : > { %3975 = vset.pattern.permute.xlu1 %v4135_v11  ;;  %3976 = vset.pattern.permute.xlu0 %v4136_v12  ;;  %v291_v11 = vsub.f32 %v4231_v10, %v255_v50  ;;  %v292_v12 = vsub.f32 %v4236_v13, %v256_v51  ;;  %v300_v50 = vsub.f32 %v4279_v23, %v264_v61  ;;  %v311_v57 = vadd.f32 1.0, %v293_v44 }
  0x1e   : > { %973 = vperm.xlu1 %3975, %v4199_v2   ;;  %1050 = vperm.xlu0 %3976, %v1048_v5   ;;  %v290_v5 = vsub.f32 %v4226_v9, %v254_v49  ;;  %v299_v49 = vsub.f32 %v4274_v22, %v263_v59  ;;  %v301_v51 = vsub.f32 %v4287_v27, %v265_v62  ;;  %v312_v60 = vadd.f32 1.0, %v294_v45 }
  0x1f   : > { %v309_v55 = vadd.f32 1.0, %v291_v11  ;;  %v310_v38 = vadd.f32 1.0, %v292_v12  ;;  %v313_v37 = vadd.f32 1.0, %v295_v43  ;;  %v314_v58 = vadd.f32 1.0, %v296_v42 }
  0x20   : > { %v308_v39 = vadd.f32 1.0, %v290_v5  ;;  %v315_v36 = vadd.f32 1.0, %v297_v41  ;;  %v316_v59 = vadd.f32 1.0, %v298_v47  ;;  %v317_v35 = vadd.f32 1.0, %v299_v49 }
  0x21   : > { %v318_v61 = vadd.f32 1.0, %v300_v50  ;;  %v319_v34 = vadd.f32 1.0, %v301_v51  ;;  %v320_v62 = vadd.f32 1.0, %v302_v52  ;;  %v321_v32 = vadd.f32 1.0, %v303_v53 }
  0x22   : > { %v322_v63 = vadd.f32 1.0, %v304_v56  ;;  %v341_v31 = vrot.slane %v305_v46, 1  ;;  %v342_v0 = vrot.slane %v306_v40, 1  ;;  %v343_v30 = vrot.slane %v307_v54, 1 }
  0x23   : > { %v344_v1 = vrot.slane %v308_v39, 1  ;;  %v345_v3 = vrot.slane %v309_v55, 1  ;;  %v346_v5 = vrot.slane %v310_v38, 1  ;;  %v347_v11 = vrot.slane %v311_v57, 1 }
  0x24   : > { %v348_v12 = vrot.slane %v312_v60, 1  ;;  %v349_v44 = vrot.slane %v313_v37, 1  ;;  %v350_v45 = vrot.slane %v314_v58, 1  ;;  %v351_v43 = vrot.slane %v315_v36, 1 }
  0x25   : > { %v352_v42 = vrot.slane %v316_v59, 1  ;;  %v353_v41 = vrot.slane %v317_v35, 1  ;;  %v354_v47 = vrot.slane %v318_v61, 1  ;;  %v355_v49 = vrot.slane %v319_v34, 1 }
  0x26   : > { %v356_v50 = vrot.slane %v320_v62, 1  ;;  %v357_v51 = vrot.slane %v321_v32, 1  ;;  %v358_v52 = vrot.slane %v322_v63, 1  ;;  %v4355_v53 = vmul.f32 %v341_v31, %v305_v46 }
  0x27   : > { %v4357_v56 = vmul.f32 %v342_v0, %v306_v40  ;;  %v4359_v26 = vmul.f32 %v343_v30, %v307_v54  ;;  %v4361_v25 = vmul.f32 %v344_v1, %v308_v39  ;;  %v4363_v24 = vmul.f32 %v345_v3, %v309_v55 }
  0x28   : > { %8193 = vst [vmem:[#allocation23_spill] sm:$0xff] %v4355_v53  ;;  %v4365_v20 = vmul.f32 %v346_v5, %v310_v38  ;;  %v4368_v19 = vsub.s32 2, %v4320_v48  ;;  %v4370_v4 = vmul.f32 %v347_v11, %v311_v57  ;;  %v4372_v2 = vmul.f32 %v348_v12, %v312_v60 }
  0x29   : > { %8194 = vst [vmem:[#allocation24_spill] sm:$0xff] %v4357_v56  ;;  %8195 = vst [vmem:[#allocation25_spill] sm:$0xff] %v4359_v26  ;;  %v4374_v33 = vmul.f32 %v349_v44, %v313_v37  ;;  %v4376_v31 = vmul.f32 %v350_v45, %v314_v58  ;;  %v4378_v40 = vmul.f32 %v351_v43, %v315_v36  ;;  %v4397_v36 = vsub.s32 0, %v4320_v48 }
  0x2a   : > { %8196 = vst [vmem:[#allocation26_spill] sm:$0xff] %v4361_v25  ;;  %8197 = vst [vmem:[#allocation27_spill] sm:$0xff] %v4363_v24  ;;  %v4380_v30 = vmul.f32 %v352_v42, %v316_v59  ;;  %v4382_v39 = vmul.f32 %v353_v41, %v317_v35  ;;  %v4384_v46 = vmul.f32 %v354_v47, %v318_v61  ;;  %v4400_v60 = vsub.s32 3, %v4320_v48  ;;  %v8213_v42 = vld [vmem:[#allocation21_spill] sm:$0xff] }
  0x2b   : > { %8198 = vst [vmem:[#allocation28_spill] sm:$0xff] %v4365_v20  ;;  %8199 = vst [vmem:[#allocation29_spill] sm:$0xff] %v4368_v19  ;;  %v4386_v38 = vmul.f32 %v355_v49, %v319_v34  ;;  %v4388_v54 = vmul.f32 %v356_v50, %v320_v62  ;;  %v4390_v55 = vmul.f32 %v357_v51, %v321_v32  ;;  %v4403_v35 = vsub.s32 1, %v4320_v48 }
  0x2c   : > { %8200 = vst [vmem:[#allocation30_spill] sm:$0xff] %v4370_v4  ;;  %8201 = vst [vmem:[#allocation31_spill] sm:$0xff] %v4372_v2  ;;  %v4392_v57 = vmul.f32 %v358_v52, %v322_v63  ;;  %vm8084_vm1 = vcmp.gt.f32.partialorder %v4211_v6, 0.0  ;;  %vm8037_vm2 = vcmp.gt.f32.partialorder %v4216_v7, 0.0  ;;  %vm8036_vm3 = vcmp.gt.f32.partialorder %v4221_v8, 0.0 }
  0x2d   : > { %8202 = vst [vmem:[#allocation32_spill] sm:$0xff] %v4374_v33  ;;  %8203 = vst [vmem:[#allocation33_spill] sm:$0xff] %v4376_v31  ;;  %vm8035_vm4 = vcmp.gt.f32.partialorder %v4226_v9, 0.0  ;;  %vm8034_vm5 = vcmp.gt.f32.partialorder %v4231_v10, 0.0  ;;  %vm8033_vm6 = vcmp.gt.f32.partialorder %v4236_v13, 0.0  ;;  %vm8032_vm7 = vcmp.gt.f32.partialorder %v4241_v14, 0.0 }
  0x2e   : > { %8204 = vst [vmem:[#allocation34_spill] sm:$0xff] %v4378_v40  ;;  %8205 = vst [vmem:[#allocation35_spill] sm:$0xff] %v4380_v30  ;;  %vm7924_vm8 = vcmp.gt.f32.partialorder %v4246_v15, 0.0  ;;  %vm7925_vm9 = vcmp.gt.f32.partialorder %v4252_v16, 0.0  ;;  %vm8031_vm10 = vcmp.gt.f32.partialorder %v4257_v17, 0.0  ;;  %vm8030_vm11 = vcmp.gt.f32.partialorder %v4262_v18, 0.0 }
  0x2f   : > { %8206 = vst [vmem:[#allocation36_spill] sm:$0xff] %v4382_v39  ;;  %8207 = vst [vmem:[#allocation37_spill] sm:$0xff] %v4384_v46  ;;  %vm8029_vm12 = vcmp.gt.f32.partialorder %v4269_v21, 0.0  ;;  %vm8028_vm15 = vcmp.gt.f32.partialorder %v4287_v27, 0.0  ;;  %vm8027_vm0 = vcmp.gt.f32.partialorder %v4292_v28, 0.0  ;;  %vm8026_vm13 = vcmp.gt.f32.partialorder %v4297_v29, 0.0 }
  0x30   : > { %8208 = vst [vmem:[#allocation38_spill] sm:$0xff] %v4386_v38  ;;  %8209 = vst [vmem:[#allocation39_spill] sm:$0xff] %v4388_v54  ;;  %vm8025_vm14 = vcmp.gt.f32.partialorder %v8213_v42, 0.0  ;;  %v8214_v45 = vmov 0   ;;  %v4612_v43 = vsub.s32 6, %v4320_v48  ;;  %v8236_v48 = vrot.slane %v4211_v6, %v4368_v19 }
  0x31   : > { %8210 = vst [vmem:[#allocation40_spill] sm:$0xff] %v4390_v55  ;;  %8211 = vst [vmem:[#allocation41_spill] sm:$0xff] %v4392_v57  ;;  %v4604_v49 = vsel %vm8084_vm1, 1, %v8214_v45  ;;  %v4609_v51 = vsel %vm8037_vm2, 1, %v8214_v45  ;;  %v4617_v41 = vsel %vm8036_vm3, 1, %v8214_v45  ;;  %v4622_v47 = vsel %vm8035_vm4, 1, %v8214_v45 }
  0x32   : > { %8212 = vst [vmem:[#allocation42_spill] sm:$0xff] %v4403_v35  ;;  %8215 = vst [vmem:[#allocation43_spill] sm:$0xff] %v4604_v49  ;;  %v4627_v52 = vsel %vm8034_vm5, 1, %v8214_v45  ;;  %v4632_v50 = vsel %vm8033_vm6, 1, %v8214_v45  ;;  %v4637_v44 = vsel %vm8032_vm7, 1, %v8214_v45  ;;  %v4642_v12 = vsel %vm7924_vm8, 1, %v8214_v45 }
  0x33   : > { %8216 = vst [vmem:[#allocation44_spill] sm:$0xff] %v4609_v51  ;;  %8217 = vst [vmem:[#allocation45_spill] sm:$0xff] %v4612_v43  ;;  %v4647_v11 = vsel %vm7925_vm9, 1, %v8214_v45  ;;  %v4652_v5 = vsel %vm8031_vm10, 1, %v8214_v45  ;;  %v4657_v3 = vsel %vm8030_vm11, 1, %v8214_v45  ;;  %v4662_v1 = vsel %vm8029_vm12, 1, %v8214_v45 }
  0x34   : > { %8218 = vst [vmem:[#allocation46_spill] sm:$0xff] %v4617_v41  ;;  %8219 = vst [vmem:[#allocation47_spill] sm:$0xff] %v4622_v47  ;;  %vm8228_vm8 = vcmp.gt.f32.partialorder %v4274_v22, 0.0  ;;  %vm8230_vm9 = vcmp.gt.f32.partialorder %v4279_v23, 0.0  ;;  %v4677_v62 = vsel %vm8028_vm15, 1, %v8214_v45  ;;  %v4682_v61 = vsel %vm8027_vm0, 1, %v8214_v45 }
  0x35   : > { %8220 = vst [vmem:[#allocation48_spill] sm:$0xff] %v4627_v52  ;;  %8221 = vst [vmem:[#allocation49_spill] sm:$0xff] %v4632_v50  ;;  %v4667_v0 = vsel %vm8228_vm8, 1, %v8214_v45  ;;  %v4672_v63 = vsel %vm8230_vm9, 1, %v8214_v45  ;;  %v4687_v59 = vsel %vm8026_vm13, 1, %v8214_v45  ;;  %v4692_v58 = vsel %vm8025_vm14, 1, %v8214_v45 }
  0x36   : > { %8222 = vst [vmem:[#allocation50_spill] sm:$0xff] %v4637_v44  ;;  %8223 = vst [vmem:[#allocation51_spill] sm:$0xff] %v4642_v12  ;;  %v8237_v57 = vrot.slane %v4216_v7, %v4368_v19  ;;  %v8238_v45 = vrot.slane %v4221_v8, %v4368_v19  ;;  %v8240_v37 = vrot.slane %v4231_v10, %v4368_v19 }
  0x37   : > { %8224 = vst [vmem:[#allocation52_spill] sm:$0xff] %v4647_v11  ;;  %8225 = vst [vmem:[#allocation53_spill] sm:$0xff] %v4652_v5  ;;  %v8249_v41 = vrot.slane %v4279_v23, %v4368_v19  ;;  %v8250_v51 = vrot.slane %v4287_v27, %v4368_v19  ;;  %v8251_v49 = vrot.slane %v4292_v28, %v4368_v19 }
  0x38   : > { %8226 = vst [vmem:[#allocation54_spill] sm:$0xff] %v4657_v3  ;;  %8227 = vst [vmem:[#allocation55_spill] sm:$0xff] %v4662_v1  ;;  %v8252_v43 = vrot.slane %v4297_v29, %v4368_v19  ;;  %v8253_v55 = vrot.slane %v8213_v42, %v4368_v19  ;;  %v8259_v46 = vrot.slane %v4216_v7, %v4397_v36 }
  0x39   : > { %8229 = vst [vmem:[#allocation56_spill] sm:$0xff] %v4667_v0  ;;  %8231 = vst [vmem:[#allocation57_spill] sm:$0xff] %v4672_v63  ;;  %v8263_v31 = vrot.slane %v4236_v13, %v4397_v36  ;;  %v8264_v33 = vrot.slane %v4241_v14, %v4397_v36  ;;  %v8265_v2 = vrot.slane %v4246_v15, %v4397_v36 }
  0x3a   : > { %8232 = vst [vmem:[#allocation58_spill] sm:$0xff] %v4677_v62  ;;  %8233 = vst [vmem:[#allocation59_spill] sm:$0xff] %v4682_v61  ;;  %v8266_v4 = vrot.slane %v4252_v16, %v4397_v36  ;;  %v8267_v20 = vrot.slane %v4257_v17, %v4397_v36  ;;  %v8268_v24 = vrot.slane %v4262_v18, %v4397_v36 }
  0x3b   : > { %8234 = vst [vmem:[#allocation60_spill] sm:$0xff] %v4687_v59  ;;  %8235 = vst [vmem:[#allocation61_spill] sm:$0xff] %v4692_v58  ;;  %v8239_v58 = vrot.slane %v4226_v9, %v4368_v19  ;;  %v8269_v25 = vrot.slane %v4269_v21, %v4397_v36  ;;  %v8270_v26 = vrot.slane %v4274_v22, %v4397_v36 }
  0x3c   : > { %v8271_v56 = vrot.slane %v4279_v23, %v4397_v36  ;;  %v8273_v53 = vrot.slane %v4292_v28, %v4397_v36 }
  0x8f   : > { %v472_v32 = vpop.permute.xlu0 %471  ;;  %v4738_v34 = vpop.permute.xlu1 %713 }
  0x90   : > { %v474_v5 = vmin.f32 %v8236_v48, %v472_v32  ;;  %v475_v59 = vmin.f32 %v8237_v57, %v472_v32  ;;  %v476_v0 = vmin.f32 %v8238_v45, %v472_v32  ;;  %v477_v63 = vmin.f32 %v8239_v58, %v472_v32 }
  0x91   : > { %v478_v61 = vmin.f32 %v8240_v37, %v472_v32  ;;  %v8241_v48 = vrot.slane %v4236_v13, %v4368_v19  ;;  %v8242_v57 = vrot.slane %v4241_v14, %v4368_v19  ;;  %v8243_v45 = vrot.slane %v4246_v15, %v4368_v19 }
  0x92   : > { %v8244_v58 = vrot.slane %v4252_v16, %v4368_v19  ;;  %v8245_v37 = vrot.slane %v4257_v17, %v4368_v19 }
  0x93   : > { %v479_v62 = vmin.f32 %v8241_v48, %v472_v32  ;;  %v480_v1 = vmin.f32 %v8242_v57, %v472_v32  ;;  %v481_v3 = vmin.f32 %v8243_v45, %v472_v32  ;;  %v8246_v48 = vrot.slane %v4262_v18, %v4368_v19 }
  0x94   : > { %v566_v11 = vpop.permute.xlu0 %565  ;;  %v482_v12 = vmin.f32 %v8244_v58, %v472_v32  ;;  %v483_v44 = vmin.f32 %v8245_v37, %v472_v32  ;;  %v8247_v57 = vrot.slane %v4269_v21, %v4368_v19  ;;  %v8248_v45 = vrot.slane %v4274_v22, %v4368_v19 }
  0x95   : > { %v484_v50 = vmin.f32 %v8246_v48, %v472_v32  ;;  %v487_v58 = vmin.f32 %v8249_v41, %v472_v32  ;;  %v488_v37 = vmin.f32 %v8250_v51, %v472_v32  ;;  %v489_v48 = vmin.f32 %v8251_v49, %v472_v32 }
  0x96   : > { %v485_v52 = vmin.f32 %v8247_v57, %v472_v32  ;;  %v486_v47 = vmin.f32 %v8248_v45, %v472_v32  ;;  %v490_v57 = vmin.f32 %v8252_v43, %v472_v32  ;;  %v491_v45 = vmin.f32 %v8253_v55, %v472_v32 }
  0x97   : > { %v8254_v41 = vrot.slane %v4211_v6, %v4400_v60  ;;  %v8256_v51 = vrot.slane %v4216_v7, %v4400_v60  ;;  %v8258_v49 = vrot.slane %v4211_v6, %v4397_v36  ;;  %v569_v55 = vmax.f32 %v8259_v46, %v566_v11 }
  0x98   : > { %v8260_v32 = vrot.slane %v4221_v8, %v4397_v36  ;;  %v574_v46 = vmax.f32 %v8264_v33, %v566_v11  ;;  %v579_v33 = vmax.f32 %v8269_v25, %v566_v11  ;;  %v8272_v19 = vrot.slane %v4287_v27, %v4397_v36 }
  0x99   : > { %v4786_v54 = vmin.f32 %v8254_v41, %v4738_v34  ;;  %v4792_v38 = vmin.f32 %v8256_v51, %v4738_v34  ;;  %v568_v43 = vmax.f32 %v8258_v49, %v566_v11  ;;  %v8261_v41 = vrot.slane %v4226_v9, %v4397_v36 }
  0x9a   : > { %v570_v39 = vmax.f32 %v8260_v32, %v566_v11  ;;  %v8262_v51 = vrot.slane %v4231_v10, %v4397_v36  ;;  %v573_v49 = vmax.f32 %v8263_v31, %v566_v11  ;;  %v575_v32 = vmax.f32 %v8265_v2, %v566_v11 }
  0x9b   : > { %8255 = vst [vmem:[#allocation62_spill] sm:$0xff] %v4786_v54  ;;  %8257 = vst [vmem:[#allocation63_spill] sm:$0xff] %v4792_v38  ;;  %v571_v30 = vmax.f32 %v8261_v41, %v566_v11  ;;  %v576_v41 = vmax.f32 %v8266_v4, %v566_v11  ;;  %v578_v31 = vmax.f32 %v8268_v24, %v566_v11 }
  0x9c   : > { %v572_v40 = vmax.f32 %v8262_v51, %v566_v11  ;;  %v577_v51 = vmax.f32 %v8267_v20, %v566_v11  ;;  %v580_v2 = vmax.f32 %v8270_v26, %v566_v11  ;;  %v581_v4 = vmax.f32 %v8271_v56, %v566_v11 }
  0x9d   : > { %v582_v20 = vmax.f32 %v8272_v19, %v566_v11  ;;  %v583_v24 = vmax.f32 %v8273_v53, %v566_v11  ;;  %v8274_v38 = vrot.slane %v4297_v29, %v4397_v36  ;;  %v8275_v54 = vrot.slane %v8213_v42, %v4397_v36 }
  0x9e   : > { %v586_v7 = vsub.f32 %v474_v5, %v568_v43  ;;  %v587_v35 = vsub.f32 %v475_v59, %v569_v55  ;;  %v588_v6 = vsub.f32 %v476_v0, %v570_v39  ;;  %v589_v56 = vsub.f32 %v477_v63, %v571_v30 }
  0x9f   : > { %v584_v25 = vmax.f32 %v8274_v38, %v566_v11  ;;  %v585_v26 = vmax.f32 %v8275_v54, %v566_v11  ;;  %v590_v23 = vsub.f32 %v478_v61, %v572_v40  ;;  %v591_v22 = vsub.f32 %v479_v62, %v573_v49  ;;  %v8312_v11 = vld [vmem:[#allocation4_spill] sm:$0xff] }
  0xa0   : > { %v592_v27 = vsub.f32 %v480_v1, %v574_v46  ;;  %v593_v19 = vsub.f32 %v481_v3, %v575_v32  ;;  %v594_v21 = vsub.f32 %v482_v12, %v576_v41  ;;  %v595_v18 = vsub.f32 %v483_v44, %v577_v51  ;;  %v8308_v44 = vld [vmem:[#allocation19_spill] sm:$0xff] }
  0xa1   : > { %v596_v28 = vsub.f32 %v484_v50, %v578_v31  ;;  %v597_v53 = vsub.f32 %v485_v52, %v579_v33  ;;  %v598_v17 = vsub.f32 %v486_v47, %v580_v2  ;;  %v599_v16 = vsub.f32 %v487_v58, %v581_v4  ;;  %v8290_v31 = vld [vmem:[#allocation10_spill] sm:$0xff]  ;;  %v8292_v4 = vld [vmem:[#allocation11_spill] sm:$0xff]  ;;  %v8304_v58 = vld [vmem:[#allocation17_spill] sm:$0xff] }
  0xa2   : > { %v600_v29 = vsub.f32 %v488_v37, %v582_v20  ;;  %v601_v38 = vsub.f32 %v489_v48, %v583_v24  ;;  %v602_v15 = vsub.f32 %v490_v57, %v584_v25  ;;  %v603_v14 = vsub.f32 %v491_v45, %v585_v26  ;;  %v808_v57 = vpop.permute.xlu1 %807  ;;  %v8294_v25 = vld [vmem:[#allocation12_spill] sm:$0xff]  ;;  %v8306_v50 = vld [vmem:[#allocation18_spill] sm:$0xff] }
  0xa3   : > { %v4848_v36 = vadd.f32 1.0, %v586_v7  ;;  %v4850_v54 = vadd.f32 1.0, %v587_v35  ;;  %v4852_v39 = vadd.f32 1.0, %v588_v6  ;;  %v4854_v40 = vadd.f32 1.0, %v589_v56  ;;  %v8302_v48 = vld [vmem:[#allocation16_spill] sm:$0xff] }
  0xa4   : > { %v4856_v30 = vadd.f32 1.0, %v590_v23  ;;  %v4858_v59 = vadd.f32 1.0, %v591_v22  ;;  %v4860_v61 = vadd.f32 1.0, %v592_v27  ;;  %v4862_v62 = vadd.f32 1.0, %v593_v19  ;;  %v8296_v19 = vld [vmem:[#allocation13_spill] sm:$0xff] }
  0xa5   : > { %v4864_v63 = vadd.f32 1.0, %v594_v21  ;;  %v4866_v0 = vadd.f32 1.0, %v595_v18  ;;  %v4868_v7 = vadd.f32 1.0, %v596_v28  ;;  %v4870_v35 = vadd.f32 1.0, %v597_v53 }
  0xa6   : > { %v4872_v6 = vadd.f32 1.0, %v598_v17  ;;  %v4874_v1 = vadd.f32 1.0, %v599_v16  ;;  %v4876_v23 = vadd.f32 1.0, %v600_v29  ;;  %v4878_v22 = vadd.f32 1.0, %v601_v38  ;;  %v8313_v29 = vld [vmem:[#allocation42_spill] sm:$0xff] }
  0xa7   : > { %8276 = vst [vmem:[#allocation64_spill] sm:$0xff] %v4864_v63  ;;  %8277 = vst [vmem:[#allocation65_spill] sm:$0xff] %v4866_v0  ;;  %v4880_v27 = vadd.f32 1.0, %v602_v15  ;;  %v4882_v3 = vadd.f32 1.0, %v603_v14  ;;  %v8286_v45 = vrot.slane %v4221_v8, %v4400_v60  ;;  %v8287_v55 = vrot.slane %v4226_v9, %v4400_v60  ;;  %v8310_v14 = vld [vmem:[#allocation20_spill] sm:$0xff] }
  0xa8   : > { %8278 = vst [vmem:[#allocation66_spill] sm:$0xff] %v4868_v7  ;;  %8279 = vst [vmem:[#allocation67_spill] sm:$0xff] %v4870_v35  ;;  %v8288_v46 = vrot.slane %v4231_v10, %v4400_v60  ;;  %v8289_v41 = vrot.slane %v4236_v13, %v4400_v60  ;;  %v8291_v33 = vrot.slane %v8290_v31, %v4400_v60 }
  0xa9   : > { %8280 = vst [vmem:[#allocation68_spill] sm:$0xff] %v4872_v6  ;;  %8281 = vst [vmem:[#allocation69_spill] sm:$0xff] %v4874_v1  ;;  %v718_v43 = vmin.f32 %v8286_v45, %v4738_v34  ;;  %v719_v49 = vmin.f32 %v8287_v55, %v4738_v34  ;;  %v8293_v20 = vrot.slane %v8292_v4, %v4400_v60  ;;  %v8298_v45 = vld [vmem:[#allocation14_spill] sm:$0xff] }
  0xaa   : > { %8282 = vst [vmem:[#allocation70_spill] sm:$0xff] %v4876_v23  ;;  %8283 = vst [vmem:[#allocation71_spill] sm:$0xff] %v4878_v22  ;;  %v720_v32 = vmin.f32 %v8288_v46, %v4738_v34  ;;  %v721_v51 = vmin.f32 %v8289_v41, %v4738_v34  ;;  %v722_v2 = vmin.f32 %v8291_v33, %v4738_v34  ;;  %v8300_v41 = vld [vmem:[#allocation15_spill] sm:$0xff] }
  0xab   : > { %8284 = vst [vmem:[#allocation72_spill] sm:$0xff] %v4880_v27  ;;  %8285 = vst [vmem:[#allocation73_spill] sm:$0xff] %v4882_v3  ;;  %v723_v24 = vmin.f32 %v8293_v20, %v4738_v34  ;;  %v8295_v26 = vrot.slane %v8294_v25, %v4400_v60  ;;  %v8297_v53 = vrot.slane %v8296_v19, %v4400_v60 }
  0xac   : > { %v8299_v55 = vrot.slane %v8298_v45, %v4400_v60  ;;  %v8301_v33 = vrot.slane %v8300_v41, %v4400_v60  ;;  %v8303_v37 = vrot.slane %v8302_v48, %v4400_v60  ;;  %v8305_v52 = vrot.slane %v8304_v58, %v4400_v60 }
  0xad   : > { %v724_v56 = vmin.f32 %v8295_v26, %v4738_v34  ;;  %v725_v38 = vmin.f32 %v8297_v53, %v4738_v34  ;;  %v8307_v47 = vrot.slane %v8306_v50, %v4400_v60  ;;  %v8309_v12 = vrot.slane %v8308_v44, %v4400_v60 }
  0xae   : > { %v726_v46 = vmin.f32 %v8299_v55, %v4738_v34  ;;  %v727_v20 = vmin.f32 %v8301_v33, %v4738_v34  ;;  %v728_v26 = vmin.f32 %v8303_v37, %v4738_v34  ;;  %v729_v53 = vmin.f32 %v8305_v52, %v4738_v34 }
  0xaf   : > { %v730_v55 = vmin.f32 %v8307_v47, %v4738_v34  ;;  %v731_v33 = vmin.f32 %v8309_v12, %v4738_v34  ;;  %v8311_v15 = vrot.slane %v8310_v14, %v4400_v60  ;;  %v8314_v16 = vrot.slane %v8312_v11, %v8313_v29  ;;  %v8316_v47 = vld [vmem:[#allocation5_spill] sm:$0xff] }
  0xb0   : > { %v8315_v52 = vrot.slane %v8213_v42, %v4400_v60  ;;  %v8317_v28 = vrot.slane %v8316_v47, %v8313_v29  ;;  %v8318_v12 = vrot.slane %v4221_v8, %v8313_v29  ;;  %v8321_v60 = vrot.slane %v4236_v13, %v8313_v29  ;;  %v8331_v8 = vld [vmem:[#allocation62_spill] sm:$0xff] }
  0xb1   : > { %v732_v37 = vmin.f32 %v8311_v15, %v4738_v34  ;;  %v810_v17 = vmax.f32 %v8314_v16, %v808_v57  ;;  %v8319_v15 = vrot.slane %v4226_v9, %v8313_v29  ;;  %v8320_v16 = vrot.slane %v4231_v10, %v8313_v29 }
  0xb2   : > { %v733_v5 = vmin.f32 %v8315_v52, %v4738_v34  ;;  %v811_v18 = vmax.f32 %v8317_v28, %v808_v57  ;;  %v812_v21 = vmax.f32 %v8318_v12, %v808_v57  ;;  %v815_v34 = vmax.f32 %v8321_v60, %v808_v57 }
  0xb3   : > { %v813_v3 = vmax.f32 %v8319_v15, %v808_v57  ;;  %v814_v11 = vmax.f32 %v8320_v16, %v808_v57  ;;  %v8322_v52 = vrot.slane %v8290_v31, %v8313_v29  ;;  %v8323_v47 = vrot.slane %v8292_v4, %v8313_v29 }
  0xb4   : > { %v8324_v9 = vrot.slane %v8294_v25, %v8313_v29  ;;  %v8325_v10 = vrot.slane %v8296_v19, %v8313_v29  ;;  %v8326_v13 = vrot.slane %v8298_v45, %v8313_v29  ;;  %v8327_v31 = vrot.slane %v8300_v41, %v8313_v29 }
  0xb5   : > { %v816_v28 = vmax.f32 %v8322_v52, %v808_v57  ;;  %v817_v12 = vmax.f32 %v8323_v47, %v808_v57  ;;  %v8328_v4 = vrot.slane %v8302_v48, %v8313_v29  ;;  %v8329_v25 = vrot.slane %v8304_v58, %v8313_v29  ;;  %v8335_v58 = vld [vmem:[#allocation63_spill] sm:$0xff] }
  0xb6   : > { %v818_v15 = vmax.f32 %v8324_v9, %v808_v57  ;;  %v819_v16 = vmax.f32 %v8325_v10, %v808_v57  ;;  %v820_v60 = vmax.f32 %v8326_v13, %v808_v57  ;;  %v821_v52 = vmax.f32 %v8327_v31, %v808_v57 }
  0xb7   : > { %v822_v47 = vmax.f32 %v8328_v4, %v808_v57  ;;  %v823_v9 = vmax.f32 %v8329_v25, %v808_v57  ;;  %v8330_v19 = vrot.slane %v8306_v50, %v8313_v29  ;;  %v828_v27 = vsub.f32 %v8331_v8, %v810_v17 }
  0xb8   : > { %v8332_v13 = vrot.slane %v8308_v44, %v8313_v29  ;;  %v8333_v41 = vrot.slane %v8310_v14, %v8313_v29  ;;  %v8334_v48 = vrot.slane %v8213_v42, %v8313_v29  ;;  %v829_v25 = vsub.f32 %v8335_v58, %v811_v18 }
  0xb9   : > { %v824_v10 = vmax.f32 %v8330_v19, %v808_v57  ;;  %v830_v22 = vsub.f32 %v718_v43, %v812_v21  ;;  %v831_v23 = vsub.f32 %v719_v49, %v813_v3  ;;  %v832_v50 = vsub.f32 %v720_v32, %v814_v11  ;;  %v8337_v11 = vld [vmem:[#allocation23_spill] sm:$0xff] }
  0xba   : > { %v825_v45 = vmax.f32 %v8332_v13, %v808_v57  ;;  %v826_v31 = vmax.f32 %v8333_v41, %v808_v57  ;;  %v827_v4 = vmax.f32 %v8334_v48, %v808_v57  ;;  %v833_v19 = vsub.f32 %v721_v51, %v815_v34 }
  0xbb   : > { %v834_v1 = vsub.f32 %v722_v2, %v816_v28  ;;  %v835_v8 = vsub.f32 %v723_v24, %v817_v12  ;;  %v836_v17 = vsub.f32 %v724_v56, %v818_v15  ;;  %v837_v6 = vsub.f32 %v725_v38, %v819_v16  ;;  %v5022_v56 = vpop.permute.xlu1 %973 }
  0xbc   : > { %v838_v44 = vsub.f32 %v726_v46, %v820_v60  ;;  %v839_v13 = vsub.f32 %v727_v20, %v821_v52  ;;  %v840_v35 = vsub.f32 %v728_v26, %v822_v47  ;;  %v846_v7 = vadd.f32 1.0, %v828_v27  ;;  %v8341_v60 = vld [vmem:[#allocation24_spill] sm:$0xff] }
  0xbd   : > { %v841_v14 = vsub.f32 %v729_v53, %v823_v9  ;;  %v842_v41 = vsub.f32 %v730_v55, %v824_v10  ;;  %v843_v0 = vsub.f32 %v731_v33, %v825_v45  ;;  %v847_v63 = vadd.f32 1.0, %v829_v25 }
  0xbe   : > { %v844_v42 = vsub.f32 %v732_v37, %v826_v31  ;;  %v845_v29 = vsub.f32 %v733_v5, %v827_v4  ;;  %v848_v57 = vadd.f32 1.0, %v830_v22  ;;  %v849_v18 = vadd.f32 1.0, %v831_v23  ;;  %v8344_v31 = vld [vmem:[#allocation25_spill] sm:$0xff] }
  0xbf   : > { %v850_v21 = vadd.f32 1.0, %v832_v50  ;;  %v851_v3 = vadd.f32 1.0, %v833_v19  ;;  %v852_v43 = vadd.f32 1.0, %v834_v1  ;;  %v853_v49 = vadd.f32 1.0, %v835_v8  ;;  %v8347_v19 = vld [vmem:[#allocation26_spill] sm:$0xff] }
  0xc0   : > { %v854_v32 = vadd.f32 1.0, %v836_v17  ;;  %v855_v51 = vadd.f32 1.0, %v837_v6  ;;  %v856_v2 = vadd.f32 1.0, %v838_v44  ;;  %v864_v24 = vmax.f32 %v846_v7, 0.0 }
  0xc1   : > { %v857_v38 = vadd.f32 1.0, %v839_v13  ;;  %v858_v27 = vadd.f32 1.0, %v840_v35  ;;  %v5024_v46 = vadd.f32 1.0, %v841_v14  ;;  %v865_v20 = vmax.f32 %v847_v63, 0.0  ;;  %v8338_v63 = vld [vmem:[#allocation29_spill] sm:$0xff]  ;;  %v8350_v14 = vld [vmem:[#allocation27_spill] sm:$0xff] }
  0xc2   : > { %v5026_v26 = vadd.f32 1.0, %v842_v41  ;;  %v5028_v5 = vadd.f32 1.0, %v843_v0  ;;  %v5030_v23 = vadd.f32 1.0, %v844_v42  ;;  %v866_v22 = vmax.f32 %v848_v57, 0.0 }
  0xc3   : > { %v5032_v1 = vadd.f32 1.0, %v845_v29  ;;  %v867_v53 = vmax.f32 %v849_v18, 0.0  ;;  %v868_v6 = vmax.f32 %v850_v21, 0.0  ;;  %v869_v55 = vmax.f32 %v851_v3, 0.0  ;;  %v8353_v21 = vld [vmem:[#allocation28_spill] sm:$0xff] }
  0xc4   : > { %v870_v7 = vmax.f32 %v852_v43, 0.0  ;;  %v871_v33 = vmax.f32 %v853_v49, 0.0  ;;  %v8336_v37 = vmax.f32 %v4848_v36, 0.0  ;;  %v8339_v34 = vrot.slane %v8337_v11, %v8338_v63 }
  0xc5   : > { %v872_v28 = vmax.f32 %v854_v32, 0.0  ;;  %v873_v12 = vmax.f32 %v855_v51, 0.0  ;;  %v8340_v15 = vmax.f32 %v4850_v54, 0.0  ;;  %v8342_v52 = vrot.slane %v8341_v60, %v8338_v63  ;;  %v8369_v60 = vld [vmem:[#allocation66_spill] sm:$0xff] }
  0xc6   : > { %v5036_v35 = vmul.f32 %v864_v24, %v8336_v37  ;;  %v976_v0 = vadd.f32 %v5022_v56, %v8339_v34  ;;  %v874_v9 = vmax.f32 %v856_v2, 0.0  ;;  %v875_v36 = vmax.f32 %v857_v38, 0.0  ;;  %v8356_v2 = vld [vmem:[#allocation30_spill] sm:$0xff]  ;;  %v8367_v34 = vld [vmem:[#allocation33_spill] sm:$0xff] }
  0xc7   : > { %v5044_v16 = vmul.f32 %v865_v20, %v8340_v15  ;;  %v977_v47 = vadd.f32 %v5022_v56, %v8342_v52  ;;  %v8343_v10 = vmax.f32 %v4852_v39, 0.0  ;;  %v8345_v48 = vrot.slane %v8344_v31, %v8338_v63 }
  0xc8   : > { %v876_v58 = vmax.f32 %v858_v27, 0.0  ;;  %v877_v54 = vmax.f32 %v5024_v46, 0.0  ;;  %v8346_v25 = vmax.f32 %v4854_v40, 0.0  ;;  %v8348_v8 = vrot.slane %v8347_v19, %v8338_v63 }
  0xc9   : > { %v5052_v45 = vmul.f32 %v866_v22, %v8343_v10  ;;  %v978_v4 = vadd.f32 %v5022_v56, %v8345_v48  ;;  %v878_v39 = vmax.f32 %v5026_v26, 0.0  ;;  %v8349_v44 = vmax.f32 %v4856_v30, 0.0  ;;  %v8359_v26 = vld [vmem:[#allocation31_spill] sm:$0xff]  ;;  %v8361_v22 = vld [vmem:[#allocation64_spill] sm:$0xff]  ;;  %v8371_v10 = vld [vmem:[#allocation34_spill] sm:$0xff] }
  0xca   : > { %v5061_v50 = vmul.f32 %v867_v53, %v8346_v25  ;;  %v979_v17 = vadd.f32 %v5022_v56, %v8348_v8  ;;  %v8351_v41 = vrot.slane %v8350_v14, %v8338_v63  ;;  %v994_v40 = vsub.f32 %v976_v0, %v5036_v35  ;;  %v8375_v8 = vld [vmem:[#allocation35_spill] sm:$0xff]  ;;  %v8377_v14 = vld [vmem:[#allocation68_spill] sm:$0xff] }
  0xcb   : > { %v5070_v13 = vmul.f32 %v868_v6, %v8349_v44  ;;  %v879_v29 = vmax.f32 %v5028_v5, 0.0  ;;  %v8352_v57 = vmax.f32 %v4858_v59, 0.0  ;;  %v8354_v3 = vrot.slane %v8353_v21, %v8338_v63 }
  0xcc   : > { %v980_v42 = vadd.f32 %v5022_v56, %v8351_v41  ;;  %v995_v43 = vsub.f32 %v977_v47, %v5044_v16  ;;  %v880_v49 = vmax.f32 %v5030_v23, 0.0  ;;  %v8355_v32 = vmax.f32 %v4860_v61, 0.0 }
  0xcd   : > { %v5080_v18 = vmul.f32 %v869_v55, %v8352_v57  ;;  %v981_v30 = vadd.f32 %v5022_v56, %v8354_v3  ;;  %v8357_v24 = vrot.slane %v8356_v2, %v8338_v63  ;;  %v996_v38 = vsub.f32 %v978_v4, %v5052_v45  ;;  %v8363_v55 = vld [vmem:[#allocation32_spill] sm:$0xff]  ;;  %v8373_v4 = vld [vmem:[#allocation67_spill] sm:$0xff]  ;;  %v8381_v3 = vld [vmem:[#allocation69_spill] sm:$0xff] }
  0xce   : > { %v5090_v51 = vmul.f32 %v870_v7, %v8355_v32  ;;  %v881_v27 = vmax.f32 %v5032_v1, 0.0  ;;  %v8358_v46 = vmax.f32 %v4862_v62, 0.0  ;;  %v8360_v5 = vrot.slane %v8359_v26, %v8338_v63  ;;  %v8383_v32 = vld [vmem:[#allocation37_spill] sm:$0xff]  ;;  %v8387_v26 = vld [vmem:[#allocation38_spill] sm:$0xff] }
  0xcf   : > { %v982_v59 = vadd.f32 %v5022_v56, %v8357_v24  ;;  %v997_v23 = vsub.f32 %v979_v17, %v5061_v50  ;;  %v8362_v53 = vmax.f32 %v8361_v22, 0.0  ;;  %v8364_v7 = vrot.slane %v8363_v55, %v8338_v63  ;;  %v8391_v55 = vld [vmem:[#allocation39_spill] sm:$0xff] }
  0xd0   : > { %v5100_v20 = vmul.f32 %v871_v33, %v8358_v46  ;;  %v983_v61 = vadd.f32 %v5022_v56, %v8360_v5  ;;  %v998_v62 = vsub.f32 %v980_v42, %v5070_v13  ;;  %3977 = vrcp.f32 %v994_v40  ;;  %v8365_v33 = vld [vmem:[#allocation65_spill] sm:$0xff]  ;;  %v8379_v40 = vld [vmem:[#allocation36_spill] sm:$0xff] }
  0xd1   : > { %v5109_v6 = vmul.f32 %v872_v28, %v8362_v53  ;;  %v984_v1 = vadd.f32 %v5022_v56, %v8364_v7  ;;  %v8366_v37 = vmax.f32 %v8365_v33, 0.0  ;;  %v8368_v0 = vrot.slane %v8367_v34, %v8338_v63  ;;  %v8395_v34 = vld [vmem:[#allocation40_spill] sm:$0xff] }
  0xd2   : > { %v999_v28 = vsub.f32 %v981_v30, %v5080_v18  ;;  %3979 = vrcp.f32 %v995_v43  ;;  %v8370_v52 = vmax.f32 %v8369_v60, 0.0  ;;  %v8372_v31 = vrot.slane %v8371_v10, %v8338_v63  ;;  %v8399_v10 = vld [vmem:[#allocation41_spill] sm:$0xff] }
  0xd3   : > { %v5118_v11 = vmul.f32 %v873_v12, %v8366_v37  ;;  %v985_v15 = vadd.f32 %v5022_v56, %v8368_v0  ;;  %v1000_v12 = vsub.f32 %v982_v59, %v5090_v51  ;;  %3981 = vrcp.f32 %v996_v38  ;;  %v8385_v59 = vld [vmem:[#allocation70_spill] sm:$0xff] }
  0xd4   : > { %v5127_v47 = vmul.f32 %v874_v9, %v8370_v52  ;;  %v986_v48 = vadd.f32 %v5022_v56, %v8372_v31  ;;  %v8374_v25 = vmax.f32 %v8373_v4, 0.0  ;;  %v8376_v17 = vrot.slane %v8375_v8, %v8338_v63  ;;  %v8402_v8 = vld [vmem:[#allocation60_spill] sm:$0xff] }
  0xd5   : > { %v1001_v9 = vsub.f32 %v983_v61, %v5100_v20  ;;  %3983 = vrcp.f32 %v997_v23  ;;  %v8378_v41 = vmax.f32 %v8377_v14, 0.0  ;;  %v8380_v57 = vrot.slane %v8379_v40, %v8338_v63  ;;  %v8389_v23 = vld [vmem:[#allocation71_spill] sm:$0xff] }
  0xd6   : > { %v5136_v19 = vmul.f32 %v875_v36, %v8374_v25  ;;  %v987_v44 = vadd.f32 %v5022_v56, %v8376_v17  ;;  %v1002_v36 = vsub.f32 %v984_v1, %v5109_v6  ;;  %3985 = vrcp.f32 %v998_v62  ;;  %v8393_v62 = vld [vmem:[#allocation72_spill] sm:$0xff]  ;;  %v8401_v25 = vld [vmem:[#allocation45_spill] sm:$0xff] }
  0xd7   : > { %v5145_v42 = vmul.f32 %v876_v58, %v8378_v41  ;;  %v988_v21 = vadd.f32 %v5022_v56, %v8380_v57  ;;  %v8382_v30 = vmax.f32 %v8381_v3, 0.0  ;;  %v8384_v2 = vrot.slane %v8383_v32, %v8338_v63  ;;  %v8408_v41 = vld [vmem:[#allocation44_spill] sm:$0xff]  ;;  %v8416_v32 = vld [vmem:[#allocation47_spill] sm:$0xff] }
  0xd8   : > { %v1003_v58 = vsub.f32 %v985_v15, %v5118_v11  ;;  %3987 = vrcp.f32 %v999_v28  ;;  %v8386_v38 = vmax.f32 %v8385_v59, 0.0  ;;  %v8388_v5 = vrot.slane %v8387_v26, %v8338_v63  ;;  %v8397_v28 = vld [vmem:[#allocation73_spill] sm:$0xff]  ;;  %v8464_v57 = vld [vmem:[#allocation59_spill] sm:$0xff] }
  0xd9   : > { %v5154_v43 = vmul.f32 %v877_v54, %v8382_v30  ;;  %v989_v24 = vadd.f32 %v5022_v56, %v8384_v2  ;;  %v1004_v54 = vsub.f32 %v986_v48, %v5127_v47  ;;  %3989 = vrcp.f32 %v1000_v12  ;;  %v5197_v12 = vpop.permute.xlu0 %1050 }
  0xda   : > { %v5163_v46 = vmul.f32 %v878_v39, %v8386_v38  ;;  %v990_v61 = vadd.f32 %v5022_v56, %v8388_v5  ;;  %v8390_v22 = vmax.f32 %v8389_v23, 0.0  ;;  %v8392_v7 = vrot.slane %v8391_v55, %v8338_v63  ;;  %v8420_v38 = vld [vmem:[#allocation48_spill] sm:$0xff]  ;;  %v8424_v23 = vld [vmem:[#allocation49_spill] sm:$0xff] }
  0xdb   : > { %v1005_v39 = vsub.f32 %v987_v44, %v5136_v19  ;;  %3991 = vrcp.f32 %v1001_v9  ;;  %v8394_v33 = vmax.f32 %v8393_v62, 0.0  ;;  %v8396_v0 = vrot.slane %v8395_v34, %v8338_v63  ;;  %v8403_v44 = vld [vmem:[#allocation61_spill] sm:$0xff] }
  0xdc   : > { %v5172_v53 = vmul.f32 %v879_v29, %v8390_v22  ;;  %v991_v1 = vadd.f32 %v5022_v56, %v8392_v7  ;;  %v1006_v29 = vsub.f32 %v988_v21, %v5145_v42  ;;  %3993 = vrcp.f32 %v1002_v36  ;;  %v8412_v36 = vld [vmem:[#allocation46_spill] sm:$0xff] }
  0xdd   : > { %v5181_v37 = vmul.f32 %v880_v49, %v8394_v33  ;;  %v992_v15 = vadd.f32 %v5022_v56, %v8396_v0  ;;  %v8398_v60 = vmax.f32 %v8397_v28, 0.0  ;;  %v8400_v31 = vrot.slane %v8399_v10, %v8338_v63  ;;  %v8404_v63 = vld [vmem:[#allocation43_spill] sm:$0xff]  ;;  %v8428_v7 = vld [vmem:[#allocation50_spill] sm:$0xff] }
  0xde   : > { %v1007_v49 = vsub.f32 %v989_v24, %v5154_v43  ;;  %3995 = vrcp.f32 %v1003_v58  ;;  %v1008_v4 = vsub.f32 %v990_v61, %v5163_v46  ;;  %v1156_v17 = vrot.slane %v8402_v8, %v8401_v25  ;;  %v3978_v58 = vpop.eup %3977 }
  0xdf   : > { %v5190_v52 = vmul.f32 %v881_v27, %v8398_v60  ;;  %v993_v48 = vadd.f32 %v5022_v56, %v8400_v31  ;;  %3997 = vrcp.f32 %v1004_v54  ;;  %v1160_v27 = vrot.slane %v8403_v44, %v8401_v25  ;;  %v3980_v61 = vpop.eup %3979  ;;  %v8440_v31 = vld [vmem:[#allocation53_spill] sm:$0xff] }
  0xe0   : > { %v1009_v9 = vsub.f32 %v991_v1, %v5172_v53  ;;  %3999 = vrcp.f32 %v1005_v39  ;;  %v8405_v56 = vrot.slane %v8404_v63, %v8401_v25  ;;  %v8409_v40 = vrot.slane %v8408_v41, %v8401_v25  ;;  %v3982_v62 = vpop.eup %3981 }
  0xe1   : > { %v1010_v21 = vsub.f32 %v992_v15, %v5181_v37  ;;  %4001 = vrcp.f32 %v1006_v29  ;;  %v8413_v3 = vrot.slane %v8412_v36, %v8401_v25  ;;  %v8417_v2 = vrot.slane %v8416_v32, %v8401_v25  ;;  %v8436_v15 = vld [vmem:[#allocation52_spill] sm:$0xff] }
  0xe2   : > { %vm5208_vm8 = vcmp.eq.s32.totalorder %v8405_v56, 1  ;;  %vm5215_vm9 = vcmp.eq.s32.totalorder %v8409_v40, 1  ;;  %vm1052_vm0 = vcmp.eq.s32.totalorder %v5197_v12, 1  ;;  %v1011_v59 = vsub.f32 %v993_v48, %v5190_v52  ;;  %v3984_v60 = vpop.eup %3983  ;;  %v8452_v32 = vld [vmem:[#allocation56_spill] sm:$0xff] }
  0xe3   : > { %vm5223_vm14 = vcmp.eq.s32.totalorder %v8413_v3, 1  ;;  %vm5230_vm13 = vcmp.eq.s32.totalorder %v8417_v2, 1  ;;  %4003 = vrcp.f32 %v1007_v49  ;;  %v8421_v26 = vrot.slane %v8420_v38, %v8401_v25 }
  0xe4   : > { %v1013_v54 = vmul.f32 %v3978_v58, %v5036_v35  ;;  %4005 = vrcp.f32 %v1008_v4  ;;  %v8425_v22 = vrot.slane %v8424_v23, %v8401_v25  ;;  %v8429_v1 = vrot.slane %v8428_v7, %v8401_v25  ;;  %v8432_v35 = vld [vmem:[#allocation51_spill] sm:$0xff]  ;;  %v3986_v4 = vpop.eup %3985 }
  0xe5   : > { %vm5239_vm15 = vcmp.eq.s32.totalorder %v8421_v26, 1  ;;  %v1015_v33 = vmul.f32 %v3980_v61, %v5044_v16  ;;  %4007 = vrcp.f32 %v1009_v9  ;;  %v8433_v34 = vrot.slane %v8432_v35, %v8401_v25  ;;  %v3988_v41 = vpop.eup %3987  ;;  %v8456_v26 = vld [vmem:[#allocation57_spill] sm:$0xff] }
  0xe6   : > { %vm5247_vm12 = vcmp.eq.s32.totalorder %v8425_v22, 1  ;;  %vm5254_vm11 = vcmp.eq.s32.totalorder %v8429_v1, 1  ;;  %v8437_v29 = vrot.slane %v8436_v15, %v8401_v25  ;;  %v1017_v10 = vmul.f32 %v3982_v62, %v5052_v45  ;;  %v8444_v45 = vld [vmem:[#allocation54_spill] sm:$0xff] }
  0xe7   : > { %vm5262_vm10 = vcmp.eq.s32.totalorder %v8433_v34, 1  ;;  %4009 = vrcp.f32 %v1010_v21  ;;  %v5276_v16 = vsel %vm1052_vm0, 0.0, %v1013_v54  ;;  %v8441_v48 = vrot.slane %v8440_v31, %v8401_v25 }
  0xe8   : > { %vm5269_vm7 = vcmp.eq.s32.totalorder %v8437_v29, 1  ;;  %v1019_v8 = vmul.f32 %v3984_v60, %v5061_v50  ;;  %4011 = vrcp.f32 %v1011_v59  ;;  %v5288_v9 = vsel %vm1052_vm0, 0.0, %v1015_v33  ;;  %v8448_v50 = vld [vmem:[#allocation55_spill] sm:$0xff]  ;;  %v3990_v59 = vpop.eup %3989 }
  0xe9   : > { %vm5281_vm6 = vcmp.eq.s32.totalorder %v8441_v48, 1  ;;  %v8445_v63 = vrot.slane %v8444_v45, %v8401_v25  ;;  %v1021_v40 = vmul.f32 %v3986_v4, %v5070_v13  ;;  %v5300_v21 = vsel %vm1052_vm0, 0.0, %v1017_v10  ;;  %v3992_v22 = vpop.eup %3991 }
  0xea   : > { %v8449_v36 = vrot.slane %v8448_v50, %v8401_v25  ;;  %v8453_v2 = vrot.slane %v8452_v32, %v8401_v25  ;;  %v1023_v13 = vmul.f32 %v3988_v41, %v5080_v18  ;;  %v5319_v38 = vsel %vm1052_vm0, 0.0, %v1019_v8  ;;  %v3994_v33 = vpop.eup %3993 }
  0xeb   : > { %vm5293_vm5 = vcmp.eq.s32.totalorder %v8445_v63, 1  ;;  %v8457_v61 = vrot.slane %v8456_v26, %v8401_v25  ;;  %v1179_v23 = vsel %vm5208_vm8, %v5276_v16, -1.0  ;;  %v1025_v7 = vmul.f32 %v3990_v59, %v5090_v51  ;;  %v8460_v51 = vld [vmem:[#allocation58_spill] sm:$0xff]  ;;  %v3996_v10 = vpop.eup %3995 }
  0xec   : > { %vm5305_vm4 = vcmp.eq.s32.totalorder %v8449_v36, 1  ;;  %vm5312_vm3 = vcmp.eq.s32.totalorder %v8453_v2, 1  ;;  %v5334_v18 = vsel %vm1052_vm0, 0.0, %v1021_v40  ;;  %v1180_v1 = vsel %vm5215_vm9, %v5288_v9, -1.0  ;;  %v3998_v45 = vpop.eup %3997 }
  0xed   : > { %vm5324_vm2 = vcmp.eq.s32.totalorder %v8457_v61, 1  ;;  %v1181_v62 = vsel %vm5223_vm14, %v5300_v21, -1.0  ;;  %v1027_v35 = vmul.f32 %v3992_v22, %v5100_v20  ;;  %v5345_v14 = vsel %vm1052_vm0, 0.0, %v1023_v13  ;;  %v4000_v41 = vpop.eup %3999 }
  0xee   : > { %v8461_v34 = vrot.slane %v8460_v51, %v8401_v25  ;;  %v8465_v29 = vrot.slane %v8464_v57, %v8401_v25  ;;  %v1182_v20 = vsel %vm5230_vm13, %v5319_v38, -1.0  ;;  %v1183_v60 = vsel %vm5239_vm15, %v5334_v18, -1.0  ;;  %v4002_v36 = vpop.eup %4001 }
  0xef   : > { %v1029_v31 = vmul.f32 %v3994_v33, %v5109_v6  ;;  %v5370_v48 = vsel %vm1052_vm0, 0.0, %v1025_v7  ;;  %vm5372_vm14 = vcmp.eq.s32.totalorder %v1156_v17, 1  ;;  %v1184_v24 = vsel %vm5247_vm12, %v5345_v14, -1.0 }
  0xf0   : > { %vm5350_vm8 = vcmp.eq.s32.totalorder %v8461_v34, 1  ;;  %vm5357_vm9 = vcmp.eq.s32.totalorder %v8465_v29, 1  ;;  %v1197_v8 = vmax.f32 %v1179_v23, %v1183_v60  ;;  %v1031_v5 = vmul.f32 %v3996_v10, %v5118_v11  ;;  %v4004_v59 = vpop.eup %4003 }
  0xf1   : > { %v5382_v63 = vsel %vm1052_vm0, 0.0, %v1027_v35  ;;  %v1185_v6 = vsel %vm5254_vm11, %v5370_v48, -1.0  ;;  %v1198_v17 = vmax.f32 %v1180_v1, %v1184_v24  ;;  %v1033_v40 = vmul.f32 %v3998_v45, %v5127_v47  ;;  %v4006_v61 = vpop.eup %4005 }
  0xf2   : > { %v5390_v55 = vsel %vm1052_vm0, 0.0, %v1029_v31  ;;  %v1186_v11 = vsel %vm5262_vm10, %v5382_v63, -1.0  ;;  %v1199_v50 = vmax.f32 %v1181_v62, %v1185_v6  ;;  %v1035_v32 = vmul.f32 %v4000_v41, %v5136_v19  ;;  %v4008_v7 = vpop.eup %4007 }
  0xf3   : > { %v5398_v39 = vsel %vm1052_vm0, 0.0, %v1031_v5  ;;  %v1187_v47 = vsel %vm5269_vm7, %v5390_v55, -1.0  ;;  %v1200_v2 = vmax.f32 %v1182_v20, %v1186_v11  ;;  %v1037_v13 = vmul.f32 %v4002_v36, %v5145_v42 }
  0xf4   : > { %v5406_v0 = vsel %vm1052_vm0, 0.0, %v1033_v40  ;;  %v1188_v19 = vsel %vm5281_vm6, %v5398_v39, -1.0  ;;  %v1201_v26 = vmax.f32 %v1197_v8, %v1187_v47  ;;  %v1039_v23 = vmul.f32 %v4004_v59, %v5154_v43  ;;  %v4010_v33 = vpop.eup %4009 }
  0xf5   : > { %v5414_v28 = vsel %vm1052_vm0, 0.0, %v1035_v32  ;;  %v1189_v42 = vsel %vm5293_vm5, %v5406_v0, -1.0  ;;  %v1202_v22 = vmax.f32 %v1198_v17, %v1188_v19  ;;  %v1041_v1 = vmul.f32 %v4006_v61, %v5163_v46  ;;  %v4012_v34 = vpop.eup %4011 }
  0xf6   : > { %v5422_v49 = vsel %vm1052_vm0, 0.0, %v1037_v13  ;;  %v1190_v43 = vsel %vm5305_vm4, %v5414_v28, -1.0  ;;  %v1203_v62 = vmax.f32 %v1199_v50, %v1189_v42  ;;  %v1043_v35 = vmul.f32 %v4008_v7, %v5172_v53 }
  0xf7   : > { %v5430_v56 = vsel %vm1052_vm0, 0.0, %v1039_v23  ;;  %v1191_v46 = vsel %vm5312_vm3, %v5422_v49, -1.0  ;;  %v1204_v51 = vmax.f32 %v1200_v2, %v1190_v43  ;;  %v1045_v57 = vmul.f32 %v4010_v33, %v5181_v37 }
  0xf8   : > { %8470 = vst [vmem:[#allocation42_spill] sm:$0xff] %v5430_v56  ;;  %v5438_v3 = vsel %vm1052_vm0, 0.0, %v1041_v1  ;;  %v1192_v53 = vsel %vm5324_vm2, %v5430_v56, -1.0  ;;  %v1205_v29 = vmax.f32 %v1201_v26, %v1191_v46  ;;  %v1047_v20 = vmul.f32 %v4012_v34, %v5190_v52 }
  0xf9   : > { %8471 = vst [vmem:[#allocation62_spill] sm:$0xff] %v5438_v3  ;;  %v5446_v60 = vsel %vm1052_vm0, 0.0, %v1043_v35  ;;  %vm1178_vm3 = vcmp.eq.s32.totalorder %v1160_v27, 1  ;;  %v1206_v37 = vmax.f32 %v1202_v22, %v1192_v53  ;;  %v5453_v58 = vsel %vm1052_vm0, 0.0, %v1045_v57 }
  0xfa   : > { %8472 = vst [vmem:[#allocation63_spill] sm:$0xff] %v5446_v60  ;;  %8473 = vst [vmem:[#allocation23_spill] sm:$0xff] %v5453_v58  ;;  %v1193_v54 = vsel %vm5350_vm8, %v5438_v3, -1.0  ;;  %v1194_v52 = vsel %vm5357_vm9, %v5446_v60, -1.0  ;;  %v5463_v10 = vsel %vm1052_vm0, 0.0, %v1047_v20  ;;  %v1195_v25 = vsel %vm5372_vm14, %v5453_v58, -1.0 }
  0xfb   : > { %8474 = vst [vmem:[#allocation29_spill] sm:$0xff] %v5463_v10  ;;  %v1207_v44 = vmax.f32 %v1203_v62, %v1193_v54  ;;  %v1208_v27 = vmax.f32 %v1204_v51, %v1194_v52  ;;  %v1196_v31 = vsel %vm1178_vm3, %v5463_v10, -1.0  ;;  %v1209_v24 = vmax.f32 %v1205_v29, %v1195_v25 }
  0xfc   : > { %v1210_v8 = vmax.f32 %v1206_v37, %v1196_v31  ;;  %vm1222_vm2 = vcmask (%p1216_p6), 7168  }
  0xfd   : > { %v1212_v45 = vmax.f32 %v1207_v44, %v1208_v27 }
  0xfe   : > { %v1211_v15 = vmax.f32 %v1209_v24, %v1210_v8 }
 0x100   : > { %v1213_v5 = vmax.f32 %v1211_v15, %v1212_v45 }
 0x102   : > { %1214 = vmax.xlane.f32.xlu1 %v1213_v5 }
 0x187   : > { %1221 = sbr.rel (!%p1216_p6) target bundleno = 397 (0x18d), region = 32 }
 0x18b   : > { %v1215_v30 = vpop.xlane.xlu1 %1214 }
 0x18c   : > { %1223 = vst.msk [vmem:[#allocation2] sm:$0xff] %vm1222_vm2, %v1215_v30 }
 0x18d PF: > { %1234 = sbr.rel (!%p1216_p6) target bundleno = 407 (0x197), region = 40  ;;  %vm1238_vm4 = vcmask (%p1216_p6), 7168  }
 0x193   : > { %v1235_v12 = vld [vmem:[#allocation2] sm:$0xff] }
 0x194   : > { %vm1236_vm5 = vcmp.eq.f32.partialorder %v1235_v12, 0.0 }
 0x195   : > { %v1237_v4 = vsel %vm1236_vm5, 1e-05, %v1235_v12 }
 0x196   : > { %1239 = vst.msk [vmem:[#allocation2] sm:$0xff] %vm1238_vm4, %v1237_v4 }
 0x197 PF: > { %p3877_p7 = scmp.ne.s32.totalorder %s4113_s9, 1 }
 0x199   : > { %1243 = sbr.rel (%p3877_p7) target bundleno = 969 (0x3c9), region = 44 }
 0x19e   : > { %v4137_v6 = vmov 8   ;;  %v4138_v17 = vmov 6   ;;  %v8475_v41 = vld [vmem:[#allocation3_spill] sm:$0xff]  ;;  %v1552_v40 = vld [vmem:[#allocation2] sm:$0xff]  ;;  %v4139_v11 = vmov 7   ;;  %v4140_v50 = vmov 0  }
 0x19f   : > { %4015 = vset.pattern.permute.xlu1 %v4137_v6  ;;  %4013 = vset.pattern.permute.xlu0 %v4138_v17  ;;  %v4141_v36 = vmov 9   ;;  %v1244_v32 = vrot.slane %v5276_v16, 4  ;;  %v1250_v47 = vrot.slane %v5288_v9, 4  ;;  %v1256_v59 = vrot.slane %v5300_v21, 4 }
 0x1a0   : > { %2161 = vperm.xlu1 %4015, %v8475_v41   ;;  %1901 = vperm.xlu0 %4013, %v8475_v41   ;;  %v1262_v19 = vrot.slane %v5319_v38, 4  ;;  %v1268_v26 = vrot.slane %v5334_v18, 4  ;;  %v1274_v61 = vrot.slane %v5345_v14, 4  ;;  %v1280_v42 = vrot.slane %v5370_v48, 4 }
 0x1a1   : > { %v1245_v2 = vmax.f32 %v5276_v16, %v1244_v32  ;;  %v1251_v13 = vmax.f32 %v5288_v9, %v1250_v47  ;;  %v1257_v22 = vmax.f32 %v5300_v21, %v1256_v59  ;;  %v1286_v43 = vrot.slane %v5382_v63, 4 }
 0x1a2   : > { %v1263_v1 = vmax.f32 %v5319_v38, %v1262_v19  ;;  %v1269_v62 = vmax.f32 %v5334_v18, %v1268_v26  ;;  %v1275_v33 = vmax.f32 %v5345_v14, %v1274_v61  ;;  %v1281_v46 = vmax.f32 %v5370_v48, %v1280_v42 }
 0x1a3   : > { %v1246_v23 = vrot.slane %v1245_v2, 2  ;;  %v1252_v7 = vrot.slane %v1251_v13, 2  ;;  %v1258_v51 = vrot.slane %v1257_v22, 2  ;;  %v1287_v53 = vmax.f32 %v5382_v63, %v1286_v43 }
 0x1a4   : > { %4014 = vset.pattern.permute.xlu0 %v4139_v11  ;;  %4016 = vset.pattern.permute.xlu1 %v4140_v50  ;;  %v1264_v57 = vrot.slane %v1263_v1, 2  ;;  %v1270_v29 = vrot.slane %v1269_v62, 2  ;;  %v1276_v20 = vrot.slane %v1275_v33, 2  ;;  %v1282_v54 = vrot.slane %v1281_v46, 2 }
 0x1a5   : > { %2031 = vperm.xlu0 %4014, %v8475_v41   ;;  %1555 = vperm.xlu1 %4016, %v1552_v40   ;;  %v1247_v35 = vmax.f32 %v1245_v2, %v1246_v23  ;;  %v1253_v34 = vmax.f32 %v1251_v13, %v1252_v7  ;;  %v1259_v52 = vmax.f32 %v1257_v22, %v1258_v51  ;;  %v1292_v25 = vrot.slane %v5390_v55, 4  ;;  %v8480_v51 = vld [vmem:[#allocation22_spill] sm:$0xff] }
 0x1a6   : > { %v1265_v27 = vmax.f32 %v1263_v1, %v1264_v57  ;;  %v1288_v31 = vrot.slane %v1287_v53, 2  ;;  %v1298_v24 = vrot.slane %v5398_v39, 4  ;;  %v1271_v8 = vmax.f32 %v1269_v62, %v1270_v29 }
 0x1a7   : > { %v1248_v37 = vrot.slane %v1247_v35, 1  ;;  %v1254_v44 = vrot.slane %v1253_v34, 1  ;;  %v1277_v15 = vmax.f32 %v1275_v33, %v1276_v20  ;;  %v1304_v45 = vrot.slane %v5406_v0, 4 }
 0x1a8   : > { %v1283_v30 = vmax.f32 %v1281_v46, %v1282_v54  ;;  %v1310_v12 = vrot.slane %v5414_v28, 4  ;;  %v1316_v4 = vrot.slane %v5422_v49, 4  ;;  %v1260_v6 = vrot.slane %v1259_v52, 1 }
 0x1a9   : > { %4017 = vset.pattern.permute.xlu1 %v4141_v36  ;;  %4018 = vset.pattern.permute.xlu0 %v4141_v36  ;;  %v5494_v5 = vmax.f32 %v1247_v35, %v1248_v37  ;;  %v1293_v17 = vmax.f32 %v5390_v55, %v1292_v25  ;;  %v1328_v40 = vrot.slane %v5438_v3, 4  ;;  %v5501_v11 = vmax.f32 %v1253_v34, %v1254_v44 }
 0x1aa   : > { %2291 = vperm.xlu1 %4017, %v8475_v41   ;;  %v1322_v41 = vrot.slane %v5430_v56, 4  ;;  %v1266_v50 = vrot.slane %v1265_v27, 1  ;;  %v5503_v36 = vmax.f32 %v1287_v53, %v1288_v31  ;;  %v1299_v32 = vmax.f32 %v5398_v39, %v1298_v24 }
 0x1ab   : > { %8476 = vst [vmem:[#allocation74_spill] sm:$0xff] %v5494_v5  ;;  %8477 = vst [vmem:[#allocation75_spill] sm:$0xff] %v5501_v11  ;;  %v1272_v47 = vrot.slane %v1271_v8, 1  ;;  %v1278_v2 = vrot.slane %v1277_v15, 1  ;;  %v1305_v59 = vmax.f32 %v5406_v0, %v1304_v45  ;;  %v1334_v13 = vrot.slane %v5446_v60, 4 }
 0x1ac   : > { %v1284_v19 = vrot.slane %v1283_v30, 1  ;;  %v1311_v26 = vmax.f32 %v5414_v28, %v1310_v12  ;;  %v1317_v61 = vmax.f32 %v5422_v49, %v1316_v4  ;;  %vm1354_vm6 = vcmp.eq.f32.partialorder %v5276_v16, %v5494_v5 }
 0x1ad   : > { %v5512_v23 = vmax.f32 %v1259_v52, %v1260_v6  ;;  %v1294_v42 = vrot.slane %v1293_v17, 2  ;;  %v1323_v22 = vmax.f32 %v5430_v56, %v1322_v41  ;;  %v1329_v7 = vmax.f32 %v5438_v3, %v1328_v40 }
 0x1ae   : > { %v5516_v1 = vmax.f32 %v1265_v27, %v1266_v50  ;;  %v1290_v43 = vrot.slane %v5503_v36, 1  ;;  %v1300_v62 = vrot.slane %v1299_v32, 2  ;;  %vm1355_vm7 = vcmp.eq.f32.partialorder %v5288_v9, %v5501_v11 }
 0x1af   : > { %8478 = vst [vmem:[#allocation76_spill] sm:$0xff] %v5512_v23  ;;  %v1306_v33 = vrot.slane %v1305_v59, 2  ;;  %v1335_v35 = vmax.f32 %v5446_v60, %v1334_v13  ;;  %v1340_v46 = vrot.slane %v5453_v58, 4  ;;  %v1372_v34 = vsel %vm1354_vm6, %v8480_v51, 8 }
 0x1b0   : > { %8479 = vst [vmem:[#allocation77_spill] sm:$0xff] %v5516_v1  ;;  %v5524_v57 = vmax.f32 %v1271_v8, %v1272_v47  ;;  %v1312_v53 = vrot.slane %v1311_v26, 2  ;;  %v1318_v29 = vrot.slane %v1317_v61, 2  ;;  %v1346_v20 = vrot.slane %v5463_v10, 4 }
 0x1b1   : > { %v1295_v37 = vmax.f32 %v1293_v17, %v1294_v42  ;;  %v1324_v54 = vrot.slane %v1323_v22, 2  ;;  %v1330_v52 = vrot.slane %v1329_v7, 2  ;;  %v1373_v25 = vsel %vm1355_vm7, %v8480_v51, 8 }
 0x1b2   : > { %8481 = vst [vmem:[#allocation78_spill] sm:$0xff] %v5524_v57  ;;  %v1301_v44 = vmax.f32 %v1299_v32, %v1300_v62  ;;  %vm1356_vm10 = vcmp.eq.f32.partialorder %v5300_v21, %v5512_v23  ;;  %vm1357_vm11 = vcmp.eq.f32.partialorder %v5319_v38, %v5516_v1  ;;  %v1390_v27 = vrot.slane %v1372_v34, 4 }
 0x1b3   : > { %v5532_v31 = vmax.f32 %v1277_v15, %v1278_v2  ;;  %v1307_v24 = vmax.f32 %v1305_v59, %v1306_v33  ;;  %v1336_v8 = vrot.slane %v1335_v35, 2  ;;  %v1341_v45 = vmax.f32 %v5453_v58, %v1340_v46 }
 0x1b4   : > { %v5535_v12 = vmax.f32 %v1283_v30, %v1284_v19  ;;  %v1313_v4 = vmax.f32 %v1311_v26, %v1312_v53  ;;  %v1347_v6 = vmax.f32 %v5463_v10, %v1346_v20  ;;  %v1399_v17 = vrot.slane %v1373_v25, 4 }
 0x1b5   : > { %8482 = vst [vmem:[#allocation79_spill] sm:$0xff] %v5532_v31  ;;  %v1319_v41 = vmax.f32 %v1317_v61, %v1318_v29  ;;  %v1325_v40 = vmax.f32 %v1323_v22, %v1324_v54  ;;  %v1374_v50 = vsel %vm1356_vm10, %v8480_v51, 8  ;;  %v1375_v32 = vsel %vm1357_vm11, %v8480_v51, 8 }
 0x1b6   : > { %8483 = vst [vmem:[#allocation80_spill] sm:$0xff] %v5535_v12  ;;  %v1296_v47 = vrot.slane %v1295_v37, 1  ;;  %v1302_v13 = vrot.slane %v1301_v44, 1  ;;  %v1331_v15 = vmax.f32 %v1329_v7, %v1330_v52  ;;  %vm1391_vm12 = vcmp.lt.s32.totalorder %v1372_v34, %v1390_v27 }
 0x1b7   : > { %v1308_v2 = vrot.slane %v1307_v24, 1  ;;  %v1337_v59 = vmax.f32 %v1335_v35, %v1336_v8  ;;  %v1342_v42 = vrot.slane %v1341_v45, 2  ;;  %vm1358_vm13 = vcmp.eq.f32.partialorder %v5334_v18, %v5524_v57 }
 0x1b8   : > { %v1348_v30 = vrot.slane %v1347_v6, 2  ;;  %vm1400_vm15 = vcmp.lt.s32.totalorder %v1373_v25, %v1399_v17  ;;  %v1408_v19 = vrot.slane %v1374_v50, 4  ;;  %v1417_v26 = vrot.slane %v1375_v32, 4 }
 0x1b9   : > { %v1314_v61 = vrot.slane %v1313_v4, 1  ;;  %v1320_v22 = vrot.slane %v1319_v41, 1  ;;  %v1326_v62 = vrot.slane %v1325_v40, 1  ;;  %v1392_v33 = vsel %vm1391_vm12, %v1372_v34, %v1390_v27 }
 0x1ba   : > { %v5543_v46 = vmax.f32 %v5503_v36, %v1290_v43  ;;  %v5545_v53 = vmax.f32 %v1295_v37, %v1296_v47  ;;  %v5547_v7 = vmax.f32 %v1301_v44, %v1302_v13  ;;  %v1332_v35 = vrot.slane %v1331_v15, 1 }
 0x1bb   : > { %v1338_v29 = vrot.slane %v1337_v59, 1  ;;  %v1343_v20 = vmax.f32 %v1341_v45, %v1342_v42  ;;  %v1376_v54 = vsel %vm1358_vm13, %v8480_v51, 8  ;;  %v1401_v52 = vsel %vm1400_vm15, %v1373_v25, %v1399_v17 }
 0x1bc   : > { %8484 = vst [vmem:[#allocation81_spill] sm:$0xff] %v5543_v46  ;;  %8485 = vst [vmem:[#allocation82_spill] sm:$0xff] %v5545_v53  ;;  %v1349_v8 = vmax.f32 %v1347_v6, %v1348_v30  ;;  %v1393_v57 = vrot.slane %v1392_v33, 2  ;;  %vm1409_vm0 = vcmp.lt.s32.totalorder %v1374_v50, %v1408_v19  ;;  %vm1418_vm8 = vcmp.lt.s32.totalorder %v1375_v32, %v1417_v26 }
 0x1bd   : > { %8486 = vst [vmem:[#allocation83_spill] sm:$0xff] %v5547_v7  ;;  %v5550_v1 = vmax.f32 %v1307_v24, %v1308_v2  ;;  %v5552_v34 = vmax.f32 %v1313_v4, %v1314_v61  ;;  %v5554_v36 = vmax.f32 %v1319_v41, %v1320_v22  ;;  %v5556_v43 = vmax.f32 %v1325_v40, %v1326_v62 }
 0x1be   : > { %v5558_v37 = vmax.f32 %v1331_v15, %v1332_v35  ;;  %vm1359_vm9 = vcmp.eq.f32.partialorder %v5345_v14, %v5532_v31  ;;  %v1402_v44 = vrot.slane %v1401_v52, 2  ;;  %v1426_v27 = vrot.slane %v1376_v54, 4 }
 0x1bf   : > { %8487 = vst [vmem:[#allocation84_spill] sm:$0xff] %v5550_v1  ;;  %8488 = vst [vmem:[#allocation85_spill] sm:$0xff] %v5552_v34  ;;  %v5562_v25 = vmax.f32 %v1337_v59, %v1338_v29  ;;  %v1344_v45 = vrot.slane %v1343_v20, 1  ;;  %v1410_v6 = vsel %vm1409_vm0, %v1374_v50, %v1408_v19  ;;  %v1419_v17 = vsel %vm1418_vm8, %v1375_v32, %v1417_v26 }
 0x1c0   : > { %8489 = vst [vmem:[#allocation86_spill] sm:$0xff] %v5554_v36  ;;  %8490 = vst [vmem:[#allocation87_spill] sm:$0xff] %v5556_v43  ;;  %v1350_v24 = vrot.slane %v1349_v8, 1  ;;  %vm1360_vm14 = vcmp.eq.f32.partialorder %v5370_v48, %v5535_v12  ;;  %vm1361_vm3 = vcmp.eq.f32.partialorder %v5382_v63, %v5543_v46  ;;  %vm1394_vm2 = vcmp.lt.s32.totalorder %v1392_v33, %v1393_v57 }
 0x1c1   : > { %8491 = vst [vmem:[#allocation88_spill] sm:$0xff] %v5558_v37  ;;  %8492 = vst [vmem:[#allocation89_spill] sm:$0xff] %v5562_v25  ;;  %vm1362_vm4 = vcmp.eq.f32.partialorder %v5390_v55, %v5545_v53  ;;  %vm1363_vm5 = vcmp.eq.f32.partialorder %v5398_v39, %v5547_v7  ;;  %vm1364_vm6 = vcmp.eq.f32.partialorder %v5406_v0, %v5550_v1  ;;  %v1377_v4 = vsel %vm1359_vm9, %v8480_v51, 8 }
 0x1c2   : > { %vm1403_vm7 = vcmp.lt.s32.totalorder %v1401_v52, %v1402_v44  ;;  %v1411_v41 = vrot.slane %v1410_v6, 2  ;;  %v1420_v40 = vrot.slane %v1419_v17, 2  ;;  %vm1427_vm10 = vcmp.lt.s32.totalorder %v1376_v54, %v1426_v27 }
 0x1c3   : > { %v5575_v50 = vmax.f32 %v1343_v20, %v1344_v45  ;;  %vm1365_vm11 = vcmp.eq.f32.partialorder %v5414_v28, %v5552_v34  ;;  %vm1366_vm12 = vcmp.eq.f32.partialorder %v5422_v49, %v5554_v36  ;;  %v1395_v32 = vsel %vm1394_vm2, %v1392_v33, %v1393_v57 }
 0x1c4   : > { %v5581_v47 = vmax.f32 %v1349_v8, %v1350_v24  ;;  %vm1367_vm13 = vcmp.eq.f32.partialorder %v5430_v56, %v5556_v43  ;;  %vm1368_vm15 = vcmp.eq.f32.partialorder %v5438_v3, %v5558_v37  ;;  %v1435_v13 = vrot.slane %v1377_v4, 4 }
 0x1c5   : > { %8493 = vst [vmem:[#allocation90_spill] sm:$0xff] %v5575_v50  ;;  %vm1369_vm0 = vcmp.eq.f32.partialorder %v5446_v60, %v5562_v25  ;;  %v1378_v15 = vsel %vm1360_vm14, %v8480_v51, 8  ;;  %v1404_v2 = vsel %vm1403_vm7, %v1401_v52, %v1402_v44  ;;  %v1428_v59 = vsel %vm1427_vm10, %v1376_v54, %v1426_v27 }
 0x1c6   : > { %8494 = vst [vmem:[#allocation91_spill] sm:$0xff] %v5581_v47  ;;  %v1379_v57 = vsel %vm1361_vm3, %v8480_v51, 8  ;;  %v1396_v42 = vrot.slane %v1395_v32, 1  ;;  %vm1412_vm8 = vcmp.lt.s32.totalorder %v1410_v6, %v1411_v41  ;;  %vm1421_vm9 = vcmp.lt.s32.totalorder %v1419_v17, %v1420_v40 }
 0x1c7   : > { %vm1370_vm2 = vcmp.eq.f32.partialorder %v5453_v58, %v5575_v50  ;;  %v1380_v30 = vsel %vm1362_vm4, %v8480_v51, 8  ;;  %v1381_v19 = vsel %vm1363_vm5, %v8480_v51, 8  ;;  %v1382_v26 = vsel %vm1364_vm6, %v8480_v51, 8 }
 0x1c8   : > { %vm1371_vm14 = vcmp.eq.f32.partialorder %v5463_v10, %v5581_v47  ;;  %v1405_v61 = vrot.slane %v1404_v2, 1  ;;  %v1429_v22 = vrot.slane %v1428_v59, 2  ;;  %vm1436_vm3 = vcmp.lt.s32.totalorder %v1377_v4, %v1435_v13 }
 0x1c9   : > { %v1383_v62 = vsel %vm1365_vm11, %v8480_v51, 8  ;;  %v5617_v33 = vsel %vm1412_vm8, %v1410_v6, %v1411_v41  ;;  %v5619_v35 = vsel %vm1421_vm9, %v1419_v17, %v1420_v40  ;;  %v1444_v29 = vrot.slane %v1378_v15, 4 }
 0x1ca   : > { %v1384_v20 = vsel %vm1366_vm12, %v8480_v51, 8  ;;  %v1385_v54 = vsel %vm1367_vm13, %v8480_v51, 8  ;;  %v1386_v52 = vsel %vm1368_vm15, %v8480_v51, 8  ;;  %vm1397_vm4 = vcmp.lt.s32.totalorder %v1395_v32, %v1396_v42 }
 0x1cb   : > { %v1387_v8 = vsel %vm1369_vm0, %v8480_v51, 8  ;;  %v1388_v44 = vsel %vm1370_vm2, %v8480_v51, 8  ;;  %v1389_v27 = vsel %vm1371_vm14, %v8480_v51, 8  ;;  %v1437_v45 = vsel %vm1436_vm3, %v1377_v4, %v1435_v13 }
 0x1cc   : > { %vm5642_vm5 = vcmp.lt.s32.totalorder %v1404_v2, %v1405_v61  ;;  %v1414_v17 = vrot.slane %v5617_v33, 1  ;;  %vm1430_vm6 = vcmp.lt.s32.totalorder %v1428_v59, %v1429_v22  ;;  %v5648_v41 = vsel %vm1397_vm4, %v1395_v32, %v1396_v42 }
 0x1cd   : > { %vm1445_vm7 = vcmp.lt.s32.totalorder %v1378_v15, %v1444_v29  ;;  %v1453_v40 = vrot.slane %v1379_v57, 4  ;;  %v1462_v47 = vrot.slane %v1380_v30, 4  ;;  %v1438_v25 = vrot.slane %v1437_v45, 2 }
 0x1ce   : > { %v1471_v50 = vrot.slane %v1381_v19, 4  ;;  %v1480_v37 = vrot.slane %v1382_v26, 4  ;;  %v1489_v43 = vrot.slane %v1383_v62, 4  ;;  %v5650_v36 = vsel %vm1430_vm6, %v1428_v59, %v1429_v22 }
 0x1cf   : > { %v1498_v4 = vrot.slane %v1384_v20, 4  ;;  %v1507_v13 = vrot.slane %v1385_v54, 4  ;;  %v1516_v34 = vrot.slane %v1386_v52, 4  ;;  %v5654_v1 = vsel %vm5642_vm5, %v1404_v2, %v1405_v61 }
 0x1d0   : > { %vm5657_vm10 = vcmp.lt.s32.totalorder %v5617_v33, %v1414_v17  ;;  %v1525_v42 = vrot.slane %v1387_v8, 4  ;;  %v1534_v24 = vrot.slane %v1388_v44, 4  ;;  %v1446_v7 = vsel %vm1445_vm7, %v1378_v15, %v1444_v29 }
 0x1d1   : > { %vm1454_vm11 = vcmp.lt.s32.totalorder %v1379_v57, %v1453_v40  ;;  %vm1463_vm12 = vcmp.lt.s32.totalorder %v1380_v30, %v1462_v47  ;;  %v1543_v53 = vrot.slane %v1389_v27, 4  ;;  %vm1472_vm13 = vcmp.lt.s32.totalorder %v1381_v19, %v1471_v50 }
 0x1d2   : > { %vm1481_vm15 = vcmp.lt.s32.totalorder %v1382_v26, %v1480_v37  ;;  %vm1490_vm0 = vcmp.lt.s32.totalorder %v1383_v62, %v1489_v43  ;;  %vm5662_vm8 = vcmp.lt.s32.totalorder %v1437_v45, %v1438_v25  ;;  %vm1499_vm9 = vcmp.lt.s32.totalorder %v1384_v20, %v1498_v4 }
 0x1d3   : > { %vm1508_vm2 = vcmp.lt.s32.totalorder %v1385_v54, %v1507_v13  ;;  %vm1517_vm14 = vcmp.lt.s32.totalorder %v1386_v52, %v1516_v34  ;;  %v1455_v2 = vsel %vm1454_vm11, %v1379_v57, %v1453_v40  ;;  %v1464_v61 = vsel %vm1463_vm12, %v1380_v30, %v1462_v47 }
 0x1d4   : > { %vm1526_vm3 = vcmp.lt.s32.totalorder %v1387_v8, %v1525_v42  ;;  %vm1535_vm4 = vcmp.lt.s32.totalorder %v1388_v44, %v1534_v24  ;;  %v1473_v15 = vsel %vm1472_vm13, %v1381_v19, %v1471_v50  ;;  %v1482_v29 = vsel %vm1481_vm15, %v1382_v26, %v1480_v37 }
 0x1d5   : > { %v1491_v6 = vsel %vm1490_vm0, %v1383_v62, %v1489_v43  ;;  %vm1544_vm5 = vcmp.lt.s32.totalorder %v1389_v27, %v1543_v53  ;;  %v1447_v46 = vrot.slane %v1446_v7, 2  ;;  %v1500_v59 = vsel %vm1499_vm9, %v1384_v20, %v1498_v4 }
 0x1d6   : > { %v1509_v12 = vsel %vm1508_vm2, %v1385_v54, %v1507_v13  ;;  %v1518_v31 = vsel %vm1517_vm14, %v1386_v52, %v1516_v34  ;;  %v1456_v23 = vrot.slane %v1455_v2, 2  ;;  %v1465_v11 = vrot.slane %v1464_v61, 2 }
 0x1d7   : > { %v1527_v5 = vsel %vm1526_vm3, %v1387_v8, %v1525_v42  ;;  %v1536_v10 = vsel %vm1535_vm4, %v1388_v44, %v1534_v24  ;;  %v1474_v58 = vrot.slane %v1473_v15, 2  ;;  %v1483_v60 = vrot.slane %v1482_v29, 2 }
 0x1d8   : > { %v1492_v3 = vrot.slane %v1491_v6, 2  ;;  %v1545_v56 = vsel %vm1544_vm5, %v1389_v27, %v1543_v53  ;;  %v8501_v47 = vrot.slane %v5619_v35, 1  ;;  %v1440_v43 = vsel %vm5662_vm8, %v1437_v45, %v1438_v25 }
 0x1d9   : > { %v1501_v37 = vrot.slane %v1500_v59, 2  ;;  %v1510_v34 = vrot.slane %v1509_v12, 2  ;;  %v1519_v57 = vrot.slane %v1518_v31, 2  ;;  %v5678_v30 = vsel %vm5657_vm10, %v5617_v33, %v1414_v17 }
 0x1da   : > { %vm5669_vm6 = vcmp.lt.s32.totalorder %v5619_v35, %v8501_v47  ;;  %vm1448_vm7 = vcmp.lt.s32.totalorder %v1446_v7, %v1447_v46  ;;  %v1528_v53 = vrot.slane %v1527_v5, 2  ;;  %v1537_v19 = vrot.slane %v1536_v10, 2 }
 0x1db   : > { %v8504_v26 = vrot.slane %v5650_v36, 1  ;;  %vm1457_vm12 = vcmp.lt.s32.totalorder %v1455_v2, %v1456_v23  ;;  %vm1466_vm13 = vcmp.lt.s32.totalorder %v1464_v61, %v1465_v11  ;;  %v1546_v25 = vrot.slane %v1545_v56, 2 }
 0x1dc   : > { %v1441_v20 = vrot.slane %v1440_v43, 1  ;;  %vm1475_vm15 = vcmp.lt.s32.totalorder %v1473_v15, %v1474_v58  ;;  %vm1484_vm0 = vcmp.lt.s32.totalorder %v1482_v29, %v1483_v60  ;;  %vm1493_vm8 = vcmp.lt.s32.totalorder %v1491_v6, %v1492_v3 }
 0x1dd   : > { %vm5683_vm11 = vcmp.lt.s32.totalorder %v5650_v36, %v8504_v26  ;;  %v1449_v54 = vsel %vm1448_vm7, %v1446_v7, %v1447_v46  ;;  %vm1502_vm10 = vcmp.lt.s32.totalorder %v1500_v59, %v1501_v37  ;;  %vm1511_vm9 = vcmp.lt.s32.totalorder %v1509_v12, %v1510_v34 }
 0x1de   : > { %vm1520_vm2 = vcmp.lt.s32.totalorder %v1518_v31, %v1519_v57  ;;  %v1458_v33 = vsel %vm1457_vm12, %v1455_v2, %v1456_v23  ;;  %v1467_v52 = vsel %vm1466_vm13, %v1464_v61, %v1465_v11  ;;  %vm1529_vm14 = vcmp.lt.s32.totalorder %v1527_v5, %v1528_v53 }
 0x1df   : > { %vm1538_vm3 = vcmp.lt.s32.totalorder %v1536_v10, %v1537_v19  ;;  %v1476_v8 = vsel %vm1475_vm15, %v1473_v15, %v1474_v58  ;;  %v1485_v44 = vsel %vm1484_vm0, %v1482_v29, %v1483_v60  ;;  %v1494_v27 = vsel %vm1493_vm8, %v1491_v6, %v1492_v3 }
 0x1e0   : > { %vm1547_vm4 = vcmp.lt.s32.totalorder %v1545_v56, %v1546_v25  ;;  %v1450_v45 = vrot.slane %v1449_v54, 1  ;;  %v1503_v17 = vsel %vm1502_vm10, %v1500_v59, %v1501_v37  ;;  %v1512_v24 = vsel %vm1511_vm9, %v1509_v12, %v1510_v34 }
 0x1e1   : > { %v1521_v40 = vsel %vm1520_vm2, %v1518_v31, %v1519_v57  ;;  %v1459_v4 = vrot.slane %v1458_v33, 1  ;;  %v1468_v13 = vrot.slane %v1467_v52, 1  ;;  %v1530_v32 = vsel %vm1529_vm14, %v1527_v5, %v1528_v53 }
 0x1e2   : > { %v1539_v42 = vsel %vm1538_vm3, %v1536_v10, %v1537_v19  ;;  %v1477_v46 = vrot.slane %v1476_v8, 1  ;;  %v1486_v7 = vrot.slane %v1485_v44, 1  ;;  %v1495_v22 = vrot.slane %v1494_v27, 1 }
 0x1e3   : > { %v1548_v47 = vsel %vm1547_vm4, %v1545_v56, %v1546_v25  ;;  %vm1442_vm5 = vcmp.lt.s32.totalorder %v1440_v43, %v1441_v20  ;;  %v1504_v11 = vrot.slane %v1503_v17, 1  ;;  %v1513_v23 = vrot.slane %v1512_v24, 1 }
 0x1e4   : > { %v1522_v2 = vrot.slane %v1521_v40, 1  ;;  %v8507_v60 = vrot.slane %v5619_v35, 1  ;;  %vm1451_vm7 = vcmp.lt.s32.totalorder %v1449_v54, %v1450_v45  ;;  %v1531_v58 = vrot.slane %v1530_v32, 1 }
 0x1e5   : > { %v1540_v31 = vrot.slane %v1539_v42, 1  ;;  %v8508_v5 = vmov %v8504_v26  ;;  %vm1460_vm12 = vcmp.lt.s32.totalorder %v1458_v33, %v1459_v4  ;;  %vm1469_vm13 = vcmp.lt.s32.totalorder %v1467_v52, %v1468_v13 }
 0x1e6   : > { %v1425_v3 = vsel %vm5669_vm6, %v5619_v35, %v8507_v60  ;;  %v1434_v10 = vsel %vm5683_vm11, %v5650_v36, %v8508_v5  ;;  %v1549_v56 = vrot.slane %v1548_v47, 1  ;;  %v1443_v12 = vsel %vm1442_vm5, %v1440_v43, %v1441_v20 }
 0x1e7   : > { %vm1478_vm15 = vcmp.lt.s32.totalorder %v1476_v8, %v1477_v46  ;;  %vm1487_vm0 = vcmp.lt.s32.totalorder %v1485_v44, %v1486_v7  ;;  %vm1496_vm8 = vcmp.lt.s32.totalorder %v1494_v27, %v1495_v22  ;;  %v1452_v59 = vsel %vm1451_vm7, %v1449_v54, %v1450_v45 }
 0x1e8   : > { %vm1505_vm10 = vcmp.lt.s32.totalorder %v1503_v17, %v1504_v11  ;;  %vm1514_vm9 = vcmp.lt.s32.totalorder %v1512_v24, %v1513_v23  ;;  %vm1523_vm6 = vcmp.lt.s32.totalorder %v1521_v40, %v1522_v2  ;;  %v1461_v35 = vsel %vm1460_vm12, %v1458_v33, %v1459_v4 }
 0x1e9   : > { %v1470_v61 = vsel %vm1469_vm13, %v1467_v52, %v1468_v13  ;;  %vm1532_vm2 = vcmp.lt.s32.totalorder %v1530_v32, %v1531_v58  ;;  %vm1541_vm14 = vcmp.lt.s32.totalorder %v1539_v42, %v1540_v31  ;;  %v1479_v15 = vsel %vm1478_vm15, %v1476_v8, %v1477_v46 }
 0x1ea   : > { %v1488_v29 = vsel %vm1487_vm0, %v1485_v44, %v1486_v7  ;;  %v1497_v6 = vsel %vm1496_vm8, %v1494_v27, %v1495_v22  ;;  %vm1550_vm3 = vcmp.lt.s32.totalorder %v1548_v47, %v1549_v56  ;;  %v1506_v36 = vsel %vm1505_vm10, %v1503_v17, %v1504_v11 }
 0x1eb   : > { %v1515_v50 = vsel %vm1514_vm9, %v1512_v24, %v1513_v23  ;;  %v1524_v37 = vsel %vm1523_vm6, %v1521_v40, %v1522_v2  ;;  %v1533_v34 = vsel %vm1532_vm2, %v1530_v32, %v1531_v58  ;;  %v1542_v43 = vsel %vm1541_vm14, %v1539_v42, %v1540_v31 }
 0x1ec   : > { %vm1846_vm11 = vcmp.eq.s32.totalorder %v8480_v51, %v5648_v41  ;;  %v1551_v57 = vsel %vm1550_vm3, %v1548_v47, %v1549_v56  ;;  %vm1847_vm4 = vcmp.eq.s32.totalorder %v8480_v51, %v5654_v1  ;;  %vm1848_vm5 = vcmp.eq.s32.totalorder %v8480_v51, %v5678_v30  ;;  %v8538_v56 = vld [vmem:[#allocation42_spill] sm:$0xff] }
 0x1ed   : > { %vm1849_vm7 = vcmp.eq.s32.totalorder %v8480_v51, %v1425_v3  ;;  %vm1850_vm12 = vcmp.eq.s32.totalorder %v8480_v51, %v1434_v10  ;;  %vm1851_vm13 = vcmp.eq.s32.totalorder %v8480_v51, %v1443_v12  ;;  %vm1852_vm15 = vcmp.eq.s32.totalorder %v8480_v51, %v1452_v59  ;;  %v8539_v12 = vld [vmem:[#allocation62_spill] sm:$0xff]  ;;  %v8540_v59 = vld [vmem:[#allocation63_spill] sm:$0xff] }
 0x1ee   : > { %vm1855_vm10 = vcmp.eq.s32.totalorder %v8480_v51, %v1479_v15  ;;  %vm1856_vm9 = vcmp.eq.s32.totalorder %v8480_v51, %v1488_v29  ;;  %vm1857_vm6 = vcmp.eq.s32.totalorder %v8480_v51, %v1497_v6  ;;  %vm1858_vm2 = vcmp.eq.s32.totalorder %v8480_v51, %v1506_v36 }
 0x1ef   : > { %vm1859_vm14 = vcmp.eq.s32.totalorder %v8480_v51, %v1515_v50  ;;  %vm1860_vm3 = vcmp.eq.s32.totalorder %v8480_v51, %v1524_v37  ;;  %vm1861_vm1 = vcmp.eq.s32.totalorder %v8480_v51, %v1533_v34  ;;  %vm1862_vm0 = vcmp.eq.s32.totalorder %v8480_v51, %v1542_v43 }
 0x1f0   : > { %vm1863_vm8 = vcmp.eq.s32.totalorder %v8480_v51, %v1551_v57  ;;  %v8085_v19 = vmov 0.0  }
 0x1f1   : > { %v5724_v26 = vsel %vm1846_vm11, 1.0, %v8085_v19  ;;  %v5730_v62 = vsel %vm1847_vm4, 1.0, %v8085_v19  ;;  %v5736_v25 = vsel %vm1848_vm5, 1.0, %v8085_v19  ;;  %v5741_v20 = vsel %vm1849_vm7, 1.0, %v8085_v19 }
 0x1f2   : > { %8510 = vst [vmem:[#allocation93_spill] sm:$0xff] %v5724_v26  ;;  %8511 = vst [vmem:[#allocation94_spill] sm:$0xff] %v5730_v62  ;;  %v5746_v41 = vsel %vm1850_vm12, 1.0, %v8085_v19  ;;  %v5751_v1 = vsel %vm1851_vm13, 1.0, %v8085_v19  ;;  %v5758_v30 = vsel %vm1852_vm15, 1.0, %v8085_v19  ;;  %vm8517_vm11 = vcmp.eq.s32.totalorder %v8480_v51, %v1461_v35  ;;  %v8541_v35 = vld [vmem:[#allocation23_spill] sm:$0xff] }
 0x1f3   : > { %8512 = vst [vmem:[#allocation95_spill] sm:$0xff] %v5736_v25  ;;  %8513 = vst [vmem:[#allocation96_spill] sm:$0xff] %v5741_v20  ;;  %v5763_v33 = vsel %vm8517_vm11, 1.0, %v8085_v19  ;;  %vm8519_vm4 = vcmp.eq.s32.totalorder %v8480_v51, %v1470_v61  ;;  %v5773_v8 = vsel %vm1855_vm10, 1.0, %v8085_v19  ;;  %v5778_v44 = vsel %vm1856_vm9, 1.0, %v8085_v19 }
 0x1f4   : > { %8514 = vst [vmem:[#allocation97_spill] sm:$0xff] %v5746_v41  ;;  %8515 = vst [vmem:[#allocation98_spill] sm:$0xff] %v5751_v1  ;;  %v5768_v52 = vsel %vm8519_vm4, 1.0, %v8085_v19  ;;  %v5783_v27 = vsel %vm1857_vm6, 1.0, %v8085_v19  ;;  %v5788_v45 = vsel %vm1858_vm2, 1.0, %v8085_v19  ;;  %v5793_v17 = vsel %vm1859_vm14, 1.0, %v8085_v19 }
 0x1f5   : > { %8516 = vst [vmem:[#allocation99_spill] sm:$0xff] %v5758_v30  ;;  %8518 = vst [vmem:[#allocation100_spill] sm:$0xff] %v5763_v33  ;;  %v5798_v24 = vsel %vm1860_vm3, 1.0, %v8085_v19  ;;  %v5803_v40 = vsel %vm1861_vm1, 1.0, %v8085_v19  ;;  %v5808_v4 = vsel %vm1862_vm0, 1.0, %v8085_v19  ;;  %v5813_v13 = vsel %vm1863_vm8, 1.0, %v8085_v19 }
 0x1f6   : > { %8520 = vst [vmem:[#allocation101_spill] sm:$0xff] %v5768_v52  ;;  %8521 = vst [vmem:[#allocation102_spill] sm:$0xff] %v5773_v8 }
 0x1f7   : > { %8522 = vst [vmem:[#allocation103_spill] sm:$0xff] %v5778_v44  ;;  %8523 = vst [vmem:[#allocation104_spill] sm:$0xff] %v5783_v27 }
 0x1f8   : > { %8524 = vst [vmem:[#allocation105_spill] sm:$0xff] %v5788_v45  ;;  %8525 = vst [vmem:[#allocation106_spill] sm:$0xff] %v5793_v17 }
 0x1f9   : > { %8526 = vst [vmem:[#allocation107_spill] sm:$0xff] %v5808_v4  ;;  %8527 = vst [vmem:[#allocation108_spill] sm:$0xff] %v5813_v13 }
 0x21b   : > { %v5712_v53 = vpop.permute.xlu1 %2161  ;;  %v5753_v54 = vpop.permute.xlu0 %1901 }
 0x21c   : > { %8509 = vst [vmem:[#allocation92_spill] sm:$0xff] %v5712_v53  ;;  %v5819_v42 = vmul.f32 %v5724_v26, %v5753_v54  ;;  %v5823_v46 = vmul.f32 %v5730_v62, %v5753_v54  ;;  %v5827_v7 = vmul.f32 %v5736_v25, %v5753_v54  ;;  %v5831_v22 = vmul.f32 %v5741_v20, %v5753_v54  ;;  %v8544_v20 = vld [vmem:[#allocation74_spill] sm:$0xff] }
 0x21d   : > { %v5835_v47 = vmul.f32 %v5746_v41, %v5753_v54  ;;  %v5839_v11 = vmul.f32 %v5751_v1, %v5753_v54  ;;  %v5843_v23 = vmul.f32 %v5758_v30, %v5753_v54  ;;  %v5847_v2 = vmul.f32 %v5763_v33, %v5753_v54  ;;  %v8542_v30 = vld [vmem:[#allocation29_spill] sm:$0xff] }
 0x21e   : > { %v5851_v60 = vmul.f32 %v5768_v52, %v5753_v54  ;;  %v5855_v3 = vmul.f32 %v5773_v8, %v5753_v54  ;;  %v5859_v58 = vmul.f32 %v5778_v44, %v5753_v54  ;;  %v5863_v31 = vmul.f32 %v5783_v27, %v5753_v54 }
 0x21f   : > { %8528 = vst [vmem:[#allocation109_spill] sm:$0xff] %v5835_v47  ;;  %8529 = vst [vmem:[#allocation110_spill] sm:$0xff] %v5839_v11  ;;  %v8543_v1 = vmov 0.0  }
 0x220   : > { %v5815_v32 = vpop.permute.xlu1 %1555  ;;  %8530 = vst [vmem:[#allocation111_spill] sm:$0xff] %v5843_v23  ;;  %8531 = vst [vmem:[#allocation112_spill] sm:$0xff] %v5847_v2 }
 0x221   : > { %8532 = vst [vmem:[#allocation113_spill] sm:$0xff] %v5851_v60  ;;  %8533 = vst [vmem:[#allocation114_spill] sm:$0xff] %v5855_v3  ;;  %vm1558_vm1 = vcmp.eq.f32.partialorder %v5276_v16, %v5815_v32  ;;  %vm1559_vm5 = vcmp.eq.f32.partialorder %v5288_v9, %v5815_v32  ;;  %vm1560_vm7 = vcmp.eq.f32.partialorder %v5300_v21, %v5815_v32  ;;  %v8550_v3 = vld [vmem:[#allocation80_spill] sm:$0xff] }
 0x222   : > { %8534 = vst [vmem:[#allocation115_spill] sm:$0xff] %v5859_v58  ;;  %8535 = vst [vmem:[#allocation116_spill] sm:$0xff] %v5863_v31  ;;  %vm1561_vm12 = vcmp.eq.f32.partialorder %v5319_v38, %v5815_v32  ;;  %vm1562_vm13 = vcmp.eq.f32.partialorder %v5334_v18, %v5815_v32  ;;  %vm1563_vm15 = vcmp.eq.f32.partialorder %v5345_v14, %v5815_v32  ;;  %v3878_v21 = vsel %vm1558_vm1, 1.0, %v8085_v19 }
 0x223   : > { %vm1564_vm0 = vcmp.eq.f32.partialorder %v5370_v48, %v5815_v32  ;;  %vm1565_vm8 = vcmp.eq.f32.partialorder %v5382_v63, %v5815_v32  ;;  %vm1566_vm10 = vcmp.eq.f32.partialorder %v5390_v55, %v5815_v32  ;;  %vm1567_vm9 = vcmp.eq.f32.partialorder %v5398_v39, %v5815_v32 }
 0x224   : > { %v5887_v16 = vmul.f32 %v5788_v45, %v5753_v54  ;;  %v5891_v9 = vmul.f32 %v5793_v17, %v5753_v54  ;;  %vm1568_vm6 = vcmp.eq.f32.partialorder %v5406_v0, %v5815_v32  ;;  %vm1569_vm2 = vcmp.eq.f32.partialorder %v5414_v28, %v5815_v32 }
 0x225   : > { %vm1570_vm14 = vcmp.eq.f32.partialorder %v5422_v49, %v5815_v32  ;;  %v3879_v38 = vsel %vm1559_vm5, 1.0, %v8085_v19  ;;  %v3880_v18 = vsel %vm1560_vm7, 1.0, %v8085_v19  ;;  %v3881_v14 = vsel %vm1561_vm12, 1.0, %v8085_v19 }
 0x226   : > { %8536 = vst [vmem:[#allocation117_spill] sm:$0xff] %v5887_v16  ;;  %8537 = vst [vmem:[#allocation118_spill] sm:$0xff] %v5891_v9  ;;  %v3882_v48 = vsel %vm1562_vm13, 1.0, %v8085_v19  ;;  %v3883_v63 = vsel %vm1563_vm15, 1.0, %v8085_v19  ;;  %v3884_v5 = vsel %vm1564_vm0, 1.0, %v8085_v19  ;;  %v3885_v10 = vsel %vm1565_vm8, 1.0, %v8085_v19 }
 0x227   : > { %vm1571_vm3 = vcmp.eq.f32.partialorder %v8538_v56, %v5815_v32  ;;  %vm1572_vm11 = vcmp.eq.f32.partialorder %v8539_v12, %v5815_v32  ;;  %vm1573_vm4 = vcmp.eq.f32.partialorder %v8540_v59, %v5815_v32  ;;  %vm1574_vm1 = vcmp.eq.f32.partialorder %v8541_v35, %v5815_v32  ;;  %v8546_v9 = vld [vmem:[#allocation76_spill] sm:$0xff] }
 0x228   : > { %v1612_v61 = vrot.slane %v3878_v21, 4  ;;  %v1618_v15 = vrot.slane %v3879_v38, 4  ;;  %v1624_v29 = vrot.slane %v3880_v18, 4  ;;  %v1630_v6 = vrot.slane %v3881_v14, 4 }
 0x229   : > { %v1636_v36 = vrot.slane %v3882_v48, 4  ;;  %v1642_v50 = vrot.slane %v3883_v63, 4  ;;  %v1648_v37 = vrot.slane %v3884_v5, 4  ;;  %v1654_v34 = vrot.slane %v3885_v10, 4 }
 0x22a   : > { %v1613_v43 = vadd.f32 %v3878_v21, %v1612_v61  ;;  %v1619_v57 = vadd.f32 %v3879_v38, %v1618_v15  ;;  %v1625_v19 = vadd.f32 %v3880_v18, %v1624_v29  ;;  %v1631_v51 = vadd.f32 %v3881_v14, %v1630_v6 }
 0x22b   : > { %v1637_v53 = vadd.f32 %v3882_v48, %v1636_v36  ;;  %v1643_v17 = vadd.f32 %v3883_v63, %v1642_v50  ;;  %v1649_v45 = vadd.f32 %v3884_v5, %v1648_v37  ;;  %v1655_v27 = vadd.f32 %v3885_v10, %v1654_v34 }
 0x22c   : > { %v1614_v44 = vrot.slane %v1613_v43, 2  ;;  %v1620_v8 = vrot.slane %v1619_v57, 2  ;;  %v1626_v52 = vrot.slane %v1625_v19, 2  ;;  %v1632_v33 = vrot.slane %v1631_v51, 2 }
 0x22d   : > { %vm1575_vm5 = vcmp.eq.f32.partialorder %v8542_v30, %v5815_v32  ;;  %v3886_v41 = vsel %vm1566_vm10, 1.0, %v8543_v1  ;;  %v3887_v21 = vsel %vm1567_vm9, 1.0, %v8543_v1  ;;  %v1638_v38 = vrot.slane %v1637_v53, 2 }
 0x22e   : > { %v1615_v18 = vadd.f32 %v1614_v44, %v1613_v43  ;;  %v1644_v14 = vrot.slane %v1643_v17, 2  ;;  %v1650_v48 = vrot.slane %v1649_v45, 2  ;;  %v1656_v63 = vrot.slane %v1655_v27, 2 }
 0x22f   : > { %v1621_v5 = vadd.f32 %v1620_v8, %v1619_v57  ;;  %v1627_v10 = vadd.f32 %v1626_v52, %v1625_v19  ;;  %v1633_v61 = vadd.f32 %v1632_v33, %v1631_v51  ;;  %v1639_v15 = vadd.f32 %v1638_v38, %v1637_v53 }
 0x230   : > { %v3888_v55 = vsel %vm1568_vm6, 1.0, %v8543_v1  ;;  %v3889_v39 = vsel %vm1569_vm2, 1.0, %v8543_v1  ;;  %v3890_v44 = vsel %vm1570_vm14, 1.0, %v8543_v1  ;;  %v3891_v51 = vsel %vm1571_vm3, 1.0, %v8543_v1 }
 0x231   : > { %v3892_v0 = vsel %vm1572_vm11, 1.0, %v8543_v1  ;;  %v3893_v28 = vsel %vm1573_vm4, 1.0, %v8543_v1  ;;  %v5953_v49 = vsel %vm1574_vm1, 1.0, %v8543_v1  ;;  %v5959_v53 = vsel %vm1575_vm5, 1.0, %v8543_v1 }
 0x232   : > { %v1616_v19 = vrot.slane %v1615_v18, 1  ;;  %v1645_v33 = vadd.f32 %v1644_v14, %v1643_v17  ;;  %v1651_v52 = vadd.f32 %v1650_v48, %v1649_v45  ;;  %v1657_v8 = vadd.f32 %v1656_v63, %v1655_v27  ;;  %v8545_v48 = vld [vmem:[#allocation75_spill] sm:$0xff] }
 0x233   : > { %v1622_v56 = vrot.slane %v1621_v5, 1  ;;  %v1628_v12 = vrot.slane %v1627_v10, 1  ;;  %v1634_v59 = vrot.slane %v1633_v61, 1  ;;  %v1640_v29 = vrot.slane %v1639_v15, 1 }
 0x234   : > { %v1660_v6 = vrot.slane %v3886_v41, 4  ;;  %v1666_v36 = vrot.slane %v3887_v21, 4  ;;  %v1672_v50 = vrot.slane %v3888_v55, 4  ;;  %v1678_v35 = vrot.slane %v3889_v39, 4 }
 0x235   : > { %v1684_v37 = vrot.slane %v3890_v44, 4  ;;  %v1690_v34 = vrot.slane %v3891_v51, 4  ;;  %v1696_v43 = vrot.slane %v3892_v0, 4  ;;  %v1702_v57 = vrot.slane %v3893_v28, 4 }
 0x236   : > { %v1661_v38 = vadd.f32 %v3886_v41, %v1660_v6  ;;  %v1667_v30 = vadd.f32 %v3887_v21, %v1666_v36  ;;  %v1673_v32 = vadd.f32 %v3888_v55, %v1672_v50  ;;  %v1679_v1 = vadd.f32 %v3889_v39, %v1678_v35  ;;  %v8547_v55 = vld [vmem:[#allocation77_spill] sm:$0xff] }
 0x237   : > { %vm1720_vm7 = vcmp.ge.f32.partialorder %v8544_v20, 0.7  ;;  %v1685_v45 = vadd.f32 %v3890_v44, %v1684_v37  ;;  %v1691_v27 = vadd.f32 %v3891_v51, %v1690_v34  ;;  %v1697_v17 = vadd.f32 %v3892_v0, %v1696_v43  ;;  %v8548_v0 = vld [vmem:[#allocation78_spill] sm:$0xff]  ;;  %v8549_v37 = vld [vmem:[#allocation79_spill] sm:$0xff] }
 0x238   : > { %v1703_v14 = vadd.f32 %v3893_v28, %v1702_v57  ;;  %vm1721_vm12 = vcmp.ge.f32.partialorder %v8545_v48, 0.7  ;;  %v1662_v63 = vrot.slane %v1661_v38, 2  ;;  %v1668_v25 = vrot.slane %v1667_v30, 2 }
 0x239   : > { %v1674_v62 = vrot.slane %v1673_v32, 2  ;;  %v1680_v26 = vrot.slane %v1679_v1, 2  ;;  %vm1722_vm13 = vcmp.ge.f32.partialorder %v8546_v9, 0.7  ;;  %v1646_v16 = vrot.slane %v1645_v33, 1 }
 0x23a   : > { %v1686_v31 = vrot.slane %v1685_v45, 2  ;;  %v1692_v41 = vrot.slane %v1691_v27, 2  ;;  %v1698_v21 = vrot.slane %v1697_v17, 2  ;;  %vm1723_vm15 = vcmp.ge.f32.partialorder %v8547_v55, 0.7 }
 0x23b   : > { %v1652_v39 = vrot.slane %v1651_v52, 1  ;;  %v1658_v6 = vrot.slane %v1657_v8, 1  ;;  %v1663_v44 = vadd.f32 %v1662_v63, %v1661_v38  ;;  %v1704_v51 = vrot.slane %v1703_v14, 2  ;;  %v8551_v38 = vld [vmem:[#allocation81_spill] sm:$0xff] }
 0x23c   : > { %vm1724_vm0 = vcmp.ge.f32.partialorder %v8548_v0, 0.7  ;;  %v1669_v28 = vadd.f32 %v1668_v25, %v1667_v30  ;;  %v1675_v36 = vadd.f32 %v1674_v62, %v1673_v32  ;;  %v1681_v50 = vadd.f32 %v1680_v26, %v1679_v1  ;;  %v8552_v25 = vld [vmem:[#allocation82_spill] sm:$0xff] }
 0x23d   : > { %v1687_v35 = vadd.f32 %v1686_v31, %v1685_v45  ;;  %vm1725_vm8 = vcmp.ge.f32.partialorder %v8549_v37, 0.7  ;;  %v1617_v34 = vadd.f32 %v1616_v19, %v1615_v18  ;;  %v1623_v43 = vadd.f32 %v1622_v56, %v1621_v5 }
 0x23e   : > { %v1629_v57 = vadd.f32 %v1628_v12, %v1627_v10  ;;  %v1635_v58 = vadd.f32 %v1634_v59, %v1633_v61  ;;  %v1641_v60 = vadd.f32 %v1640_v29, %v1639_v15  ;;  %v1647_v2 = vadd.f32 %v1646_v16, %v1645_v33  ;;  %v8553_v10 = vld [vmem:[#allocation83_spill] sm:$0xff]  ;;  %v8554_v15 = vld [vmem:[#allocation84_spill] sm:$0xff]  ;;  %v8558_v29 = vld [vmem:[#allocation86_spill] sm:$0xff] }
 0x23f   : > { %v1693_v23 = vadd.f32 %v1692_v41, %v1691_v27  ;;  %v1699_v11 = vadd.f32 %v1698_v21, %v1697_v17  ;;  %v1653_v63 = vadd.f32 %v1652_v39, %v1651_v52  ;;  %v5969_v47 = vadd.f32 %v1658_v6, %v1657_v8  ;;  %v8555_v52 = vld [vmem:[#allocation85_spill] sm:$0xff]  ;;  %v8561_v17 = vld [vmem:[#allocation87_spill] sm:$0xff] }
 0x240   : > { %v1664_v62 = vrot.slane %v1663_v44, 1  ;;  %v1705_v26 = vadd.f32 %v1704_v51, %v1703_v14  ;;  %v1670_v1 = vrot.slane %v1669_v28, 1  ;;  %v1676_v31 = vrot.slane %v1675_v36, 1 }
 0x241   : > { %v1682_v18 = vrot.slane %v1681_v50, 1  ;;  %v1688_v5 = vrot.slane %v1687_v35, 1  ;;  %v1708_v61 = vrot.slane %v5953_v49, 4  ;;  %v1714_v16 = vrot.slane %v5959_v53, 4 }
 0x242   : > { %vm1738_vm3 = vcmp.gt.f32.partialorder %v1617_v34, 0.0  ;;  %vm1739_vm11 = vcmp.gt.f32.partialorder %v1623_v43, 0.0  ;;  %v1694_v19 = vrot.slane %v1693_v23, 1  ;;  %v1700_v33 = vrot.slane %v1699_v11, 1  ;;  %v8574_v34 = vld [vmem:[#allocation89_spill] sm:$0xff] }
 0x243   : > { %vm1740_vm1 = vcmp.gt.f32.partialorder %v1629_v57, 0.0  ;;  %vm1741_vm5 = vcmp.gt.f32.partialorder %v1635_v58, 0.0  ;;  %vm5979_vm6 = vmor %vm1720_vm7, %vm1738_vm3  ;;  %v1665_v56 = vadd.f32 %v1664_v62, %v1663_v44  ;;  %v1709_v12 = vadd.f32 %v5953_v49, %v1708_v61 }
 0x244   : > { %v1715_v59 = vadd.f32 %v5959_v53, %v1714_v16  ;;  %vm1742_vm4 = vcmp.gt.f32.partialorder %v1641_v60, 0.0  ;;  %vm5990_vm10 = vmor %vm1721_vm12, %vm1739_vm11  ;;  %v1671_v32 = vadd.f32 %v1670_v1, %v1669_v28  ;;  %v1677_v45 = vadd.f32 %v1676_v31, %v1675_v36  ;;  %v8568_v36 = vld [vmem:[#allocation88_spill] sm:$0xff]  ;;  %v8578_v1 = vld [vmem:[#allocation90_spill] sm:$0xff] }
 0x245   : > { %v1706_v27 = vrot.slane %v1705_v26, 1  ;;  %vm1743_vm3 = vcmp.gt.f32.partialorder %v1647_v2, 0.0  ;;  %vm5998_vm9 = vmor %vm1722_vm13, %vm1740_vm1  ;;  %v1683_v53 = vadd.f32 %v1682_v18, %v1681_v50  ;;  %v1710_v14 = vrot.slane %v1709_v12, 2  ;;  %v8610_v60 = vld [vmem:[#allocation4_spill] sm:$0xff] }
 0x246   : > { %v1716_v41 = vrot.slane %v1715_v59, 2  ;;  %vm1744_vm2 = vcmp.gt.f32.partialorder %v1653_v63, 0.0  ;;  %vm6008_vm7 = vmor %vm1723_vm15, %vm1741_vm5  ;;  %v1689_v39 = vadd.f32 %v1688_v5, %v1687_v35  ;;  %v1695_v6 = vadd.f32 %v1694_v19, %v1693_v23  ;;  %v8583_v5 = vld [vmem:[#allocation91_spill] sm:$0xff]  ;;  %v8636_v19 = vld [vmem:[#allocation10_spill] sm:$0xff] }
 0x247   : > { %vm1745_vm12 = vcmp.gt.f32.partialorder %v5969_v47, 0.0  ;;  %vm6018_vm11 = vmor %vm1724_vm0, %vm1742_vm4  ;;  %v6026_v58 = vmul.f32 %v5798_v24, %v5753_v54  ;;  %v6028_v51 = vadd.f32 %v1700_v33, %v1699_v11  ;;  %v1711_v23 = vadd.f32 %v1710_v14, %v1709_v12 }
 0x248   : > { %v1717_v28 = vadd.f32 %v1716_v41, %v1715_v59  ;;  %vm6034_vm0 = vmor %vm1725_vm8, %vm1743_vm3  ;;  %v6039_v50 = vadd.f32 %v1706_v27, %v1705_v26  ;;  %vm1747_vm5 = vcmp.gt.f32.partialorder %v1671_v32, 0.0  ;;  %vm8571_vm15 = vcmp.ge.f32.partialorder %v8550_v3, 0.7 }
 0x249   : > { %vm6044_vm14 = vmor %vm8571_vm15, %vm1744_vm2  ;;  %v6052_v2 = vmul.f32 %v5803_v40, %v5753_v54  ;;  %v6056_v35 = vmul.f32 %v5808_v4, %v5753_v54  ;;  %vm8575_vm2 = vcmp.ge.f32.partialorder %v8551_v38, 0.7  ;;  %v8576_v43 = vmov 0 }
 0x24a   : > { %vm6063_vm15 = vmor %vm8575_vm2, %vm1745_vm12  ;;  %v6070_v57 = vmul.f32 %v5813_v13, %v5753_v54  ;;  %v1922_v63 = vrot.slane %v5819_v42, 4  ;;  %v1712_v62 = vrot.slane %v1711_v23, 1  ;;  %v1718_v26 = vrot.slane %v1717_v28, 1 }
 0x24b   : > { %v8577_v43 = vsel %vm6063_vm15, 4294967295, %v8576_v43  ;;  %vm8579_vm1 = vcmp.gt.f32.partialorder %v1665_v56, 0.0  ;;  %vm8580_vm4 = vcmp.ge.f32.partialorder %v8552_v25, 0.7  ;;  %v8581_v47 = vmov 0 }
 0x24c   : > { %vm6077_vm3 = vmor %vm8580_vm4, %vm8579_vm1  ;;  %v4143_v31 = vmov -1.0   ;;  %vm1750_vm8 = vcmp.gt.f32.partialorder %v1689_v39, 0.0  ;;  %vm1751_vm13 = vcmp.gt.f32.partialorder %v1695_v6, 0.0  ;;  %vm1752_vm1 = vcmp.gt.f32.partialorder %v6028_v51, 0.0  ;;  %v8620_v51 = vld [vmem:[#allocation6_spill] sm:$0xff] }
 0x24d   : > { %v8582_v47 = vsel %vm6077_vm3, 4294967295, %v8581_v47  ;;  %v1774_v18 = vsel %vm5979_vm6, 1.0, %v4143_v31  ;;  %v1775_v54 = vsel %vm5990_vm10, 1.0, %v4143_v31  ;;  %vm8584_vm4 = vcmp.ge.f32.partialorder %v8553_v10, 0.7 }
 0x24e   : > { %vm6093_vm3 = vmor %vm8584_vm4, %vm1747_vm5  ;;  %v1928_v16 = vrot.slane %v5823_v46, 4  ;;  %vm1753_vm6 = vcmp.gt.f32.partialorder %v6039_v50, 0.0  ;;  %vm8587_vm10 = vcmp.gt.f32.partialorder %v1677_v45, 0.0  ;;  %vm8588_vm12 = vcmp.ge.f32.partialorder %v8554_v15, 0.7 }
 0x24f   : > { %vm6102_vm15 = vmor %vm8588_vm12, %vm8587_vm10  ;;  %v1776_v33 = vsel %vm5998_vm9, 1.0, %v4143_v31  ;;  %v1777_v8 = vsel %vm6008_vm7, 1.0, %v4143_v31  ;;  %v1778_v56 = vsel %vm6018_vm11, 1.0, %v4143_v31  ;;  %vm8591_vm5 = vcmp.gt.f32.partialorder %v1683_v53, 0.0 }
 0x250   : > { %vm8592_vm4 = vcmp.ge.f32.partialorder %v8555_v52, 0.7  ;;  %v1779_v59 = vsel %vm6034_vm0, 1.0, %v4143_v31  ;;  %v1780_v30 = vsel %vm6044_vm14, 1.0, %v4143_v31  ;;  %vm8595_vm9 = vcmp.lt.f32.partialorder %v8544_v20, 0.3 }
 0x251   : > { %vm6118_vm2 = vmor %vm8592_vm4, %vm8591_vm5  ;;  %v1810_v32 = vsel %vm8595_vm9, 0.0, %v1774_v18  ;;  %vm8596_vm7 = vcmp.lt.f32.partialorder %v8545_v48, 0.3  ;;  %v1713_v27 = vadd.f32 %v1712_v62, %v1711_v23  ;;  %v1719_v49 = vadd.f32 %v1718_v26, %v1717_v28 }
 0x252   : > { %v1811_v45 = vsel %vm8596_vm7, 0.0, %v1775_v54  ;;  %vm8597_vm11 = vcmp.ge.f32.partialorder %v8558_v29, 0.7  ;;  %vm8598_vm10 = vnez %v8577_v43  ;;  %vm8599_vm0 = vnez %v8582_v47  ;;  %v8617_v43 = vld [vmem:[#allocation5_spill] sm:$0xff]  ;;  %v8628_v47 = vld [vmem:[#allocation8_spill] sm:$0xff] }
 0x253   : > { %vm1768_vm12 = vmor %vm8597_vm11, %vm1750_vm8  ;;  %v1781_v53 = vsel %vm8598_vm10, 1.0, %v4143_v31  ;;  %v1782_v14 = vsel %vm8599_vm0, 1.0, %v4143_v31  ;;  %vm8600_vm14 = vcmp.ge.f32.partialorder %v8561_v17, 0.7  ;;  %v1783_v48 = vsel %vm6093_vm3, 1.0, %v4143_v31  ;;  %v8631_v54 = vld [vmem:[#allocation9_spill] sm:$0xff] }
 0x254   : > { %vm6144_vm5 = vmor %vm8600_vm14, %vm1751_vm13  ;;  %vm1806_vm8 = vcmp.lt.f32.partialorder %v8568_v36, 0.3  ;;  %vm8603_vm4 = vcmp.lt.f32.partialorder %v8546_v9, 0.3  ;;  %vm8604_vm9 = vcmp.lt.f32.partialorder %v8547_v55, 0.3 }
 0x255   : > { %v1812_v41 = vsel %vm8603_vm4, 0.0, %v1776_v33  ;;  %v1813_v21 = vsel %vm8604_vm9, 0.0, %v1777_v8  ;;  %vm8605_vm7 = vcmp.lt.f32.partialorder %v8548_v0, 0.3  ;;  %v1784_v6 = vsel %vm6102_vm15, 1.0, %v4143_v31 }
 0x256   : > { %v1814_v39 = vsel %vm8605_vm7, 0.0, %v1778_v56  ;;  %v1785_v44 = vsel %vm6118_vm2, 1.0, %v4143_v31  ;;  %vm1807_vm13 = vcmp.lt.f32.partialorder %v8574_v34, 0.3  ;;  %vm1808_vm3 = vcmp.lt.f32.partialorder %v8578_v1, 0.3 }
 0x257   : > { %vm8606_vm11 = vcmp.lt.f32.partialorder %v8549_v37, 0.3  ;;  %vm8607_vm10 = vcmp.lt.f32.partialorder %v8550_v3, 0.3  ;;  %v1786_v0 = vsel %vm1768_vm12, 1.0, %v4143_v31  ;;  %vm8611_vm2 = vcmp.gt.f32.partialorder %v8610_v60, 0.0 }
 0x258   : > { %v1815_v9 = vsel %vm8606_vm11, 0.0, %v1779_v59  ;;  %v1816_v55 = vsel %vm8607_vm10, 0.0, %v1780_v30  ;;  %vm1809_vm0 = vcmp.lt.f32.partialorder %v8583_v5, 0.3  ;;  %vm8608_vm15 = vcmp.lt.f32.partialorder %v8551_v38, 0.3 }
 0x259   : > { %v1817_v23 = vsel %vm8608_vm15, 0.0, %v1781_v53  ;;  %vm8609_vm14 = vcmp.lt.f32.partialorder %v8552_v25, 0.3  ;;  %v6178_v11 = vsel %vm8611_vm2, %v1810_v32, -1.0  ;;  %vm1754_vm4 = vcmp.gt.f32.partialorder %v1713_v27, 0.0  ;;  %v8640_v56 = vld [vmem:[#allocation11_spill] sm:$0xff] }
 0x25a   : > { %v1818_v28 = vsel %vm8609_vm14, 0.0, %v1782_v14  ;;  %8612 = vst [vmem:[#allocation74_spill] sm:$0xff] %v6178_v11  ;;  %vm1755_vm9 = vcmp.gt.f32.partialorder %v1719_v49, 0.0  ;;  %vm8613_vm7 = vcmp.ge.f32.partialorder %v8568_v36, 0.7  ;;  %v1787_v3 = vsel %vm6144_vm5, 1.0, %v4143_v31 }
 0x25b   : > { %vm1770_vm11 = vmor %vm8613_vm7, %vm1752_vm1  ;;  %vm8614_vm12 = vcmp.lt.f32.partialorder %v8553_v10, 0.3  ;;  %vm8615_vm10 = vcmp.lt.f32.partialorder %v8554_v15, 0.3  ;;  %vm8616_vm15 = vcmp.lt.f32.partialorder %v8555_v52, 0.3  ;;  %v1923_v8 = vadd.f32 %v1922_v63, %v5819_v42 }
 0x25c   : > { %v1819_v37 = vsel %vm8614_vm12, 0.0, %v1783_v48  ;;  %v1820_v38 = vsel %vm8615_vm10, 0.0, %v1784_v6  ;;  %v1821_v25 = vsel %vm8616_vm15, 0.0, %v1785_v44  ;;  %vm8618_vm14 = vcmp.gt.f32.partialorder %v8617_v43, 0.0  ;;  %v8625_v15 = vld [vmem:[#allocation7_spill] sm:$0xff]  ;;  %v8646_v42 = vld [vmem:[#allocation109_spill] sm:$0xff] }
 0x25d   : > { %v6195_v62 = vsel %vm8618_vm14, %v1811_v45, -1.0  ;;  %vm8621_vm2 = vcmp.gt.f32.partialorder %v8620_v51, 0.0  ;;  %vm8623_vm1 = vcmp.ge.f32.partialorder %v8574_v34, 0.7  ;;  %vm8624_vm7 = vcmp.lt.f32.partialorder %v8558_v29, 0.3 }
 0x25e   : > { %8619 = vst [vmem:[#allocation75_spill] sm:$0xff] %v6195_v62  ;;  %v6199_v26 = vsel %vm8621_vm2, %v1812_v41, -1.0  ;;  %vm1771_vm5 = vmor %vm8623_vm1, %vm1753_vm6  ;;  %v1822_v10 = vsel %vm8624_vm7, 0.0, %v1786_v0  ;;  %vm8626_vm12 = vcmp.gt.f32.partialorder %v8625_v15, 0.0  ;;  %vm8629_vm10 = vcmp.gt.f32.partialorder %v8628_v47, 0.0  ;;  %v8643_v45 = vld [vmem:[#allocation12_spill] sm:$0xff] }
 0x25f   : > { %8622 = vst [vmem:[#allocation76_spill] sm:$0xff] %v6199_v26  ;;  %v6209_v52 = vsel %vm8626_vm12, %v1813_v21, -1.0  ;;  %v6213_v18 = vsel %vm8629_vm10, %v1814_v39, -1.0  ;;  %vm8632_vm15 = vcmp.gt.f32.partialorder %v8631_v54, 0.0  ;;  %vm8634_vm14 = vcmp.ge.f32.partialorder %v8578_v1, 0.7 }
 0x260   : > { %8627 = vst [vmem:[#allocation77_spill] sm:$0xff] %v6209_v52  ;;  %8630 = vst [vmem:[#allocation78_spill] sm:$0xff] %v6213_v18  ;;  %v6217_v61 = vsel %vm8632_vm15, %v1815_v9, -1.0  ;;  %v1788_v50 = vsel %vm1770_vm11, 1.0, %v4143_v31  ;;  %vm8635_vm6 = vcmp.lt.f32.partialorder %v8561_v17, 0.3  ;;  %v1929_v59 = vadd.f32 %v1928_v16, %v5823_v46 }
 0x261   : > { %8633 = vst [vmem:[#allocation79_spill] sm:$0xff] %v6217_v61  ;;  %vm1772_vm2 = vmor %vm8634_vm14, %vm1754_vm4  ;;  %v1823_v29 = vsel %vm8635_vm6, 0.0, %v1787_v3  ;;  %vm8637_vm1 = vcmp.gt.f32.partialorder %v8636_v19, 0.0  ;;  %vm8639_vm7 = vcmp.ge.f32.partialorder %v8583_v5, 0.7  ;;  %vm8641_vm10 = vcmp.gt.f32.partialorder %v8640_v56, 0.0 }
 0x262   : > { %v6226_v33 = vsel %vm8637_vm1, %v1816_v55, -1.0  ;;  %vm1773_vm12 = vmor %vm8639_vm7, %vm1755_vm9  ;;  %v6236_v12 = vsel %vm8641_vm10, %v1817_v23, -1.0  ;;  %v1934_v17 = vrot.slane %v5827_v7, 4  ;;  %v1940_v30 = vrot.slane %v5831_v22, 4  ;;  %v8647_v49 = vld [vmem:[#allocation110_spill] sm:$0xff]  ;;  %v8648_v41 = vld [vmem:[#allocation111_spill] sm:$0xff] }
 0x263   : > { %8638 = vst [vmem:[#allocation80_spill] sm:$0xff] %v6226_v33  ;;  %8642 = vst [vmem:[#allocation81_spill] sm:$0xff] %v6236_v12  ;;  %v1789_v32 = vsel %vm1771_vm5, 1.0, %v4143_v31  ;;  %vm8644_vm4 = vcmp.gt.f32.partialorder %v8643_v45, 0.0  ;;  %v1946_v63 = vrot.slane %v8646_v42, 4  ;;  %v1952_v53 = vrot.slane %v8647_v49, 4 }
 0x264   : > { %v6244_v27 = vsel %vm8644_vm4, %v1818_v28, -1.0  ;;  %v1790_v14 = vsel %vm1772_vm2, 1.0, %v4143_v31  ;;  %v1924_v20 = vrot.slane %v1923_v8, 2  ;;  %v1930_v48 = vrot.slane %v1929_v59, 2  ;;  %v8649_v6 = vld [vmem:[#allocation112_spill] sm:$0xff]  ;;  %v8650_v55 = vld [vmem:[#allocation13_spill] sm:$0xff] }
 0x265   : > { %8645 = vst [vmem:[#allocation82_spill] sm:$0xff] %v6244_v27  ;;  %v1958_v46 = vrot.slane %v8648_v41, 4  ;;  %v1791_v16 = vsel %vm1773_vm12, 1.0, %v4143_v31  ;;  %v1935_v21 = vadd.f32 %v1934_v17, %v5827_v7  ;;  %v1941_v39 = vadd.f32 %v1940_v30, %v5831_v22  ;;  %v8653_v23 = vld [vmem:[#allocation14_spill] sm:$0xff]  ;;  %v8656_v31 = vld [vmem:[#allocation15_spill] sm:$0xff]  ;;  %v8681_v12 = vld [vmem:[#allocation117_spill] sm:$0xff] }
 0x266   : > { %v1964_v44 = vrot.slane %v8649_v6, 4  ;;  %v1824_v9 = vsel %vm1806_vm8, 0.0, %v1788_v50  ;;  %vm8651_vm9 = vcmp.gt.f32.partialorder %v8650_v55, 0.0  ;;  %vm8654_vm11 = vcmp.gt.f32.partialorder %v8653_v23, 0.0  ;;  %v8682_v61 = vld [vmem:[#allocation118_spill] sm:$0xff] }
 0x267   : > { %v6258_v0 = vsel %vm8651_vm9, %v1819_v37, -1.0  ;;  %v6262_v28 = vsel %vm8654_vm11, %v1820_v38, -1.0  ;;  %v1947_v3 = vadd.f32 %v1946_v63, %v8646_v42  ;;  %v1825_v7 = vsel %vm1807_vm13, 0.0, %v1789_v32  ;;  %v8659_v42 = vld [vmem:[#allocation16_spill] sm:$0xff] }
 0x268   : > { %8652 = vst [vmem:[#allocation83_spill] sm:$0xff] %v6258_v0  ;;  %8655 = vst [vmem:[#allocation84_spill] sm:$0xff] %v6262_v28  ;;  %v1826_v22 = vsel %vm1808_vm3, 0.0, %v1790_v14  ;;  %vm8657_vm5 = vcmp.gt.f32.partialorder %v8656_v31, 0.0  ;;  %v1953_v50 = vadd.f32 %v1952_v53, %v8647_v49  ;;  %v1827_v37 = vsel %vm1809_vm0, 0.0, %v1791_v16  ;;  %v8662_v14 = vld [vmem:[#allocation17_spill] sm:$0xff] }
 0x269   : > { %v6271_v36 = vsel %vm8657_vm5, %v1821_v25, -1.0  ;;  %v1925_v17 = vadd.f32 %v1924_v20, %v1923_v8  ;;  %v1931_v38 = vadd.f32 %v1930_v48, %v1929_v59  ;;  %v1959_v30 = vadd.f32 %v1958_v46, %v8648_v41  ;;  %v8665_v49 = vld [vmem:[#allocation18_spill] sm:$0xff]  ;;  %v8668_v8 = vld [vmem:[#allocation19_spill] sm:$0xff]  ;;  %v8671_v20 = vld [vmem:[#allocation20_spill] sm:$0xff] }
 0x26a   : > { %8658 = vst [vmem:[#allocation85_spill] sm:$0xff] %v6271_v36  ;;  %vm8660_vm8 = vcmp.gt.f32.partialorder %v8659_v42, 0.0  ;;  %v1936_v32 = vrot.slane %v1935_v21, 2  ;;  %v1942_v1 = vrot.slane %v1941_v39, 2  ;;  %v1965_v63 = vadd.f32 %v1964_v44, %v8649_v6  ;;  %v8674_v48 = vld [vmem:[#allocation21_spill] sm:$0xff] }
 0x26b   : > { %v6279_v34 = vsel %vm8660_vm8, %v1822_v10, -1.0  ;;  %vm8663_vm13 = vcmp.gt.f32.partialorder %v8662_v14, 0.0  ;;  %vm8666_vm3 = vcmp.gt.f32.partialorder %v8665_v49, 0.0  ;;  %vm8669_vm0 = vcmp.gt.f32.partialorder %v8668_v8, 0.0  ;;  %v8708_v8 = vld [vmem:[#allocation102_spill] sm:$0xff] }
 0x26c   : > { %8661 = vst [vmem:[#allocation86_spill] sm:$0xff] %v6279_v34  ;;  %v6284_v25 = vsel %vm8663_vm13, %v1823_v29, -1.0  ;;  %v6288_v5 = vsel %vm8666_vm3, %v1824_v9, -1.0  ;;  %v6292_v59 = vsel %vm8669_vm0, %v1825_v7, -1.0  ;;  %v1948_v53 = vrot.slane %v1947_v3, 2  ;;  %v8677_v29 = vld [vmem:[#allocation113_spill] sm:$0xff] }
 0x26d   : > { %8664 = vst [vmem:[#allocation87_spill] sm:$0xff] %v6284_v25  ;;  %8667 = vst [vmem:[#allocation88_spill] sm:$0xff] %v6288_v5  ;;  %vm8672_vm15 = vcmp.gt.f32.partialorder %v8671_v20, 0.0  ;;  %vm8675_vm14 = vcmp.gt.f32.partialorder %v8674_v48, 0.0  ;;  %v1954_v46 = vrot.slane %v1953_v50, 2  ;;  %v1970_v16 = vrot.slane %v8677_v29, 4 }
 0x26e   : > { %8670 = vst [vmem:[#allocation89_spill] sm:$0xff] %v6292_v59  ;;  %v6296_v10 = vsel %vm8672_vm15, %v1826_v22, -1.0  ;;  %v6300_v41 = vsel %vm8675_vm14, %v1827_v37, -1.0  ;;  %v1926_v6 = vrot.slane %v1925_v17, 1  ;;  %v1932_v44 = vrot.slane %v1931_v38, 1  ;;  %v8678_v5 = vld [vmem:[#allocation114_spill] sm:$0xff] }
 0x26f   : > { %8673 = vst [vmem:[#allocation90_spill] sm:$0xff] %v6296_v10  ;;  %8676 = vst [vmem:[#allocation91_spill] sm:$0xff] %v6300_v41  ;;  %v1960_v9 = vrot.slane %v1959_v30, 2  ;;  %v1976_v25 = vrot.slane %v8678_v5, 4  ;;  %v1937_v34 = vadd.f32 %v1936_v32, %v1935_v21  ;;  %v1943_v7 = vadd.f32 %v1942_v1, %v1941_v39  ;;  %v8679_v10 = vld [vmem:[#allocation115_spill] sm:$0xff]  ;;  %v8680_v37 = vld [vmem:[#allocation116_spill] sm:$0xff] }
 0x270   : > { %v1966_v59 = vrot.slane %v1965_v63, 2  ;;  %v1971_v36 = vadd.f32 %v1970_v16, %v8677_v29  ;;  %v1949_v28 = vadd.f32 %v1948_v53, %v1947_v3  ;;  %v1982_v0 = vrot.slane %v8679_v10, 4  ;;  %v8707_v48 = vld [vmem:[#allocation101_spill] sm:$0xff] }
 0x271   : > { %v1977_v22 = vadd.f32 %v1976_v25, %v8678_v5  ;;  %v1988_v41 = vrot.slane %v8680_v37, 4  ;;  %v1955_v27 = vadd.f32 %v1954_v46, %v1953_v50  ;;  %v1994_v33 = vrot.slane %v8681_v12, 4 }
 0x272   : > { %v2000_v18 = vrot.slane %v8682_v61, 4  ;;  %v2006_v52 = vrot.slane %v6026_v58, 4  ;;  %v1972_v26 = vrot.slane %v1971_v36, 2  ;;  %v1983_v21 = vadd.f32 %v1982_v0, %v8679_v10 }
 0x273   : > { %v1989_v39 = vadd.f32 %v1988_v41, %v8680_v37  ;;  %v2012_v3 = vrot.slane %v6052_v2, 4  ;;  %v1961_v32 = vadd.f32 %v1960_v9, %v1959_v30  ;;  %v1978_v1 = vrot.slane %v1977_v22, 2 }
 0x274   : > { %v1995_v25 = vadd.f32 %v1994_v33, %v8681_v12  ;;  %v2001_v5 = vadd.f32 %v2000_v18, %v8682_v61  ;;  %v1938_v50 = vrot.slane %v1937_v34, 1  ;;  %v1967_v53 = vadd.f32 %v1966_v59, %v1965_v63 }
 0x275   : > { %v1984_v46 = vrot.slane %v1983_v21, 2  ;;  %v2007_v29 = vadd.f32 %v2006_v52, %v6026_v58  ;;  %v6317_v16 = vadd.f32 %v1926_v6, %v1925_v17  ;;  %v1990_v62 = vrot.slane %v1989_v39, 2 }
 0x276   : > { %v1996_v11 = vrot.slane %v1995_v25, 2  ;;  %v2013_v0 = vadd.f32 %v2012_v3, %v6052_v2  ;;  %v6320_v10 = vadd.f32 %v1932_v44, %v1931_v38  ;;  %v1944_v41 = vrot.slane %v1943_v7, 1 }
 0x277   : > { %8683 = vst [vmem:[#allocation109_spill] sm:$0xff] %v6317_v16  ;;  %v1973_v30 = vadd.f32 %v1972_v26, %v1971_v36  ;;  %v2002_v9 = vrot.slane %v2001_v5, 2  ;;  %v1950_v37 = vrot.slane %v1949_v28, 1  ;;  %v1956_v33 = vrot.slane %v1955_v27, 1  ;;  %v6328_v36 = vpop.permute.xlu0 %2031 }
 0x278   : > { %8684 = vst [vmem:[#allocation110_spill] sm:$0xff] %v6320_v10  ;;  %v1962_v12 = vrot.slane %v1961_v32, 1  ;;  %v1979_v18 = vadd.f32 %v1978_v1, %v1977_v22  ;;  %v6322_v61 = vadd.f32 %v1938_v50, %v1937_v34  ;;  %v1968_v63 = vrot.slane %v1967_v53, 1 }
 0x279   : > { %v1985_v59 = vadd.f32 %v1984_v46, %v1983_v21  ;;  %v2008_v58 = vrot.slane %v2007_v29, 2  ;;  %v1991_v52 = vadd.f32 %v1990_v62, %v1989_v39  ;;  %v1997_v17 = vadd.f32 %v1996_v11, %v1995_v25 }
 0x27a   : > { %8685 = vst [vmem:[#allocation111_spill] sm:$0xff] %v6322_v61  ;;  %v2014_v6 = vrot.slane %v2013_v0, 2  ;;  %v2018_v16 = vrot.slane %v6056_v35, 4  ;;  %v6325_v2 = vadd.f32 %v1944_v41, %v1943_v7  ;;  %v1974_v38 = vrot.slane %v1973_v30, 1 }
 0x27b   : > { %v2003_v44 = vadd.f32 %v2002_v9, %v2001_v5  ;;  %v2024_v26 = vrot.slane %v6070_v57, 4  ;;  %v6330_v3 = vadd.f32 %v1950_v37, %v1949_v28  ;;  %v6332_v34 = vadd.f32 %v1956_v33, %v1955_v27  ;;  %v8692_v27 = vld [vmem:[#allocation93_spill] sm:$0xff] }
 0x27c   : > { %8686 = vst [vmem:[#allocation112_spill] sm:$0xff] %v6325_v2  ;;  %v6334_v22 = vadd.f32 %v1962_v12, %v1961_v32  ;;  %v1980_v21 = vrot.slane %v1979_v18, 1  ;;  %v6336_v62 = vadd.f32 %v1968_v63, %v1967_v53  ;;  %v2009_v11 = vadd.f32 %v2008_v58, %v2007_v29  ;;  %v8693_v32 = vld [vmem:[#allocation94_spill] sm:$0xff]  ;;  %v8695_v29 = vld [vmem:[#allocation95_spill] sm:$0xff]  ;;  %v8697_v37 = vld [vmem:[#allocation97_spill] sm:$0xff] }
 0x27d   : > { %8687 = vst [vmem:[#allocation113_spill] sm:$0xff] %v6330_v3  ;;  %8688 = vst [vmem:[#allocation114_spill] sm:$0xff] %v6332_v34  ;;  %v2019_v39 = vadd.f32 %v2018_v16, %v6056_v35  ;;  %v2025_v7 = vadd.f32 %v2024_v26, %v6070_v57  ;;  %v1986_v1 = vrot.slane %v1985_v59, 1  ;;  %v1992_v25 = vrot.slane %v1991_v52, 1  ;;  %v8696_v57 = vld [vmem:[#allocation96_spill] sm:$0xff]  ;;  %v8698_v63 = vld [vmem:[#allocation98_spill] sm:$0xff] }
 0x27e   : > { %8689 = vst [vmem:[#allocation115_spill] sm:$0xff] %v6334_v22  ;;  %8690 = vst [vmem:[#allocation116_spill] sm:$0xff] %v6336_v62  ;;  %v1998_v5 = vrot.slane %v1997_v17, 1  ;;  %v2015_v50 = vadd.f32 %v2014_v6, %v2013_v0  ;;  %v6340_v46 = vadd.f32 %v1974_v38, %v1973_v30  ;;  %v2004_v28 = vrot.slane %v2003_v44, 1  ;;  %v8704_v34 = vld [vmem:[#allocation100_spill] sm:$0xff] }
 0x27f   : > { %v2034_v41 = vmul.f32 %v8692_v27, %v6328_v36  ;;  %v2035_v9 = vmul.f32 %v8693_v32, %v6328_v36  ;;  %v6346_v53 = vadd.f32 %v1980_v21, %v1979_v18  ;;  %v2036_v35 = vmul.f32 %v8695_v29, %v6328_v36 }
 0x280   : > { %8691 = vst [vmem:[#allocation117_spill] sm:$0xff] %v6340_v46  ;;  %v2037_v16 = vmul.f32 %v8696_v57, %v6328_v36  ;;  %v2038_v0 = vmul.f32 %v8697_v37, %v6328_v36  ;;  %v2010_v30 = vrot.slane %v2009_v11, 1  ;;  %v2020_v33 = vrot.slane %v2019_v39, 2 }
 0x281   : > { %8694 = vst [vmem:[#allocation118_spill] sm:$0xff] %v6346_v53  ;;  %v2026_v12 = vrot.slane %v2025_v7, 2  ;;  %v2039_v58 = vmul.f32 %v8698_v63, %v6328_v36  ;;  %v6356_v6 = vadd.f32 %v1986_v1, %v1985_v59  ;;  %v6358_v38 = vadd.f32 %v1992_v25, %v1991_v52  ;;  %v8703_v53 = vld [vmem:[#allocation99_spill] sm:$0xff] }
 0x282   : > { %v6360_v18 = vadd.f32 %v1998_v5, %v1997_v17  ;;  %v2016_v26 = vrot.slane %v2015_v50, 1  ;;  %v6362_v21 = vadd.f32 %v2004_v28, %v2003_v44  ;;  %v2040_v46 = vmul.f32 %v8703_v53, %v6328_v36 }
 0x283   : > { %8699 = vst [vmem:[#allocation93_spill] sm:$0xff] %v6356_v6  ;;  %8700 = vst [vmem:[#allocation94_spill] sm:$0xff] %v6358_v38  ;;  %v2052_v62 = vrot.slane %v2034_v41, 4  ;;  %v2058_v22 = vrot.slane %v2035_v9, 4  ;;  %v2041_v3 = vmul.f32 %v8704_v34, %v6328_v36  ;;  %v2064_v2 = vrot.slane %v2036_v35, 4 }
 0x284   : > { %8701 = vst [vmem:[#allocation95_spill] sm:$0xff] %v6360_v18  ;;  %8702 = vst [vmem:[#allocation96_spill] sm:$0xff] %v6362_v21  ;;  %v2070_v61 = vrot.slane %v2037_v16, 4  ;;  %v2076_v10 = vrot.slane %v2038_v0, 4  ;;  %v2021_v59 = vadd.f32 %v2020_v33, %v2019_v39  ;;  %v2027_v1 = vadd.f32 %v2026_v12, %v2025_v7  ;;  %v8709_v39 = vld [vmem:[#allocation103_spill] sm:$0xff] }
 0x285   : > { %v2053_v52 = vadd.f32 %v2052_v62, %v2034_v41  ;;  %v2082_v25 = vrot.slane %v2039_v58, 4  ;;  %v2059_v17 = vadd.f32 %v2058_v22, %v2035_v9  ;;  %v2065_v5 = vadd.f32 %v2064_v2, %v2036_v35 }
 0x286   : > { %v2071_v18 = vadd.f32 %v2070_v61, %v2037_v16  ;;  %v2077_v44 = vadd.f32 %v2076_v10, %v2038_v0  ;;  %v6368_v28 = vadd.f32 %v2010_v30, %v2009_v11  ;;  %v6370_v21 = vadd.f32 %v2016_v26, %v2015_v50  ;;  %v8710_v10 = vld [vmem:[#allocation104_spill] sm:$0xff]  ;;  %v8711_v16 = vld [vmem:[#allocation105_spill] sm:$0xff]  ;;  %v8712_v30 = vld [vmem:[#allocation106_spill] sm:$0xff] }
 0x287   : > { %v2054_v38 = vrot.slane %v2053_v52, 2  ;;  %v2088_v6 = vrot.slane %v2040_v46, 4  ;;  %v2042_v20 = vmul.f32 %v8707_v48, %v6328_v36  ;;  %v2043_v49 = vmul.f32 %v8708_v8, %v6328_v36 }
 0x288   : > { %8705 = vst [vmem:[#allocation97_spill] sm:$0xff] %v6368_v28  ;;  %8706 = vst [vmem:[#allocation98_spill] sm:$0xff] %v6370_v21  ;;  %v2044_v62 = vmul.f32 %v8709_v39, %v6328_v36  ;;  %v2094_v7 = vrot.slane %v2041_v3, 4  ;;  %v2022_v22 = vrot.slane %v2021_v59, 1  ;;  %v2028_v2 = vrot.slane %v2027_v1, 1 }
 0x289   : > { %v2045_v61 = vmul.f32 %v8710_v10, %v6328_v36  ;;  %v2083_v11 = vadd.f32 %v2082_v25, %v2039_v58  ;;  %v2060_v50 = vrot.slane %v2059_v17, 2  ;;  %v2066_v41 = vrot.slane %v2065_v5, 2 }
 0x28a   : > { %v2072_v9 = vrot.slane %v2071_v18, 2  ;;  %v2078_v35 = vrot.slane %v2077_v44, 2  ;;  %v2046_v0 = vmul.f32 %v8711_v16, %v6328_v36  ;;  %v2047_v33 = vmul.f32 %v8712_v30, %v6328_v36 }
 0x28b   : > { %v2055_v12 = vadd.f32 %v2054_v38, %v2053_v52  ;;  %v2089_v26 = vadd.f32 %v2088_v6, %v2040_v46  ;;  %v2048_v21 = vmul.f32 %v5798_v24, %v6328_v36  ;;  %v2049_v28 = vmul.f32 %v5803_v40, %v6328_v36 }
 0x28c   : > { %v6390_v58 = vmul.f32 %v5808_v4, %v6328_v36  ;;  %v2095_v25 = vadd.f32 %v2094_v7, %v2041_v3  ;;  %v6392_v14 = vadd.f32 %v2022_v22, %v2021_v59  ;;  %v6394_v42 = vadd.f32 %v2028_v2, %v2027_v1 }
 0x28d   : > { %v6398_v31 = vmul.f32 %v5813_v13, %v6328_v36  ;;  %v2084_v46 = vrot.slane %v2083_v11, 2  ;;  %v2061_v6 = vadd.f32 %v2060_v50, %v2059_v17  ;;  %v2067_v38 = vadd.f32 %v2066_v41, %v2065_v5 }
 0x28e   : > { %8713 = vst [vmem:[#allocation99_spill] sm:$0xff] %v6392_v14  ;;  %8714 = vst [vmem:[#allocation100_spill] sm:$0xff] %v6394_v42  ;;  %v2073_v52 = vadd.f32 %v2072_v9, %v2071_v18  ;;  %v2079_v23 = vadd.f32 %v2078_v35, %v2077_v44  ;;  %v2056_v55 = vrot.slane %v2055_v12, 1  ;;  %v2090_v45 = vrot.slane %v2089_v26, 2 }
 0x28f   : > { %v2100_v56 = vrot.slane %v2042_v20, 4  ;;  %v2106_v19 = vrot.slane %v2043_v49, 4  ;;  %v2096_v54 = vrot.slane %v2095_v25, 2  ;;  %v2112_v47 = vrot.slane %v2044_v62, 4 }
 0x290   : > { %v2118_v3 = vrot.slane %v2045_v61, 4  ;;  %v2124_v59 = vrot.slane %v2046_v0, 4  ;;  %v2085_v7 = vadd.f32 %v2084_v46, %v2083_v11  ;;  %v2130_v2 = vrot.slane %v2047_v33, 4 }
 0x291   : > { %v2101_v1 = vadd.f32 %v2100_v56, %v2042_v20  ;;  %v2107_v22 = vadd.f32 %v2106_v19, %v2043_v49  ;;  %v2113_v42 = vadd.f32 %v2112_v47, %v2044_v62  ;;  %v2136_v15 = vrot.slane %v2048_v21, 4 }
 0x292   : > { %v2119_v36 = vadd.f32 %v2118_v3, %v2045_v61  ;;  %v2125_v14 = vadd.f32 %v2124_v59, %v2046_v0  ;;  %v2062_v17 = vrot.slane %v2061_v6, 1  ;;  %v2142_v44 = vrot.slane %v2049_v28, 4 }
 0x293   : > { %v2102_v5 = vrot.slane %v2101_v1, 2  ;;  %v2108_v18 = vrot.slane %v2107_v22, 2  ;;  %v2091_v50 = vadd.f32 %v2090_v45, %v2089_v26  ;;  %v2097_v41 = vadd.f32 %v2096_v54, %v2095_v25 }
 0x294   : > { %v2114_v9 = vrot.slane %v2113_v42, 2  ;;  %v2131_v35 = vadd.f32 %v2130_v2, %v2047_v33  ;;  %v2068_v51 = vrot.slane %v2067_v38, 1  ;;  %v2074_v43 = vrot.slane %v2073_v52, 1 }
 0x295   : > { %v2120_v60 = vrot.slane %v2119_v36, 2  ;;  %v2126_v13 = vrot.slane %v2125_v14, 2  ;;  %v2080_v11 = vrot.slane %v2079_v23, 1  ;;  %v2086_v56 = vrot.slane %v2085_v7, 1 }
 0x296   : > { %v2137_v19 = vadd.f32 %v2136_v15, %v2048_v21  ;;  %v2143_v49 = vadd.f32 %v2142_v44, %v2049_v28  ;;  %v6400_v47 = vadd.f32 %v2056_v55, %v2055_v12  ;;  %v6402_v20 = vadd.f32 %v2062_v17, %v2061_v6 }
 0x297   : > { %v2103_v62 = vadd.f32 %v2102_v5, %v2101_v1  ;;  %v2109_v61 = vadd.f32 %v2108_v18, %v2107_v22  ;;  %v2092_v0 = vrot.slane %v2091_v50, 1  ;;  %v2098_v46 = vrot.slane %v2097_v41, 1  ;;  %v8723_v22 = vld [vmem:[#allocation92_spill] sm:$0xff] }
 0x298   : > { %8715 = vst [vmem:[#allocation101_spill] sm:$0xff] %v6400_v47  ;;  %8716 = vst [vmem:[#allocation102_spill] sm:$0xff] %v6402_v20  ;;  %v2115_v45 = vadd.f32 %v2114_v9, %v2113_v42  ;;  %v2132_v54 = vrot.slane %v2131_v35, 2  ;;  %v6404_v26 = vadd.f32 %v2068_v51, %v2067_v38  ;;  %v6406_v33 = vadd.f32 %v2074_v43, %v2073_v52 }
 0x299   : > { %v2121_v25 = vadd.f32 %v2120_v60, %v2119_v36  ;;  %v2127_v3 = vadd.f32 %v2126_v13, %v2125_v14  ;;  %v6408_v59 = vadd.f32 %v2080_v11, %v2079_v23  ;;  %v6410_v15 = vadd.f32 %v2086_v56, %v2085_v7 }
 0x29a   : > { %8717 = vst [vmem:[#allocation103_spill] sm:$0xff] %v6404_v26  ;;  %8718 = vst [vmem:[#allocation104_spill] sm:$0xff] %v6406_v33  ;;  %v2138_v55 = vrot.slane %v2137_v19, 2  ;;  %v2144_v21 = vrot.slane %v2143_v49, 2  ;;  %v2104_v28 = vrot.slane %v2103_v62, 1  ;;  %v2110_v12 = vrot.slane %v2109_v61, 1 }
 0x29b   : > { %8719 = vst [vmem:[#allocation105_spill] sm:$0xff] %v6408_v59  ;;  %8720 = vst [vmem:[#allocation106_spill] sm:$0xff] %v6410_v15  ;;  %v2148_v6 = vrot.slane %v6390_v58, 4  ;;  %v2154_v1 = vrot.slane %v6398_v31, 4  ;;  %v6414_v42 = vadd.f32 %v2092_v0, %v2091_v50  ;;  %v6416_v51 = vadd.f32 %v2098_v46, %v2097_v41 }
 0x29c   : > { %v2116_v43 = vrot.slane %v2115_v45, 1  ;;  %v2133_v38 = vadd.f32 %v2132_v54, %v2131_v35  ;;  %v2122_v60 = vrot.slane %v2121_v25, 1  ;;  %v2128_v13 = vrot.slane %v2127_v3, 1 }
 0x29d   : > { %8721 = vst [vmem:[#allocation119_spill] sm:$0xff] %v6414_v42  ;;  %8722 = vst [vmem:[#allocation120_spill] sm:$0xff] %v6416_v51  ;;  %v2149_v23 = vadd.f32 %v2148_v6, %v6390_v58  ;;  %v2155_v14 = vadd.f32 %v2154_v1, %v6398_v31  ;;  %v2139_v52 = vadd.f32 %v2138_v55, %v2137_v19 }
 0x29e   : > { %v2145_v7 = vadd.f32 %v2144_v21, %v2143_v49  ;;  %v2164_v2 = vmul.f32 %v8692_v27, %v8723_v22  ;;  %v2165_v36 = vmul.f32 %v8693_v32, %v8723_v22  ;;  %v6424_v17 = vadd.f32 %v2104_v28, %v2103_v62 }
 0x29f   : > { %v6426_v5 = vadd.f32 %v2110_v12, %v2109_v61  ;;  %v2166_v18 = vmul.f32 %v8695_v29, %v8723_v22  ;;  %v2167_v58 = vmul.f32 %v8696_v57, %v8723_v22  ;;  %v6432_v44 = vadd.f32 %v2116_v43, %v2115_v45 }
 0x2a0   : > { %8724 = vst [vmem:[#allocation92_spill] sm:$0xff] %v6424_v17  ;;  %v2134_v31 = vrot.slane %v2133_v38, 1  ;;  %v2150_v50 = vrot.slane %v2149_v23, 2  ;;  %v2156_v41 = vrot.slane %v2155_v14, 2  ;;  %v6434_v9 = vadd.f32 %v2122_v60, %v2121_v25 }
 0x2a1   : > { %8725 = vst [vmem:[#allocation121_spill] sm:$0xff] %v6426_v5  ;;  %8726 = vst [vmem:[#allocation122_spill] sm:$0xff] %v6432_v44  ;;  %v6436_v35 = vadd.f32 %v2128_v13, %v2127_v3  ;;  %v2168_v11 = vmul.f32 %v8697_v37, %v8723_v22  ;;  %v2169_v56 = vmul.f32 %v8698_v63, %v8723_v22  ;;  %v2140_v19 = vrot.slane %v2139_v52, 1 }
 0x2a2   : > { %8727 = vst [vmem:[#allocation123_spill] sm:$0xff] %v6434_v9  ;;  %v2146_v49 = vrot.slane %v2145_v7, 1  ;;  %v2182_v62 = vrot.slane %v2164_v2, 4  ;;  %v2188_v61 = vrot.slane %v2165_v36, 4  ;;  %v2170_v0 = vmul.f32 %v8703_v53, %v8723_v22 }
 0x2a3   : > { %8728 = vst [vmem:[#allocation124_spill] sm:$0xff] %v6436_v35  ;;  %v2171_v46 = vmul.f32 %v8704_v34, %v8723_v22  ;;  %v2194_v45 = vrot.slane %v2166_v18, 4  ;;  %v2200_v54 = vrot.slane %v2167_v58, 4  ;;  %v6446_v25 = vadd.f32 %v2134_v31, %v2133_v38 }
 0x2a4   : > { %v2151_v3 = vadd.f32 %v2150_v50, %v2149_v23  ;;  %v2157_v55 = vadd.f32 %v2156_v41, %v2155_v14  ;;  %v2183_v21 = vadd.f32 %v2182_v62, %v2164_v2  ;;  %v2189_v28 = vadd.f32 %v2188_v61, %v2165_v36 }
 0x2a5   : > { %8729 = vst [vmem:[#allocation125_spill] sm:$0xff] %v6446_v25  ;;  %v2195_v12 = vadd.f32 %v2194_v45, %v2166_v18  ;;  %v2206_v6 = vrot.slane %v2168_v11, 4  ;;  %v2212_v1 = vrot.slane %v2169_v56, 4  ;;  %v6448_v43 = vadd.f32 %v2140_v19, %v2139_v52 }
 0x2a6   : > { %v6450_v60 = vadd.f32 %v2146_v49, %v2145_v7  ;;  %v2184_v13 = vrot.slane %v2183_v21, 2  ;;  %v2201_v35 = vadd.f32 %v2200_v54, %v2167_v58  ;;  %v2172_v9 = vmul.f32 %v8707_v48, %v8723_v22 }
 0x2a7   : > { %8730 = vst [vmem:[#allocation126_spill] sm:$0xff] %v6448_v43  ;;  %v2173_v38 = vmul.f32 %v8708_v8, %v8723_v22  ;;  %v2218_v31 = vrot.slane %v2170_v0, 4  ;;  %v2224_v23 = vrot.slane %v2171_v46, 4  ;;  %v2152_v14 = vrot.slane %v2151_v3, 1 }
 0x2a8   : > { %8731 = vst [vmem:[#allocation127_spill] sm:$0xff] %v6450_v60  ;;  %v2158_v2 = vrot.slane %v2157_v55, 1  ;;  %v2174_v36 = vmul.f32 %v8709_v39, %v8723_v22  ;;  %v2175_v52 = vmul.f32 %v8710_v10, %v8723_v22  ;;  %v2190_v7 = vrot.slane %v2189_v28, 2 }
 0x2a9   : > { %v2196_v18 = vrot.slane %v2195_v12, 2  ;;  %v2207_v50 = vadd.f32 %v2206_v6, %v2168_v11  ;;  %v2213_v58 = vadd.f32 %v2212_v1, %v2169_v56  ;;  %v2176_v41 = vmul.f32 %v8711_v16, %v8723_v22  ;;  %v8734_v6 = vld [vmem:[#allocation108_spill] sm:$0xff] }
 0x2aa   : > { %v2177_v19 = vmul.f32 %v8712_v30, %v8723_v22  ;;  %v2185_v49 = vadd.f32 %v2184_v13, %v2183_v21  ;;  %v2202_v62 = vrot.slane %v2201_v35, 2  ;;  %v2178_v61 = vmul.f32 %v5798_v24, %v8723_v22 }
 0x2ab   : > { %v2179_v45 = vmul.f32 %v5803_v40, %v8723_v22  ;;  %v2219_v54 = vadd.f32 %v2218_v31, %v2170_v0  ;;  %v2225_v60 = vadd.f32 %v2224_v23, %v2171_v46  ;;  %v6468_v43 = vadd.f32 %v2152_v14, %v2151_v3 }
 0x2ac   : > { %v6470_v11 = vadd.f32 %v2158_v2, %v2157_v55  ;;  %v6474_v56 = vmul.f32 %v5808_v4, %v8723_v22  ;;  %v6478_v21 = vmul.f32 %v8734_v6, %v8723_v22  ;;  %v2191_v1 = vadd.f32 %v2190_v7, %v2189_v28 }
 0x2ad   : > { %8732 = vst [vmem:[#allocation128_spill] sm:$0xff] %v6468_v43  ;;  %v2197_v13 = vadd.f32 %v2196_v18, %v2195_v12  ;;  %v2208_v25 = vrot.slane %v2207_v50, 2  ;;  %v2214_v44 = vrot.slane %v2213_v58, 2  ;;  %v2186_v5 = vrot.slane %v2185_v49, 1 }
 0x2ae   : > { %8733 = vst [vmem:[#allocation129_spill] sm:$0xff] %v6470_v11  ;;  %v2203_v17 = vadd.f32 %v2202_v62, %v2201_v35  ;;  %v2230_v0 = vrot.slane %v2172_v9, 4  ;;  %v2236_v46 = vrot.slane %v2173_v38, 4  ;;  %v2220_v3 = vrot.slane %v2219_v54, 2 }
 0x2af   : > { %v2226_v31 = vrot.slane %v2225_v60, 2  ;;  %v2242_v55 = vrot.slane %v2174_v36, 4  ;;  %v2248_v23 = vrot.slane %v2175_v52, 4  ;;  %v2254_v11 = vrot.slane %v2176_v41, 4 }
 0x2b0   : > { %v2231_v14 = vadd.f32 %v2230_v0, %v2172_v9  ;;  %v2237_v2 = vadd.f32 %v2236_v46, %v2173_v38  ;;  %v2260_v43 = vrot.slane %v2177_v19, 4  ;;  %v2192_v51 = vrot.slane %v2191_v1, 1 }
 0x2b1   : > { %v2209_v42 = vadd.f32 %v2208_v25, %v2207_v50  ;;  %v2243_v22 = vadd.f32 %v2242_v55, %v2174_v36  ;;  %v2249_v15 = vadd.f32 %v2248_v23, %v2175_v52  ;;  %v2215_v28 = vadd.f32 %v2214_v44, %v2213_v58 }
 0x2b2   : > { %v2232_v12 = vrot.slane %v2231_v14, 2  ;;  %v2255_v7 = vadd.f32 %v2254_v11, %v2176_v41  ;;  %v2261_v18 = vadd.f32 %v2260_v43, %v2177_v19  ;;  %v2221_v59 = vadd.f32 %v2220_v3, %v2219_v54 }
 0x2b3   : > { %v2227_v35 = vadd.f32 %v2226_v31, %v2225_v60  ;;  %v2266_v62 = vrot.slane %v2178_v61, 4  ;;  %v2272_v33 = vrot.slane %v2179_v45, 4  ;;  %v2198_v26 = vrot.slane %v2197_v13, 1 }
 0x2b4   : > { %v2204_v20 = vrot.slane %v2203_v17, 1  ;;  %v2238_v47 = vrot.slane %v2237_v2, 2  ;;  %v2244_v6 = vrot.slane %v2243_v22, 2  ;;  %v2250_v9 = vrot.slane %v2249_v15, 2 }
 0x2b5   : > { %v2256_v38 = vrot.slane %v2255_v7, 2  ;;  %v2262_v0 = vrot.slane %v2261_v18, 2  ;;  %v2267_v46 = vadd.f32 %v2266_v62, %v2178_v61  ;;  %v6480_v4 = vadd.f32 %v2186_v5, %v2185_v49 }
 0x2b6   : > { %v6482_v25 = vadd.f32 %v2192_v51, %v2191_v1  ;;  %v2233_v44 = vadd.f32 %v2232_v12, %v2231_v14  ;;  %v2273_v36 = vadd.f32 %v2272_v33, %v2179_v45  ;;  %v2210_v52 = vrot.slane %v2209_v42, 1  ;;  %v6490_v45 = vpop.permute.xlu1 %2291 }
 0x2b7   : > { %v2216_v43 = vrot.slane %v2215_v28, 1  ;;  %v2222_v50 = vrot.slane %v2221_v59, 1  ;;  %v2228_v60 = vrot.slane %v2227_v35, 1  ;;  %v6484_v58 = vadd.f32 %v2198_v26, %v2197_v13 }
 0x2b8   : > { %v6486_v41 = vadd.f32 %v2204_v20, %v2203_v17  ;;  %v2239_v19 = vadd.f32 %v2238_v47, %v2237_v2  ;;  %v2245_v54 = vadd.f32 %v2244_v6, %v2243_v22  ;;  %v2251_v11 = vadd.f32 %v2250_v9, %v2249_v15 }
 0x2b9   : > { %v2257_v3 = vadd.f32 %v2256_v38, %v2255_v7  ;;  %v2263_v31 = vadd.f32 %v2262_v0, %v2261_v18  ;;  %v2268_v61 = vrot.slane %v2267_v46, 2  ;;  %v2234_v5 = vrot.slane %v2233_v44, 1 }
 0x2ba   : > { %v2274_v49 = vrot.slane %v2273_v36, 2  ;;  %v2278_v51 = vrot.slane %v6474_v56, 4  ;;  %v2284_v33 = vrot.slane %v6478_v21, 4  ;;  %v6492_v1 = vadd.f32 %v2210_v52, %v2209_v42 }
 0x2bb   : > { %v6494_v26 = vadd.f32 %v2216_v43, %v2215_v28  ;;  %v6496_v20 = vadd.f32 %v2222_v50, %v2221_v59  ;;  %v6498_v47 = vadd.f32 %v2228_v60, %v2227_v35  ;;  %v2240_v15 = vrot.slane %v2239_v19, 1 }
 0x2bc   : > { %v2246_v17 = vrot.slane %v2245_v54, 1  ;;  %v2279_v6 = vadd.f32 %v2278_v51, %v6474_v56  ;;  %v2285_v13 = vadd.f32 %v2284_v33, %v6478_v21  ;;  %v2252_v55 = vrot.slane %v2251_v11, 1 }
 0x2bd   : > { %v2258_v23 = vrot.slane %v2257_v3, 1  ;;  %v2264_v14 = vrot.slane %v2263_v31, 1  ;;  %v2269_v2 = vadd.f32 %v2268_v61, %v2267_v46  ;;  %v6502_v22 = vadd.f32 %v2234_v5, %v2233_v44 }
 0x2be   : > { %v2275_v42 = vadd.f32 %v2274_v49, %v2273_v36  ;;  %v2294_v28 = vmul.f32 %v8692_v27, %v6490_v45  ;;  %v2295_v59 = vmul.f32 %v8693_v32, %v6490_v45  ;;  %v2296_v12 = vmul.f32 %v8695_v29, %v6490_v45 }
 0x2bf   : > { %v2297_v56 = vmul.f32 %v8696_v57, %v6490_v45  ;;  %v2298_v21 = vmul.f32 %v8697_v37, %v6490_v45  ;;  %v2299_v7 = vmul.f32 %v8698_v63, %v6490_v45  ;;  %v6516_v18 = vadd.f32 %v2240_v15, %v2239_v19 }
 0x2c0   : > { %v6518_v35 = vadd.f32 %v2246_v17, %v2245_v54  ;;  %v2280_v27 = vrot.slane %v2279_v6, 2  ;;  %v2286_v62 = vrot.slane %v2285_v13, 2  ;;  %v6520_v9 = vadd.f32 %v2252_v55, %v2251_v11 }
 0x2c1   : > { %v6522_v32 = vadd.f32 %v2258_v23, %v2257_v3  ;;  %v6524_v29 = vadd.f32 %v2264_v14, %v2263_v31  ;;  %v2270_v38 = vrot.slane %v2269_v2, 1  ;;  %v2276_v57 = vrot.slane %v2275_v42, 1 }
 0x2c2   : > { %v2300_v37 = vmul.f32 %v8703_v53, %v6490_v45  ;;  %v2312_v0 = vrot.slane %v2294_v28, 4  ;;  %v2318_v46 = vrot.slane %v2295_v59, 4  ;;  %v2324_v63 = vrot.slane %v2296_v12, 4 }
 0x2c3   : > { %v2330_v44 = vrot.slane %v2297_v56, 4  ;;  %v2336_v36 = vrot.slane %v2298_v21, 4  ;;  %v2342_v52 = vrot.slane %v2299_v7, 4  ;;  %v2281_v43 = vadd.f32 %v2280_v27, %v2279_v6 }
 0x2c4   : > { %v2287_v50 = vadd.f32 %v2286_v62, %v2285_v13  ;;  %v2301_v60 = vmul.f32 %v8704_v34, %v6490_v45  ;;  %v2313_v19 = vadd.f32 %v2312_v0, %v2294_v28  ;;  %v2319_v54 = vadd.f32 %v2318_v46, %v2295_v59 }
 0x2c5   : > { %v2325_v11 = vadd.f32 %v2324_v63, %v2296_v12  ;;  %v2331_v3 = vadd.f32 %v2330_v44, %v2297_v56  ;;  %v2337_v31 = vadd.f32 %v2336_v36, %v2298_v21  ;;  %v6530_v61 = vadd.f32 %v2270_v38, %v2269_v2  ;;  %v8735_v12 = vld [vmem:[#allocation107_spill] sm:$0xff]  ;;  %v8736_v21 = vld [vmem:[#allocation108_spill] sm:$0xff] }
 0x2c6   : > { %v6532_v5 = vadd.f32 %v2276_v57, %v2275_v42  ;;  %v2314_v53 = vrot.slane %v2313_v19, 2  ;;  %v2343_v49 = vadd.f32 %v2342_v52, %v2299_v7  ;;  %v2302_v51 = vmul.f32 %v8707_v48, %v6490_v45 }
 0x2c7   : > { %v2303_v33 = vmul.f32 %v8708_v8, %v6490_v45  ;;  %v2304_v34 = vmul.f32 %v8709_v39, %v6490_v45  ;;  %v2305_v15 = vmul.f32 %v8710_v10, %v6490_v45  ;;  %v2282_v17 = vrot.slane %v2281_v43, 1 }
 0x2c8   : > { %v2288_v6 = vrot.slane %v2287_v50, 1  ;;  %v2348_v13 = vrot.slane %v2300_v37, 4  ;;  %v2354_v55 = vrot.slane %v2301_v60, 4  ;;  %v2320_v23 = vrot.slane %v2319_v54, 2 }
 0x2c9   : > { %v2326_v14 = vrot.slane %v2325_v11, 2  ;;  %v2332_v2 = vrot.slane %v2331_v3, 2  ;;  %v2338_v42 = vrot.slane %v2337_v31, 2  ;;  %v2306_v48 = vmul.f32 %v8711_v16, %v6490_v45 }
 0x2ca   : > { %v2307_v8 = vmul.f32 %v8712_v30, %v6490_v45  ;;  %v2315_v28 = vadd.f32 %v2314_v53, %v2313_v19  ;;  %v2344_v59 = vrot.slane %v2343_v49, 2  ;;  %v2308_v39 = vmul.f32 %v5798_v24, %v6490_v45 }
 0x2cb   : > { %v2309_v10 = vmul.f32 %v5803_v40, %v6490_v45  ;;  %v6552_v56 = vmul.f32 %v8735_v12, %v6490_v45  ;;  %v6556_v7 = vmul.f32 %v8736_v21, %v6490_v45  ;;  %v6558_v16 = vadd.f32 %v2282_v17, %v2281_v43 }
 0x2cc   : > { %v6560_v27 = vadd.f32 %v2288_v6, %v2287_v50  ;;  %v2349_v30 = vadd.f32 %v2348_v13, %v2300_v37  ;;  %v2355_v62 = vadd.f32 %v2354_v55, %v2301_v60  ;;  %v2321_v38 = vadd.f32 %v2320_v23, %v2319_v54 }
 0x2cd   : > { %8737 = vst [vmem:[#allocation107_spill] sm:$0xff] %v6558_v16  ;;  %v2327_v57 = vadd.f32 %v2326_v14, %v2325_v11  ;;  %v2333_v24 = vadd.f32 %v2332_v2, %v2331_v3  ;;  %v2339_v0 = vadd.f32 %v2338_v42, %v2337_v31  ;;  %v2316_v46 = vrot.slane %v2315_v28, 1 }
 0x2ce   : > { %8738 = vst [vmem:[#allocation108_spill] sm:$0xff] %v6560_v27  ;;  %v2345_v40 = vadd.f32 %v2344_v59, %v2343_v49  ;;  %v2360_v63 = vrot.slane %v2302_v51, 4  ;;  %v2366_v44 = vrot.slane %v2303_v33, 4  ;;  %v2372_v36 = vrot.slane %v2304_v34, 4 }
 0x2cf   : > { %v2378_v52 = vrot.slane %v2305_v15, 4  ;;  %v2384_v19 = vrot.slane %v2306_v48, 4  ;;  %v2390_v53 = vrot.slane %v2307_v8, 4  ;;  %v2350_v45 = vrot.slane %v2349_v30, 2 }
 0x2d0   : > { %v2356_v12 = vrot.slane %v2355_v62, 2  ;;  %v2361_v43 = vadd.f32 %v2360_v63, %v2302_v51  ;;  %v2367_v17 = vadd.f32 %v2366_v44, %v2303_v33  ;;  %v2373_v50 = vadd.f32 %v2372_v36, %v2304_v34 }
 0x2d1   : > { %v2379_v6 = vadd.f32 %v2378_v52, %v2305_v15  ;;  %v2385_v37 = vadd.f32 %v2384_v19, %v2306_v48  ;;  %v2391_v60 = vadd.f32 %v2390_v53, %v2307_v8  ;;  %v2322_v54 = vrot.slane %v2321_v38, 1 }
 0x2d2   : > { %v2362_v11 = vrot.slane %v2361_v43, 2  ;;  %v2396_v3 = vrot.slane %v2308_v39, 4  ;;  %v2402_v31 = vrot.slane %v2309_v10, 4  ;;  %v2368_v13 = vrot.slane %v2367_v17, 2 }
 0x2d3   : > { %v2374_v49 = vrot.slane %v2373_v50, 2  ;;  %v2380_v55 = vrot.slane %v2379_v6, 2  ;;  %v2386_v23 = vrot.slane %v2385_v37, 2  ;;  %v2328_v14 = vrot.slane %v2327_v57, 1 }
 0x2d4   : > { %v2392_v2 = vrot.slane %v2391_v60, 2  ;;  %v2397_v42 = vadd.f32 %v2396_v3, %v2308_v39  ;;  %v2403_v59 = vadd.f32 %v2402_v31, %v2309_v10  ;;  %v2334_v21 = vrot.slane %v2333_v24, 1 }
 0x2d5   : > { %v2340_v27 = vrot.slane %v2339_v0, 1  ;;  %v2351_v51 = vadd.f32 %v2350_v45, %v2349_v30  ;;  %v2357_v33 = vadd.f32 %v2356_v12, %v2355_v62  ;;  %v2346_v34 = vrot.slane %v2345_v40, 1 }
 0x2d6   : > { %v2363_v15 = vadd.f32 %v2362_v11, %v2361_v43  ;;  %v2398_v48 = vrot.slane %v2397_v42, 2  ;;  %v2404_v8 = vrot.slane %v2403_v59, 2  ;;  %v2369_v63 = vadd.f32 %v2368_v13, %v2367_v17 }
 0x2d7   : > { %v2375_v44 = vadd.f32 %v2374_v49, %v2373_v50  ;;  %v2381_v36 = vadd.f32 %v2380_v55, %v2379_v6  ;;  %v2387_v52 = vadd.f32 %v2386_v23, %v2385_v37  ;;  %v6562_v19 = vadd.f32 %v2316_v46, %v2315_v28 }
 0x2d8   : > { %v6564_v53 = vadd.f32 %v2322_v54, %v2321_v38  ;;  %v6566_v16 = vadd.f32 %v2328_v14, %v2327_v57  ;;  %v2393_v39 = vadd.f32 %v2392_v2, %v2391_v60  ;;  %v6568_v10 = vadd.f32 %v2334_v21, %v2333_v24 }
 0x2d9   : > { %8739 = vst [vmem:[#allocation130_spill] sm:$0xff] %v6562_v19  ;;  %v2352_v3 = vrot.slane %v2351_v51, 1  ;;  %v2358_v30 = vrot.slane %v2357_v33, 1  ;;  %v2399_v62 = vadd.f32 %v2398_v48, %v2397_v42  ;;  %v2364_v45 = vrot.slane %v2363_v15, 1  ;;  %v8753_v42 = vld [vmem:[#allocation4_spill] sm:$0xff]  ;;  %v8757_v48 = vld [vmem:[#allocation7_spill] sm:$0xff] }
 0x2da   : > { %8740 = vst [vmem:[#allocation131_spill] sm:$0xff] %v6564_v53  ;;  %8741 = vst [vmem:[#allocation132_spill] sm:$0xff] %v6566_v16  ;;  %v2405_v12 = vadd.f32 %v2404_v8, %v2403_v59  ;;  %v2408_v43 = vrot.slane %v6552_v56, 4  ;;  %v2414_v17 = vrot.slane %v6556_v7, 4  ;;  %v2370_v50 = vrot.slane %v2369_v63, 1 }
 0x2db   : > { %8742 = vst [vmem:[#allocation133_spill] sm:$0xff] %v6568_v10  ;;  %v2376_v6 = vrot.slane %v2375_v44, 1  ;;  %v2382_v28 = vrot.slane %v2381_v36, 1  ;;  %v2388_v46 = vrot.slane %v2387_v52, 1  ;;  %v6572_v38 = vadd.f32 %v2340_v27, %v2339_v0 }
 0x2dc   : > { %v2394_v57 = vrot.slane %v2393_v39, 1  ;;  %v2409_v37 = vadd.f32 %v2408_v43, %v6552_v56  ;;  %v2415_v24 = vadd.f32 %v2414_v17, %v6556_v7  ;;  %v6576_v60 = vadd.f32 %v2346_v34, %v2345_v40  ;;  %v8756_v34 = vld [vmem:[#allocation6_spill] sm:$0xff] }
 0x2dd   : > { %8743 = vst [vmem:[#allocation134_spill] sm:$0xff] %v6572_v38  ;;  %v6578_v54 = vadd.f32 %v2352_v3, %v2351_v51  ;;  %v6580_v11 = vadd.f32 %v2358_v30, %v2357_v33  ;;  %v2400_v31 = vrot.slane %v2399_v62, 1  ;;  %v6582_v13 = vadd.f32 %v2364_v45, %v2363_v15  ;;  %v8755_v51 = vld [vmem:[#allocation5_spill] sm:$0xff]  ;;  %v8762_v30 = vld [vmem:[#allocation11_spill] sm:$0xff] }
 0x2de   : > { %8744 = vst [vmem:[#allocation135_spill] sm:$0xff] %v6576_v60  ;;  %v2406_v49 = vrot.slane %v2405_v12, 1  ;;  %v2410_v55 = vrot.slane %v2409_v37, 2  ;;  %v2416_v23 = vrot.slane %v2415_v24, 2  ;;  %v6584_v14 = vadd.f32 %v2370_v50, %v2369_v63  ;;  %v8764_v45 = vld [vmem:[#allocation13_spill] sm:$0xff]  ;;  %v8766_v50 = vld [vmem:[#allocation15_spill] sm:$0xff] }
 0x2df   : > { %8745 = vst [vmem:[#allocation136_spill] sm:$0xff] %v6578_v54  ;;  %8746 = vst [vmem:[#allocation137_spill] sm:$0xff] %v6580_v11  ;;  %v6586_v27 = vadd.f32 %v2376_v6, %v2375_v44  ;;  %v6588_v0 = vadd.f32 %v2382_v28, %v2381_v36  ;;  %v6590_v56 = vadd.f32 %v2388_v46, %v2387_v52  ;;  %v8759_v44 = vld [vmem:[#allocation8_spill] sm:$0xff]  ;;  %v8760_v52 = vld [vmem:[#allocation9_spill] sm:$0xff]  ;;  %vm8795_vm2 = vcmp.gt.f32.partialorder %v8753_v42, 0.0 }
 0x2e0   : > { %8747 = vst [vmem:[#allocation138_spill] sm:$0xff] %v6582_v13  ;;  %8748 = vst [vmem:[#allocation139_spill] sm:$0xff] %v6584_v14  ;;  %v6592_v7 = vadd.f32 %v2394_v57, %v2393_v39  ;;  %v2411_v40 = vadd.f32 %v2410_v55, %v2409_v37  ;;  %v2417_v2 = vadd.f32 %v2416_v23, %v2415_v24  ;;  %v8767_v6 = vld [vmem:[#allocation16_spill] sm:$0xff]  ;;  %v8768_v28 = vld [vmem:[#allocation17_spill] sm:$0xff]  ;;  %vm8797_vm6 = vcmp.gt.f32.partialorder %v8755_v51, 0.0 }
 0x2e1   : > { %8749 = vst [vmem:[#allocation140_spill] sm:$0xff] %v6586_v27  ;;  %8750 = vst [vmem:[#allocation141_spill] sm:$0xff] %v6588_v0  ;;  %v2420_v59 = vsub.f32 %v6480_v4, %v8753_v42  ;;  %v6596_v21 = vadd.f32 %v2400_v31, %v2399_v62  ;;  %v2421_v33 = vsub.f32 %v6482_v25, %v8755_v51  ;;  %v8761_v4 = vld [vmem:[#allocation10_spill] sm:$0xff]  ;;  %v8763_v62 = vld [vmem:[#allocation12_spill] sm:$0xff]  ;;  %vm8799_vm1 = vcmp.gt.f32.partialorder %v8756_v34, 0.0 }
 0x2e2   : > { %8751 = vst [vmem:[#allocation142_spill] sm:$0xff] %v6590_v56  ;;  %8752 = vst [vmem:[#allocation143_spill] sm:$0xff] %v6592_v7  ;;  %v2422_v15 = vsub.f32 %v6484_v58, %v8756_v34  ;;  %v2423_v8 = vsub.f32 %v6486_v41, %v8757_v48  ;;  %v6604_v63 = vadd.f32 %v2406_v49, %v2405_v12  ;;  %v8765_v12 = vld [vmem:[#allocation14_spill] sm:$0xff]  ;;  %v2412_v17 = vrot.slane %v2411_v40, 1  ;;  %v8770_v57 = vld [vmem:[#allocation19_spill] sm:$0xff] }
 0x2e3   : > { %8754 = vst [vmem:[#allocation144_spill] sm:$0xff] %v6596_v21  ;;  %v2424_v36 = vsub.f32 %v6492_v1, %v8759_v44  ;;  %v2425_v39 = vsub.f32 %v6494_v26, %v8760_v52  ;;  %v2426_v3 = vsub.f32 %v6496_v20, %v8761_v4  ;;  %v2427_v25 = vsub.f32 %v6498_v47, %v8762_v30  ;;  %v8769_v46 = vld [vmem:[#allocation18_spill] sm:$0xff]  ;;  %v8771_v37 = vld [vmem:[#allocation20_spill] sm:$0xff]  ;;  %v8772_v24 = vld [vmem:[#allocation107_spill] sm:$0xff] }
 0x2e4   : > { %8758 = vst [vmem:[#allocation145_spill] sm:$0xff] %v6604_v63  ;;  %v2428_v58 = vsub.f32 %v6502_v22, %v8763_v62  ;;  %v2429_v41 = vsub.f32 %v6516_v18, %v8764_v45  ;;  %v2430_v43 = vsub.f32 %v6518_v35, %v8765_v12  ;;  %v2418_v1 = vrot.slane %v2417_v2, 1  ;;  %v8773_v31 = vld [vmem:[#allocation21_spill] sm:$0xff]  ;;  %v8774_v49 = vld [vmem:[#allocation108_spill] sm:$0xff] }
 0x2e5   : > { %v2431_v26 = vsub.f32 %v6520_v9, %v8766_v50  ;;  %v2432_v20 = vsub.f32 %v6522_v32, %v8767_v6  ;;  %v2433_v47 = vsub.f32 %v6524_v29, %v8768_v28  ;;  %v2434_v22 = vsub.f32 %v6530_v61, %v8769_v46 }
 0x2e6   : > { %v2435_v18 = vsub.f32 %v6532_v5, %v8770_v57  ;;  %v2436_v35 = vsub.f32 %v8772_v24, %v8771_v37  ;;  %v2437_v55 = vsub.f32 %v8774_v49, %v8773_v31  ;;  %v8775_v9 = vand.u32 2147483647, %v8753_v42 }
 0x2e7   : > { %v8776_v32 = vand.u32 2147483647, %v8755_v51  ;;  %v8777_v29 = vand.u32 2147483647, %v8756_v34  ;;  %v8778_v61 = vand.u32 2147483647, %v8757_v48  ;;  %v6648_v14 = vadd.f32 %v2412_v17, %v2411_v40 }
 0x2e8   : > { %v2456_v23 = vrot.slane %v8775_v9, 2  ;;  %v8779_v5 = vand.u32 2147483647, %v8759_v44  ;;  %v8780_v24 = vand.u32 2147483647, %v8760_v52  ;;  %v6650_v9 = vadd.f32 %v2418_v1, %v2417_v2 }
 0x2e9   : > { %v2457_v63 = vrot.slane %v8776_v32, 2  ;;  %v2458_v21 = vrot.slane %v8777_v29, 2  ;;  %v2459_v7 = vrot.slane %v8778_v61, 2  ;;  %v8781_v49 = vand.u32 2147483647, %v8761_v4  ;;  %8782 = vst [vmem:[#allocation107_spill] sm:$0xff] %v6648_v14 }
 0x2ea   : > { %v2460_v56 = vrot.slane %v8779_v5, 2  ;;  %v2461_v0 = vrot.slane %v8780_v24, 2  ;;  %8783 = vst [vmem:[#allocation108_spill] sm:$0xff] %v6650_v9  ;;  %v8784_v32 = vand.u32 2147483647, %v8762_v30  ;;  %v2492_v16 = vmul.f32 %v2456_v23, %v2420_v59  ;;  %v8841_v23 = vld [vmem:[#allocation130_spill] sm:$0xff] }
 0x2eb   : > { %v2462_v27 = vrot.slane %v8781_v49, 2  ;;  %v8785_v29 = vand.u32 2147483647, %v8763_v62  ;;  %v8786_v61 = vand.u32 2147483647, %v8764_v45  ;;  %v2494_v53 = vmul.f32 %v2458_v21, %v2422_v15 }
 0x2ec   : > { %v2463_v13 = vrot.slane %v8784_v32, 2  ;;  %v8787_v5 = vand.u32 2147483647, %v8765_v12  ;;  %v8788_v24 = vand.u32 2147483647, %v8766_v50  ;;  %v2495_v19 = vmul.f32 %v2459_v7, %v2423_v8 }
 0x2ed   : > { %v2464_v11 = vrot.slane %v8785_v29, 2  ;;  %v2465_v54 = vrot.slane %v8786_v61, 2  ;;  %v8789_v40 = vand.u32 2147483647, %v8767_v6  ;;  %v8790_v2 = vand.u32 2147483647, %v8768_v28 }
 0x2ee   : > { %v2466_v60 = vrot.slane %v8787_v5, 2  ;;  %v2467_v38 = vrot.slane %v8788_v24, 2  ;;  %v8791_v49 = vand.u32 2147483647, %v8769_v46  ;;  %v8792_v29 = vand.u32 2147483647, %v8770_v57 }
 0x2ef   : > { %v2468_v17 = vrot.slane %v8789_v40, 2  ;;  %v2469_v1 = vrot.slane %v8790_v2, 2  ;;  %v8793_v61 = vand.u32 2147483647, %v8771_v37  ;;  %v8794_v5 = vand.u32 2147483647, %v8773_v31 }
 0x2f0   : > { %v2470_v32 = vrot.slane %v8791_v49, 2  ;;  %v2471_v9 = vrot.slane %v8792_v29, 2  ;;  %v2493_v24 = vmul.f32 %v2457_v63, %v2421_v33  ;;  %v2496_v40 = vmul.f32 %v2460_v56, %v2424_v36 }
 0x2f1   : > { %v2472_v14 = vrot.slane %v8793_v61, 2  ;;  %v2473_v10 = vrot.slane %v8794_v5, 2  ;;  %v2497_v6 = vmul.f32 %v2461_v0, %v2425_v39  ;;  %v2498_v28 = vmul.f32 %v2462_v27, %v2426_v3 }
 0x2f2   : > { %v2499_v2 = vmul.f32 %v2463_v13, %v2427_v25  ;;  %v2500_v50 = vmul.f32 %v2464_v11, %v2428_v58  ;;  %v2501_v46 = vmul.f32 %v2465_v54, %v2429_v41  ;;  %v2502_v49 = vmul.f32 %v2466_v60, %v2430_v43 }
 0x2f3   : > { %v2503_v12 = vmul.f32 %v2467_v38, %v2431_v26  ;;  %v2504_v57 = vmul.f32 %v2468_v17, %v2432_v20  ;;  %v2505_v29 = vmul.f32 %v2469_v1, %v2433_v47  ;;  %v2506_v45 = vmul.f32 %v2470_v32, %v2434_v22  ;;  %v8842_v17 = vld [vmem:[#allocation131_spill] sm:$0xff]  ;;  %v8843_v32 = vld [vmem:[#allocation132_spill] sm:$0xff] }
 0x2f4   : > { %v2507_v37 = vmul.f32 %v2471_v9, %v2435_v18  ;;  %v2508_v61 = vmul.f32 %v2472_v14, %v2436_v35  ;;  %v2509_v62 = vmul.f32 %v2473_v10, %v2437_v55  ;;  %v2528_v31 = vrot.slane %v2492_v16, 6 }
 0x2f5   : > { %v2529_v5 = vrot.slane %v2493_v24, 6  ;;  %v2530_v59 = vrot.slane %v2494_v53, 6  ;;  %v2531_v33 = vrot.slane %v2495_v19, 6  ;;  %v2532_v21 = vrot.slane %v2496_v40, 6  ;;  %v8844_v40 = vld [vmem:[#allocation133_spill] sm:$0xff] }
 0x2f6   : > { %v2533_v7 = vrot.slane %v2497_v6, 6  ;;  %v2534_v56 = vrot.slane %v2498_v28, 6  ;;  %v2535_v0 = vrot.slane %v2499_v2, 6  ;;  %v2536_v27 = vrot.slane %v2500_v50, 6  ;;  %v8820_v50 = vld [vmem:[#allocation15_spill] sm:$0xff]  ;;  %v8823_v6 = vld [vmem:[#allocation16_spill] sm:$0xff] }
 0x2f7   : > { %v2537_v13 = vrot.slane %v2501_v46, 6  ;;  %v2538_v11 = vrot.slane %v2502_v49, 6  ;;  %v2539_v54 = vrot.slane %v2503_v12, 6  ;;  %v2540_v60 = vrot.slane %v2504_v57, 6  ;;  %v8817_v12 = vld [vmem:[#allocation14_spill] sm:$0xff]  ;;  %v8826_v28 = vld [vmem:[#allocation17_spill] sm:$0xff] }
 0x2f8   : > { %v2541_v38 = vrot.slane %v2505_v29, 6  ;;  %v2542_v15 = vrot.slane %v2506_v45, 6  ;;  %v2543_v8 = vrot.slane %v2507_v37, 6  ;;  %v2544_v63 = vrot.slane %v2508_v61, 6  ;;  %v8814_v45 = vld [vmem:[#allocation13_spill] sm:$0xff]  ;;  %v8829_v46 = vld [vmem:[#allocation18_spill] sm:$0xff] }
 0x2f9   : > { %v2545_v36 = vrot.slane %v2509_v62, 6  ;;  %v6676_v16 = vsel %vm8795_vm2, %v2528_v31, 0.0  ;;  %v6680_v19 = vsel %vm8797_vm6, %v2529_v5, 0.0  ;;  %v6684_v53 = vsel %vm8799_vm1, %v2530_v59, 0.0  ;;  %v8811_v62 = vld [vmem:[#allocation12_spill] sm:$0xff]  ;;  %v8832_v57 = vld [vmem:[#allocation19_spill] sm:$0xff] }
 0x2fa   : > { %8796 = vst [vmem:[#allocation146_spill] sm:$0xff] %v6676_v16  ;;  %8798 = vst [vmem:[#allocation147_spill] sm:$0xff] %v6680_v19  ;;  %vm8801_vm7 = vcmp.gt.f32.partialorder %v8757_v48, 0.0  ;;  %vm8803_vm12 = vcmp.gt.f32.partialorder %v8759_v44, 0.0  ;;  %vm8805_vm10 = vcmp.gt.f32.partialorder %v8760_v52, 0.0  ;;  %vm8807_vm4 = vcmp.gt.f32.partialorder %v8761_v4, 0.0 }
 0x2fb   : > { %8800 = vst [vmem:[#allocation148_spill] sm:$0xff] %v6684_v53  ;;  %v6688_v10 = vsel %vm8801_vm7, %v2531_v33, 0.0  ;;  %v6692_v14 = vsel %vm8803_vm12, %v2532_v21, 0.0  ;;  %v6696_v39 = vsel %vm8805_vm10, %v2533_v7, 0.0  ;;  %v6700_v3 = vsel %vm8807_vm4, %v2534_v56, 0.0  ;;  %v8835_v37 = vld [vmem:[#allocation20_spill] sm:$0xff] }
 0x2fc   : > { %8802 = vst [vmem:[#allocation149_spill] sm:$0xff] %v6688_v10  ;;  %8804 = vst [vmem:[#allocation150_spill] sm:$0xff] %v6692_v14  ;;  %vm8809_vm9 = vcmp.gt.f32.partialorder %v8762_v30, 0.0  ;;  %vm8812_vm11 = vcmp.gt.f32.partialorder %v8811_v62, 0.0  ;;  %vm8815_vm5 = vcmp.gt.f32.partialorder %v8814_v45, 0.0  ;;  %vm8818_vm8 = vcmp.gt.f32.partialorder %v8817_v12, 0.0 }
 0x2fd   : > { %8806 = vst [vmem:[#allocation151_spill] sm:$0xff] %v6696_v39  ;;  %8808 = vst [vmem:[#allocation152_spill] sm:$0xff] %v6700_v3  ;;  %v6704_v25 = vsel %vm8809_vm9, %v2535_v0, 0.0  ;;  %v6708_v58 = vsel %vm8812_vm11, %v2536_v27, 0.0  ;;  %v6712_v41 = vsel %vm8815_vm5, %v2537_v13, 0.0  ;;  %v6716_v43 = vsel %vm8818_vm8, %v2538_v11, 0.0 }
 0x2fe   : > { %8810 = vst [vmem:[#allocation153_spill] sm:$0xff] %v6704_v25  ;;  %8813 = vst [vmem:[#allocation154_spill] sm:$0xff] %v6708_v58  ;;  %vm8821_vm13 = vcmp.gt.f32.partialorder %v8820_v50, 0.0  ;;  %vm8824_vm3 = vcmp.gt.f32.partialorder %v8823_v6, 0.0  ;;  %vm8827_vm0 = vcmp.gt.f32.partialorder %v8826_v28, 0.0  ;;  %vm8830_vm15 = vcmp.gt.f32.partialorder %v8829_v46, 0.0 }
 0x2ff   : > { %8816 = vst [vmem:[#allocation155_spill] sm:$0xff] %v6712_v41  ;;  %8819 = vst [vmem:[#allocation156_spill] sm:$0xff] %v6716_v43  ;;  %v6720_v26 = vsel %vm8821_vm13, %v2539_v54, 0.0  ;;  %v6724_v20 = vsel %vm8824_vm3, %v2540_v60, 0.0  ;;  %v6728_v47 = vsel %vm8827_vm0, %v2541_v38, 0.0  ;;  %v6732_v22 = vsel %vm8830_vm15, %v2542_v15, 0.0 }
 0x300   : > { %8822 = vst [vmem:[#allocation157_spill] sm:$0xff] %v6720_v26  ;;  %8825 = vst [vmem:[#allocation158_spill] sm:$0xff] %v6724_v20  ;;  %vm8833_vm14 = vcmp.gt.f32.partialorder %v8832_v57, 0.0  ;;  %vm8836_vm2 = vcmp.gt.f32.partialorder %v8835_v37, 0.0  ;;  %v8838_v31 = vld [vmem:[#allocation21_spill] sm:$0xff]  ;;  %v2582_v9 = vsub.f32 %v8841_v23, %v8753_v42  ;;  %v2583_v1 = vsub.f32 %v8842_v17, %v8755_v51  ;;  %v8845_v49 = vld [vmem:[#allocation134_spill] sm:$0xff] }
 0x301   : > { %8828 = vst [vmem:[#allocation159_spill] sm:$0xff] %v6728_v47  ;;  %8831 = vst [vmem:[#allocation160_spill] sm:$0xff] %v6732_v22  ;;  %v6736_v18 = vsel %vm8833_vm14, %v2543_v8, 0.0  ;;  %v6740_v35 = vsel %vm8836_vm2, %v2544_v63, 0.0  ;;  %vm8839_vm6 = vcmp.gt.f32.partialorder %v8838_v31, 0.0  ;;  %v2584_v24 = vsub.f32 %v8843_v32, %v8756_v34  ;;  %v8846_v61 = vld [vmem:[#allocation135_spill] sm:$0xff] }
 0x302   : > { %8834 = vst [vmem:[#allocation161_spill] sm:$0xff] %v6736_v18  ;;  %8837 = vst [vmem:[#allocation162_spill] sm:$0xff] %v6740_v35  ;;  %v6744_v55 = vsel %vm8839_vm6, %v2545_v36, 0.0  ;;  %v2585_v2 = vsub.f32 %v8844_v40, %v8757_v48  ;;  %v2586_v29 = vsub.f32 %v8845_v49, %v8759_v44  ;;  %v2587_v5 = vsub.f32 %v8846_v61, %v8760_v52  ;;  %v8847_v59 = vld [vmem:[#allocation136_spill] sm:$0xff]  ;;  %v8848_v21 = vld [vmem:[#allocation137_spill] sm:$0xff] }
 0x303   : > { %8840 = vst [vmem:[#allocation163_spill] sm:$0xff] %v6744_v55  ;;  %v2588_v33 = vsub.f32 %v8847_v59, %v8761_v4  ;;  %v2589_v7 = vsub.f32 %v8848_v21, %v8762_v30  ;;  %v8849_v56 = vld [vmem:[#allocation138_spill] sm:$0xff]  ;;  %v8850_v27 = vld [vmem:[#allocation139_spill] sm:$0xff]  ;;  %v8851_v11 = vld [vmem:[#allocation140_spill] sm:$0xff]  ;;  %v2610_v55 = vrot.slane %v8817_v12, 2  ;;  %v2611_v35 = vrot.slane %v8820_v50, 2 }
 0x304   : > { %v2590_v0 = vsub.f32 %v8849_v56, %v8811_v62  ;;  %v2591_v13 = vsub.f32 %v8850_v27, %v8814_v45  ;;  %v2592_v54 = vsub.f32 %v8851_v11, %v8817_v12  ;;  %v8852_v60 = vld [vmem:[#allocation141_spill] sm:$0xff]  ;;  %v8853_v15 = vld [vmem:[#allocation142_spill] sm:$0xff]  ;;  %v8854_v63 = vld [vmem:[#allocation143_spill] sm:$0xff]  ;;  %v2600_v56 = vrot.slane %v8753_v42, 2 }
 0x305   : > { %v2593_v38 = vsub.f32 %v8852_v60, %v8820_v50  ;;  %v2594_v8 = vsub.f32 %v8853_v15, %v8823_v6  ;;  %v2595_v36 = vsub.f32 %v8854_v63, %v8826_v28  ;;  %v8855_v23 = vld [vmem:[#allocation144_spill] sm:$0xff]  ;;  %v8856_v32 = vld [vmem:[#allocation145_spill] sm:$0xff]  ;;  %v8857_v49 = vld [vmem:[#allocation107_spill] sm:$0xff]  ;;  %v2601_v27 = vrot.slane %v8755_v51, 2 }
 0x306   : > { %v2596_v17 = vsub.f32 %v8855_v23, %v8829_v46  ;;  %v2597_v40 = vsub.f32 %v8856_v32, %v8832_v57  ;;  %v2598_v61 = vsub.f32 %v8857_v49, %v8835_v37  ;;  %v8858_v59 = vld [vmem:[#allocation108_spill] sm:$0xff]  ;;  %v2602_v11 = vrot.slane %v8756_v34, 2 }
 0x307   : > { %v2599_v21 = vsub.f32 %v8858_v59, %v8838_v31  ;;  %v2603_v60 = vrot.slane %v8757_v48, 2  ;;  %v2604_v15 = vrot.slane %v8759_v44, 2  ;;  %v2605_v63 = vrot.slane %v8760_v52, 2 }
 0x308   : > { %v2606_v23 = vrot.slane %v8761_v4, 2  ;;  %v2607_v32 = vrot.slane %v8762_v30, 2  ;;  %v2608_v49 = vrot.slane %v8811_v62, 2  ;;  %v2609_v59 = vrot.slane %v8814_v45, 2 }
 0x309   : > { %v2612_v18 = vrot.slane %v8823_v6, 2  ;;  %v2613_v22 = vrot.slane %v8826_v28, 2  ;;  %v2614_v47 = vrot.slane %v8829_v46, 2  ;;  %v2615_v20 = vrot.slane %v8832_v57, 2 }
 0x30a   : > { %v2616_v26 = vrot.slane %v8835_v37, 2  ;;  %v2617_v43 = vrot.slane %v8838_v31, 2  ;;  %v2636_v41 = vmul.f32 %v2600_v56, %v2582_v9  ;;  %v2637_v58 = vmul.f32 %v2601_v27, %v2583_v1  ;;  %v8898_v56 = vld [vmem:[#allocation17_spill] sm:$0xff] }
 0x30b   : > { %v2638_v25 = vmul.f32 %v2602_v11, %v2584_v24  ;;  %v2639_v3 = vmul.f32 %v2603_v60, %v2585_v2  ;;  %v2640_v39 = vmul.f32 %v2604_v15, %v2586_v29  ;;  %v2641_v14 = vmul.f32 %v2605_v63, %v2587_v5  ;;  %v8901_v11 = vld [vmem:[#allocation18_spill] sm:$0xff]  ;;  %v8905_v63 = vld [vmem:[#allocation113_spill] sm:$0xff] }
 0x30c   : > { %v2642_v10 = vmul.f32 %v2606_v23, %v2588_v33  ;;  %v2643_v53 = vmul.f32 %v2607_v32, %v2589_v7  ;;  %v2644_v19 = vmul.f32 %v2608_v49, %v2590_v0  ;;  %v2645_v16 = vmul.f32 %v2609_v59, %v2591_v13  ;;  %v8906_v32 = vld [vmem:[#allocation19_spill] sm:$0xff]  ;;  %v8909_v59 = vld [vmem:[#allocation20_spill] sm:$0xff] }
 0x30d   : > { %v2646_v6 = vmul.f32 %v2610_v55, %v2592_v54  ;;  %v2647_v28 = vmul.f32 %v2611_v35, %v2593_v38  ;;  %v2648_v50 = vmul.f32 %v2612_v18, %v2594_v8  ;;  %v2649_v46 = vmul.f32 %v2613_v22, %v2595_v36  ;;  %v8890_v38 = vld [vmem:[#allocation15_spill] sm:$0xff]  ;;  %v8893_v36 = vld [vmem:[#allocation16_spill] sm:$0xff] }
 0x30e   : > { %v2650_v12 = vmul.f32 %v2614_v47, %v2596_v17  ;;  %v2651_v57 = vmul.f32 %v2615_v20, %v2597_v40  ;;  %v2652_v45 = vmul.f32 %v2616_v26, %v2598_v61  ;;  %v2653_v37 = vmul.f32 %v2617_v43, %v2599_v21  ;;  %v8897_v61 = vld [vmem:[#allocation112_spill] sm:$0xff] }
 0x30f   : > { %v2672_v62 = vrot.slane %v2636_v41, 7  ;;  %v2673_v31 = vrot.slane %v2637_v58, 7  ;;  %v2674_v9 = vrot.slane %v2638_v25, 7  ;;  %v2675_v1 = vrot.slane %v2639_v3, 7 }
 0x310   : > { %v2676_v24 = vrot.slane %v2640_v39, 7  ;;  %v2677_v2 = vrot.slane %v2641_v14, 7  ;;  %v2678_v29 = vrot.slane %v2642_v10, 7  ;;  %v2679_v5 = vrot.slane %v2643_v53, 7  ;;  %v8868_v10 = vld [vmem:[#allocation109_spill] sm:$0xff] }
 0x311   : > { %v2680_v33 = vrot.slane %v2644_v19, 7  ;;  %v2681_v7 = vrot.slane %v2645_v16, 7  ;;  %v2682_v0 = vrot.slane %v2646_v6, 7  ;;  %v2683_v13 = vrot.slane %v2647_v28, 7  ;;  %v8882_v6 = vld [vmem:[#allocation13_spill] sm:$0xff] }
 0x312   : > { %v2684_v55 = vrot.slane %v2648_v50, 7  ;;  %v2685_v35 = vrot.slane %v2649_v46, 7  ;;  %v2686_v18 = vrot.slane %v2650_v12, 7  ;;  %v2687_v22 = vrot.slane %v2651_v57, 7  ;;  %v8879_v50 = vld [vmem:[#allocation12_spill] sm:$0xff]  ;;  %v8886_v57 = vld [vmem:[#allocation111_spill] sm:$0xff] }
 0x313   : > { %v2688_v47 = vrot.slane %v2652_v45, 7  ;;  %v2689_v20 = vrot.slane %v2653_v37, 7  ;;  %vm8859_vm1 = vcmp.gt.f32.partialorder %v8753_v42, 0.0  ;;  %vm8861_vm7 = vcmp.gt.f32.partialorder %v8755_v51, 0.0  ;;  %v8876_v45 = vld [vmem:[#allocation110_spill] sm:$0xff] }
 0x314   : > { %v6802_v41 = vsel %vm8859_vm1, %v2672_v62, 0.0  ;;  %v6806_v39 = vsel %vm8861_vm7, %v2673_v31, 0.0  ;;  %vm8863_vm12 = vcmp.gt.f32.partialorder %v8756_v34, 0.0  ;;  %vm8865_vm10 = vcmp.gt.f32.partialorder %v8757_v48, 0.0  ;;  %v8887_v31 = vld [vmem:[#allocation14_spill] sm:$0xff] }
 0x315   : > { %8860 = vst [vmem:[#allocation130_spill] sm:$0xff] %v6802_v41  ;;  %8862 = vst [vmem:[#allocation131_spill] sm:$0xff] %v6806_v39  ;;  %v6810_v19 = vsel %vm8863_vm12, %v2674_v9, 0.0  ;;  %v6814_v16 = vsel %vm8865_vm10, %v2675_v1, 0.0  ;;  %v8867_v53 = vand.u32 2147483647, %v8753_v42 }
 0x316   : > { %8864 = vst [vmem:[#allocation132_spill] sm:$0xff] %v6810_v19  ;;  %8866 = vst [vmem:[#allocation133_spill] sm:$0xff] %v6814_v16  ;;  %vm8869_vm4 = vcmp.gt.f32.partialorder %v8759_v44, 0.0  ;;  %vm8871_vm9 = vcmp.gt.f32.partialorder %v8760_v52, 0.0  ;;  %vm8873_vm11 = vcmp.gt.f32.partialorder %v8761_v4, 0.0  ;;  %vm8877_vm5 = vcmp.gt.f32.partialorder %v8762_v30, 0.0 }
 0x317   : > { %v2726_v14 = vmul.f32 %v8868_v10, %v8867_v53  ;;  %v6821_v3 = vsel %vm8869_vm4, %v2676_v24, 0.0  ;;  %v6825_v25 = vsel %vm8871_vm9, %v2677_v2, 0.0  ;;  %v6829_v62 = vsel %vm8873_vm11, %v2678_v29, 0.0  ;;  %v8913_v24 = vld [vmem:[#allocation114_spill] sm:$0xff]  ;;  %v8914_v29 = vld [vmem:[#allocation21_spill] sm:$0xff] }
 0x318   : > { %8870 = vst [vmem:[#allocation134_spill] sm:$0xff] %v6821_v3  ;;  %8872 = vst [vmem:[#allocation135_spill] sm:$0xff] %v6825_v25  ;;  %v8875_v58 = vand.u32 2147483647, %v8755_v51  ;;  %v6836_v43 = vsel %vm8877_vm5, %v2679_v5, 0.0  ;;  %vm8880_vm8 = vcmp.gt.f32.partialorder %v8879_v50, 0.0 }
 0x319   : > { %8874 = vst [vmem:[#allocation136_spill] sm:$0xff] %v6829_v62  ;;  %8878 = vst [vmem:[#allocation137_spill] sm:$0xff] %v6836_v43  ;;  %v6840_v26 = vsel %vm8880_vm8, %v2680_v33, 0.0  ;;  %vm8883_vm13 = vcmp.gt.f32.partialorder %v8882_v6, 0.0  ;;  %v8885_v46 = vand.u32 2147483647, %v8756_v34  ;;  %4019 = vlog2.f32 %v2726_v14 }
 0x31a   : > { %v2727_v12 = vmul.f32 %v8876_v45, %v8875_v58  ;;  %8881 = vst [vmem:[#allocation138_spill] sm:$0xff] %v6840_v26  ;;  %v6844_v28 = vsel %vm8883_vm13, %v2681_v7, 0.0  ;;  %vm8888_vm3 = vcmp.gt.f32.partialorder %v8887_v31, 0.0  ;;  %vm8891_vm0 = vcmp.gt.f32.partialorder %v8890_v38, 0.0  ;;  %v8918_v7 = vld [vmem:[#allocation115_spill] sm:$0xff]  ;;  %v8924_v10 = vld [vmem:[#allocation118_spill] sm:$0xff] }
 0x31b   : > { %8884 = vst [vmem:[#allocation139_spill] sm:$0xff] %v6844_v28  ;;  %v2728_v37 = vmul.f32 %v8886_v57, %v8885_v46  ;;  %v6851_v54 = vsel %vm8888_vm3, %v2682_v0, 0.0  ;;  %v6855_v8 = vsel %vm8891_vm0, %v2683_v13, 0.0  ;;  %vm8894_vm15 = vcmp.gt.f32.partialorder %v8893_v36, 0.0  ;;  %v8926_v58 = vld [vmem:[#allocation93_spill] sm:$0xff]  ;;  %v8928_v46 = vld [vmem:[#allocation94_spill] sm:$0xff] }
 0x31c   : > { %8889 = vst [vmem:[#allocation140_spill] sm:$0xff] %v6851_v54  ;;  %8892 = vst [vmem:[#allocation141_spill] sm:$0xff] %v6855_v8  ;;  %v6859_v17 = vsel %vm8894_vm15, %v2684_v55, 0.0  ;;  %v8896_v40 = vand.u32 2147483647, %v8757_v48  ;;  %vm8899_vm14 = vcmp.gt.f32.partialorder %v8898_v56, 0.0  ;;  %4021 = vlog2.f32 %v2727_v12 }
 0x31d   : > { %8895 = vst [vmem:[#allocation142_spill] sm:$0xff] %v6859_v17  ;;  %v6866_v27 = vsel %vm8899_vm14, %v2685_v35, 0.0  ;;  %vm8902_vm2 = vcmp.gt.f32.partialorder %v8901_v11, 0.0  ;;  %v8904_v15 = vand.u32 2147483647, %v8759_v44  ;;  %vm8907_vm6 = vcmp.gt.f32.partialorder %v8906_v32, 0.0 }
 0x31e   : > { %v2729_v21 = vmul.f32 %v8897_v61, %v8896_v40  ;;  %8900 = vst [vmem:[#allocation143_spill] sm:$0xff] %v6866_v27  ;;  %v6870_v60 = vsel %vm8902_vm2, %v2686_v18, 0.0  ;;  %v6877_v49 = vsel %vm8907_vm6, %v2687_v22, 0.0  ;;  %vm8910_vm1 = vcmp.gt.f32.partialorder %v8909_v59, 0.0  ;;  %v8920_v55 = vld [vmem:[#allocation116_spill] sm:$0xff]  ;;  %v8922_v22 = vld [vmem:[#allocation117_spill] sm:$0xff] }
 0x31f   : > { %8903 = vst [vmem:[#allocation144_spill] sm:$0xff] %v6870_v60  ;;  %v2730_v23 = vmul.f32 %v8905_v63, %v8904_v15  ;;  %8908 = vst [vmem:[#allocation145_spill] sm:$0xff] %v6877_v49  ;;  %v6881_v9 = vsel %vm8910_vm1, %v2688_v47, 0.0  ;;  %v8912_v1 = vand.u32 2147483647, %v8760_v52  ;;  %vm8915_vm7 = vcmp.gt.f32.partialorder %v8914_v29, 0.0 }
 0x320   : > { %8911 = vst [vmem:[#allocation107_spill] sm:$0xff] %v6881_v9  ;;  %v6888_v5 = vsel %vm8915_vm7, %v2689_v20, 0.0  ;;  %v8917_v33 = vand.u32 2147483647, %v8761_v4  ;;  %v8919_v13 = vand.u32 2147483647, %v8762_v30  ;;  %4023 = vlog2.f32 %v2728_v37 }
 0x321   : > { %v2731_v2 = vmul.f32 %v8913_v24, %v8912_v1  ;;  %8916 = vst [vmem:[#allocation108_spill] sm:$0xff] %v6888_v5  ;;  %v8921_v18 = vand.u32 2147483647, %v8879_v50  ;;  %v8923_v53 = vand.u32 2147483647, %v8882_v6  ;;  %4025 = vlog2.f32 %v2729_v21  ;;  %v8930_v37 = vld [vmem:[#allocation95_spill] sm:$0xff] }
 0x322   : > { %v2732_v0 = vmul.f32 %v8918_v7, %v8917_v33  ;;  %v2733_v35 = vmul.f32 %v8920_v55, %v8919_v13  ;;  %v8925_v20 = vand.u32 2147483647, %v8887_v31  ;;  %v8927_v12 = vand.u32 2147483647, %v8890_v38  ;;  %v8932_v63 = vld [vmem:[#allocation96_spill] sm:$0xff]  ;;  %v8934_v33 = vld [vmem:[#allocation97_spill] sm:$0xff] }
 0x323   : > { %v2734_v47 = vmul.f32 %v8922_v22, %v8921_v18  ;;  %v2735_v14 = vmul.f32 %v8924_v10, %v8923_v53  ;;  %v8929_v40 = vand.u32 2147483647, %v8893_v36  ;;  %v8931_v15 = vand.u32 2147483647, %v8898_v56  ;;  %v8936_v21 = vld [vmem:[#allocation98_spill] sm:$0xff]  ;;  %v8938_v22 = vld [vmem:[#allocation99_spill] sm:$0xff] }
 0x324   : > { %v2736_v45 = vmul.f32 %v8926_v58, %v8925_v20  ;;  %v2737_v57 = vmul.f32 %v8928_v46, %v8927_v12  ;;  %4027 = vlog2.f32 %v2730_v23  ;;  %v8933_v24 = vand.u32 2147483647, %v8901_v11  ;;  %v8940_v20 = vld [vmem:[#allocation100_spill] sm:$0xff]  ;;  %v8941_v23 = vld [vmem:[#allocation101_spill] sm:$0xff]  ;;  %v8942_v46 = vld [vmem:[#allocation102_spill] sm:$0xff] }
 0x325   : > { %v2738_v61 = vmul.f32 %v8930_v37, %v8929_v40  ;;  %v2739_v1 = vmul.f32 %v8932_v63, %v8931_v15  ;;  %v8935_v13 = vand.u32 2147483647, %v8906_v32  ;;  %v8937_v18 = vand.u32 2147483647, %v8909_v59  ;;  %v8943_v37 = vld [vmem:[#allocation103_spill] sm:$0xff]  ;;  %v8944_v63 = vld [vmem:[#allocation104_spill] sm:$0xff] }
 0x326   : > { %v2740_v7 = vmul.f32 %v8934_v33, %v8933_v24  ;;  %4029 = vlog2.f32 %v2731_v2  ;;  %v8939_v10 = vand.u32 2147483647, %v8914_v29  ;;  %v2798_v12 = vmul.f32 %v8941_v23, %v8753_v42  ;;  %v8945_v2 = vld [vmem:[#allocation105_spill] sm:$0xff]  ;;  %v4020_v49 = vpop.eup %4019  ;;  %v8967_v8 = vld [vmem:[#allocation82_spill] sm:$0xff]  ;;  %v8968_v54 = vld [vmem:[#allocation83_spill] sm:$0xff] }
 0x327   : > { %v2741_v55 = vmul.f32 %v8936_v21, %v8935_v13  ;;  %v2742_v53 = vmul.f32 %v8938_v22, %v8937_v18  ;;  %4031 = vlog2.f32 %v2732_v0  ;;  %v2799_v40 = vmul.f32 %v8942_v46, %v8755_v51  ;;  %v8946_v0 = vld [vmem:[#allocation106_spill] sm:$0xff]  ;;  %v8947_v21 = vld [vmem:[#allocation119_spill] sm:$0xff]  ;;  %v8950_v23 = vld [vmem:[#allocation121_spill] sm:$0xff] }
 0x328   : > { %v2743_v58 = vmul.f32 %v8940_v20, %v8939_v10  ;;  %4033 = vlog2.f32 %v2733_v35  ;;  %v2800_v15 = vmul.f32 %v8943_v37, %v8756_v34  ;;  %v6934_v24 = vmul.f32 %v8944_v63, %v8757_v48  ;;  %v8948_v35 = vld [vmem:[#allocation120_spill] sm:$0xff]  ;;  %v8951_v46 = vld [vmem:[#allocation122_spill] sm:$0xff]  ;;  %v8952_v63 = vld [vmem:[#allocation123_spill] sm:$0xff] }
 0x329   : > { %v6938_v33 = vmul.f32 %v8945_v2, %v8759_v44  ;;  %4035 = vlog2.f32 %v2734_v47  ;;  %v6942_v13 = vmul.f32 %v8946_v0, %v8760_v52  ;;  %v6946_v18 = vmul.f32 %v8947_v21, %v8761_v4  ;;  %v8949_v10 = vld [vmem:[#allocation92_spill] sm:$0xff]  ;;  %v8954_v21 = vld [vmem:[#allocation125_spill] sm:$0xff]  ;;  %v4022_v27 = vpop.eup %4021  ;;  %v8971_v43 = vld [vmem:[#allocation86_spill] sm:$0xff] }
 0x32a   : > { %v6950_v22 = vmul.f32 %v8948_v35, %v8762_v30  ;;  %4037 = vlog2.f32 %v2735_v14  ;;  %v6954_v20 = vmul.f32 %v8949_v10, %v8879_v50  ;;  %v6958_v47 = vmul.f32 %v8950_v23, %v8882_v6  ;;  %v8953_v0 = vld [vmem:[#allocation124_spill] sm:$0xff]  ;;  %v8955_v10 = vld [vmem:[#allocation126_spill] sm:$0xff]  ;;  %v8962_v60 = vld [vmem:[#allocation77_spill] sm:$0xff] }
 0x32b   : > { %v6962_v37 = vmul.f32 %v8951_v46, %v8887_v31  ;;  %4039 = vlog2.f32 %v2736_v45  ;;  %v6966_v2 = vmul.f32 %v8952_v63, %v8890_v38  ;;  %v6970_v14 = vmul.f32 %v8953_v0, %v8893_v36  ;;  %v8956_v46 = vld [vmem:[#allocation127_spill] sm:$0xff]  ;;  %v8957_v63 = vld [vmem:[#allocation128_spill] sm:$0xff]  ;;  %v8958_v0 = vld [vmem:[#allocation129_spill] sm:$0xff] }
 0x32c   : > { %v6974_v35 = vmul.f32 %v8954_v21, %v8898_v56  ;;  %4041 = vlog2.f32 %v2737_v57  ;;  %v6978_v23 = vmul.f32 %v8955_v10, %v8901_v11  ;;  %v6982_v45 = vmul.f32 %v8956_v46, %v8906_v32  ;;  %v8959_v21 = vld [vmem:[#allocation74_spill] sm:$0xff]  ;;  %v8960_v57 = vld [vmem:[#allocation75_spill] sm:$0xff]  ;;  %v8961_v10 = vld [vmem:[#allocation76_spill] sm:$0xff] }
 0x32d   : > { %v6986_v5 = vmul.f32 %v8957_v63, %v8909_v59  ;;  %4043 = vlog2.f32 %v2738_v61  ;;  %v6990_v9 = vmul.f32 %v8958_v0, %v8914_v29  ;;  %vm2924_vm12 = vcmp.eq.f32.partialorder %v8959_v21, 1.0  ;;  %v8963_v46 = vld [vmem:[#allocation78_spill] sm:$0xff]  ;;  %v8964_v63 = vld [vmem:[#allocation79_spill] sm:$0xff]  ;;  %v8965_v61 = vld [vmem:[#allocation80_spill] sm:$0xff]  ;;  %v4024_v17 = vpop.eup %4023 }
 0x32e   : > { %vm2925_vm10 = vcmp.eq.f32.partialorder %v8960_v57, 1.0  ;;  %4045 = vlog2.f32 %v2739_v1  ;;  %vm2926_vm4 = vcmp.eq.f32.partialorder %v8961_v10, 1.0  ;;  %vm2927_vm9 = vcmp.eq.f32.partialorder %v8962_v60, 1.0  ;;  %v8966_v0 = vld [vmem:[#allocation81_spill] sm:$0xff]  ;;  %v8969_v1 = vld [vmem:[#allocation84_spill] sm:$0xff]  ;;  %v4026_v28 = vpop.eup %4025  ;;  %v8979_v59 = vld [vmem:[#allocation90_spill] sm:$0xff] }
 0x32f   : > { %vm2928_vm11 = vcmp.eq.f32.partialorder %v8963_v46, 1.0  ;;  %4047 = vlog2.f32 %v2740_v7  ;;  %vm2929_vm5 = vcmp.eq.f32.partialorder %v8964_v63, 1.0  ;;  %vm2930_vm8 = vcmp.eq.f32.partialorder %v8965_v61, 1.0  ;;  %v8970_v26 = vld [vmem:[#allocation85_spill] sm:$0xff]  ;;  %v8972_v7 = vld [vmem:[#allocation87_spill] sm:$0xff]  ;;  %v8973_v3 = vld [vmem:[#allocation88_spill] sm:$0xff] }
 0x330   : > { %vm2931_vm13 = vcmp.eq.f32.partialorder %v8966_v0, 1.0  ;;  %4049 = vlog2.f32 %v2741_v55  ;;  %vm2932_vm3 = vcmp.eq.f32.partialorder %v8967_v8, 1.0  ;;  %vm2933_vm0 = vcmp.eq.f32.partialorder %v8968_v54, 1.0  ;;  %v8982_v32 = vld [vmem:[#allocation91_spill] sm:$0xff] }
 0x331   : > { %vm2934_vm15 = vcmp.eq.f32.partialorder %v8969_v1, 1.0  ;;  %4051 = vlog2.f32 %v2742_v53  ;;  %vm2935_vm14 = vcmp.eq.f32.partialorder %v8970_v26, 1.0  ;;  %vm2936_vm2 = vcmp.eq.f32.partialorder %v8971_v43, 1.0  ;;  %v4028_v62 = vpop.eup %4027  ;;  %v8976_v53 = vld [vmem:[#allocation89_spill] sm:$0xff] }
 0x332   : > { %vm2937_vm6 = vcmp.eq.f32.partialorder %v8972_v7, 1.0  ;;  %v2745_v25 = vmul.f32 0.6931472, %v4020_v49  ;;  %4053 = vlog2.f32 %v2743_v58  ;;  %vm2938_vm1 = vcmp.eq.f32.partialorder %v8973_v3, 1.0 }
 0x333   : > { %v8974_v55 = vmov 0.0   ;;  %v4030_v19 = vpop.eup %4029  ;;  %v2747_v39 = vmul.f32 0.6931472, %v4022_v27  ;;  %4055 = vlog2.f32 %v2798_v12  ;;  %vm2939_vm7 = vcmp.eq.f32.partialorder %v8976_v53, 1.0 }
 0x334   : > { %v7010_v16 = vsel %vm2924_vm12, 1.0, %v8974_v55  ;;  %v7016_v41 = vsel %vm2925_vm10, 1.0, %v8974_v55  ;;  %v7021_v49 = vsel %vm2926_vm4, 1.0, %v8974_v55  ;;  %v4032_v58 = vpop.eup %4031  ;;  %v2749_v29 = vmul.f32 0.6931472, %v4024_v17 }
 0x335   : > { %8975 = vst [vmem:[#allocation109_spill] sm:$0xff] %v7010_v16  ;;  %8977 = vst [vmem:[#allocation110_spill] sm:$0xff] %v7016_v41  ;;  %4057 = vlog2.f32 %v2799_v40  ;;  %vm2940_vm12 = vcmp.eq.f32.partialorder %v8979_v59, 1.0  ;;  %v7027_v27 = vsel %vm2927_vm9, 1.0, %v8974_v55  ;;  %v7032_v12 = vsel %vm2928_vm11, 1.0, %v8974_v55  ;;  %v4034_v41 = vpop.eup %4033 }
 0x336   : > { %8978 = vst [vmem:[#allocation111_spill] sm:$0xff] %v7021_v49  ;;  %8980 = vst [vmem:[#allocation112_spill] sm:$0xff] %v7027_v27  ;;  %v2751_v16 = vmul.f32 0.6931472, %v4026_v28  ;;  %4059 = vlog2.f32 %v2800_v15  ;;  %vm2941_vm10 = vcmp.eq.f32.partialorder %v8982_v32, 1.0  ;;  %v7038_v17 = vsel %vm2929_vm5, 1.0, %v8974_v55  ;;  %v4036_v27 = vpop.eup %4035 }
 0x337   : > { %8981 = vst [vmem:[#allocation113_spill] sm:$0xff] %v7032_v12  ;;  %8983 = vst [vmem:[#allocation114_spill] sm:$0xff] %v7038_v17  ;;  %v7043_v40 = vsel %vm2930_vm8, 1.0, %v8974_v55  ;;  %v2753_v49 = vmul.f32 0.6931472, %v4028_v62  ;;  %vm8985_vm4 = vcmp.gt.f32.partialorder %v8753_v42, 0.0  ;;  %4061 = vlog2.f32 %v6934_v24  ;;  %v4038_v15 = vpop.eup %4037 }
 0x338   : > { %8984 = vst [vmem:[#allocation115_spill] sm:$0xff] %v7043_v40  ;;  %v7047_v12 = vsel %vm8985_vm4, %v2745_v25, 0.0  ;;  %v7053_v28 = vsel %vm2931_vm13, 1.0, %v8974_v55  ;;  %v2755_v17 = vmul.f32 0.6931472, %v4030_v19  ;;  %vm8987_vm9 = vcmp.gt.f32.partialorder %v8755_v51, 0.0  ;;  %v4040_v62 = vpop.eup %4039 }
 0x339   : > { %8986 = vst [vmem:[#allocation116_spill] sm:$0xff] %v7053_v28  ;;  %v7057_v61 = vsel %vm8987_vm9, %v2747_v39, 0.0  ;;  %4063 = vlog2.f32 %v6938_v33  ;;  %v7063_v25 = vsel %vm2932_vm3, 1.0, %v8974_v55  ;;  %vm8989_vm11 = vcmp.gt.f32.partialorder %v8756_v34, 0.0  ;;  %v4042_v33 = vpop.eup %4041 }
 0x33a   : > { %8988 = vst [vmem:[#allocation117_spill] sm:$0xff] %v7063_v25  ;;  %v7067_v24 = vsel %vm8989_vm11, %v2749_v29, 0.0  ;;  %4065 = vlog2.f32 %v6942_v13  ;;  %v7073_v19 = vsel %vm2933_vm0, 1.0, %v8974_v55  ;;  %v7078_v39 = vsel %vm2934_vm15, 1.0, %v8974_v55  ;;  %v4044_v13 = vpop.eup %4043 }
 0x33b   : > { %8990 = vst [vmem:[#allocation118_spill] sm:$0xff] %v7073_v19  ;;  %8991 = vst [vmem:[#allocation93_spill] sm:$0xff] %v7078_v39  ;;  %v2757_v28 = vmul.f32 0.6931472, %v4032_v58  ;;  %vm8992_vm5 = vcmp.gt.f32.partialorder %v8757_v48, 0.0  ;;  %4067 = vlog2.f32 %v6946_v18  ;;  %v7088_v29 = vsel %vm2935_vm14, 1.0, %v8974_v55  ;;  %v4046_v58 = vpop.eup %4045 }
 0x33c   : > { %v7082_v25 = vsel %vm8992_vm5, %v2751_v16, 0.0  ;;  %8994 = vst [vmem:[#allocation95_spill] sm:$0xff] %v7088_v29  ;;  %v2759_v19 = vmul.f32 0.6931472, %v4034_v41  ;;  %vm8995_vm8 = vcmp.gt.f32.partialorder %v8759_v44, 0.0  ;;  %4069 = vlog2.f32 %v6950_v22  ;;  %v4048_v41 = vpop.eup %4047 }
 0x33d   : > { %8993 = vst [vmem:[#allocation94_spill] sm:$0xff] %v7082_v25  ;;  %v7092_v40 = vsel %vm8995_vm8, %v2753_v49, 0.0  ;;  %v7098_v16 = vsel %vm2936_vm2, 1.0, %v8974_v55  ;;  %v2761_v18 = vmul.f32 0.6931472, %v4036_v27  ;;  %vm8998_vm13 = vcmp.gt.f32.partialorder %v8760_v52, 0.0 }
 0x33e   : > { %8996 = vst [vmem:[#allocation96_spill] sm:$0xff] %v7092_v40  ;;  %8997 = vst [vmem:[#allocation97_spill] sm:$0xff] %v7098_v16  ;;  %v2763_v39 = vmul.f32 0.6931472, %v4038_v15  ;;  %v7102_v25 = vsel %vm8998_vm13, %v2755_v17, 0.0  ;;  %4071 = vlog2.f32 %v6954_v20  ;;  %v7109_v22 = vsel %vm2937_vm6, 1.0, %v8974_v55  ;;  %v4050_v16 = vpop.eup %4049 }
 0x33f   : > { %v2765_v29 = vmul.f32 0.6931472, %v4040_v62  ;;  %v2767_v49 = vmul.f32 0.6931472, %v4042_v33  ;;  %4073 = vlog2.f32 %v6958_v47  ;;  %8999 = vst [vmem:[#allocation98_spill] sm:$0xff] %v7109_v22  ;;  %vm9000_vm3 = vcmp.gt.f32.partialorder %v8761_v4, 0.0  ;;  %v4052_v17 = vpop.eup %4051 }
 0x340   : > { %v2769_v40 = vmul.f32 0.6931472, %v4044_v13  ;;  %v7113_v27 = vsel %vm9000_vm3, %v2757_v28, 0.0  ;;  %4075 = vlog2.f32 %v6962_v37  ;;  %v7119_v20 = vsel %vm2938_vm1, 1.0, %v8974_v55  ;;  %v4054_v62 = vpop.eup %4053 }
 0x341   : > { %9001 = vst [vmem:[#allocation99_spill] sm:$0xff] %v7119_v20  ;;  %v2771_v47 = vmul.f32 0.6931472, %v4046_v58  ;;  %vm9002_vm0 = vcmp.gt.f32.partialorder %v8762_v30, 0.0  ;;  %4077 = vlog2.f32 %v6966_v2  ;;  %v7129_v28 = vsel %vm2939_vm7, 1.0, %v8974_v55 }
 0x342   : > { %v7123_v15 = vsel %vm9002_vm0, %v2759_v19, 0.0  ;;  %9003 = vst [vmem:[#allocation100_spill] sm:$0xff] %v7129_v28  ;;  %vm9004_vm15 = vcmp.gt.f32.partialorder %v8879_v50, 0.0  ;;  %vm9005_vm14 = vcmp.gt.f32.partialorder %v8882_v6, 0.0  ;;  %4079 = vlog2.f32 %v6970_v14  ;;  %v4056_v19 = vpop.eup %4055 }
 0x343   : > { %v7133_v37 = vsel %vm9004_vm15, %v2761_v18, 0.0  ;;  %v7137_v33 = vsel %vm9005_vm14, %v2763_v39, 0.0  ;;  %v7143_v2 = vsel %vm2940_vm12, 1.0, %v8974_v55  ;;  %vm9008_vm2 = vcmp.gt.f32.partialorder %v8887_v31, 0.0  ;;  %v4058_v39 = vpop.eup %4057 }
 0x344   : > { %9006 = vst [vmem:[#allocation101_spill] sm:$0xff] %v7137_v33  ;;  %9007 = vst [vmem:[#allocation102_spill] sm:$0xff] %v7143_v2  ;;  %v7147_v13 = vsel %vm9008_vm2, %v2765_v29, 0.0  ;;  %vm9010_vm6 = vcmp.gt.f32.partialorder %v8890_v38, 0.0  ;;  %4081 = vlog2.f32 %v6974_v35  ;;  %v7157_v14 = vsel %vm2941_vm10, 1.0, %v8974_v55  ;;  %v4060_v29 = vpop.eup %4059 }
 0x345   : > { %9009 = vst [vmem:[#allocation103_spill] sm:$0xff] %v7147_v13  ;;  %v7151_v58 = vsel %vm9010_vm6, %v2767_v49, 0.0  ;;  %9012 = vst [vmem:[#allocation105_spill] sm:$0xff] %v7157_v14  ;;  %v2773_v18 = vmul.f32 0.6931472, %v4048_v41  ;;  %vm9013_vm1 = vcmp.gt.f32.partialorder %v8893_v36, 0.0  ;;  %4083 = vlog2.f32 %v6978_v23  ;;  %v4062_v14 = vpop.eup %4061 }
 0x346   : > { %9011 = vst [vmem:[#allocation104_spill] sm:$0xff] %v7151_v58  ;;  %v7161_v2 = vsel %vm9013_vm1, %v2769_v40, 0.0  ;;  %v2817_v28 = vmul.f32 0.6931472, %v4056_v19  ;;  %v2775_v20 = vmul.f32 0.6931472, %v4050_v16  ;;  %4085 = vlog2.f32 %v6982_v45  ;;  %v4064_v23 = vpop.eup %4063 }
 0x347   : > { %9014 = vst [vmem:[#allocation106_spill] sm:$0xff] %v7161_v2  ;;  %vm9015_vm7 = vcmp.gt.f32.partialorder %v8898_v56, 0.0  ;;  %v2819_v35 = vmul.f32 0.6931472, %v4058_v39  ;;  %vm2960_vm12 = vcmp.ge.f32.partialorder %v8959_v21, 0.0  ;;  %4087 = vlog2.f32 %v6986_v5  ;;  %v4066_v19 = vpop.eup %4065  ;;  %v9019_v39 = vld [vmem:[#allocation19_spill] sm:$0xff] }
 0x348   : > { %v7166_v49 = vsel %vm9015_vm7, %v2771_v47, 0.0  ;;  %v2777_v41 = vmul.f32 0.6931472, %v4052_v17  ;;  %v2779_v22 = vmul.f32 0.6931472, %v4054_v62  ;;  %vm2961_vm10 = vcmp.ge.f32.partialorder %v8960_v57, 0.0  ;;  %v4068_v5 = vpop.eup %4067 }
 0x349   : > { %9016 = vst [vmem:[#allocation119_spill] sm:$0xff] %v7166_v49  ;;  %v2821_v58 = vmul.f32 0.6931472, %v4060_v29  ;;  %v2823_v40 = vmul.f32 0.6931472, %v4062_v14  ;;  %4089 = vlog2.f32 %v6990_v9  ;;  %v2870_v16 = vrot.slane %v2817_v28, 1  ;;  %v4070_v28 = vpop.eup %4069 }
 0x34a   : > { %v2871_v47 = vrot.slane %v2819_v35, 1  ;;  %vm2962_vm4 = vcmp.ge.f32.partialorder %v8961_v10, 0.0  ;;  %vm9017_vm9 = vcmp.gt.f32.partialorder %v8901_v11, 0.0  ;;  %v2825_v17 = vmul.f32 0.6931472, %v4064_v23  ;;  %v9022_v35 = vld [vmem:[#allocation20_spill] sm:$0xff] }
 0x34b   : > { %v7176_v45 = vsel %vm9017_vm9, %v2773_v18, 0.0  ;;  %v2872_v62 = vrot.slane %v2821_v58, 1  ;;  %vm2963_vm11 = vcmp.ge.f32.partialorder %v8962_v60, 0.0  ;;  %vm9020_vm5 = vcmp.gt.f32.partialorder %v9019_v39, 0.0  ;;  %v9025_v18 = vld [vmem:[#allocation21_spill] sm:$0xff]  ;;  %v4072_v2 = vpop.eup %4071 }
 0x34c   : > { %9018 = vst [vmem:[#allocation120_spill] sm:$0xff] %v7176_v45  ;;  %v7181_v29 = vsel %vm9020_vm5, %v2775_v20, 0.0  ;;  %v2827_v14 = vmul.f32 0.6931472, %v4066_v19  ;;  %v2873_v9 = vrot.slane %v2823_v40, 1  ;;  %vm2964_vm8 = vcmp.ge.f32.partialorder %v8963_v46, 0.0 }
 0x34d   : > { %9021 = vst [vmem:[#allocation92_spill] sm:$0xff] %v7181_v29  ;;  %vm9023_vm13 = vcmp.gt.f32.partialorder %v9022_v35, 0.0  ;;  %vm9026_vm3 = vcmp.gt.f32.partialorder %v9025_v18, 0.0  ;;  %v2829_v58 = vmul.f32 0.6931472, %v4068_v5  ;;  %v2874_v45 = vrot.slane %v2825_v17, 1 }
 0x34e   : > { %v7186_v49 = vsel %vm9023_vm13, %v2777_v41, 0.0  ;;  %v7190_v23 = vsel %vm9026_vm3, %v2779_v22, 0.0  ;;  %vm2965_vm0 = vcmp.ge.f32.partialorder %v8964_v63, 0.0  ;;  %v2831_v20 = vmul.f32 0.6931472, %v4070_v28  ;;  %v9032_v41 = vld [vmem:[#allocation80_spill] sm:$0xff]  ;;  %v4074_v22 = vpop.eup %4073 }
 0x34f   : > { %9024 = vst [vmem:[#allocation121_spill] sm:$0xff] %v7186_v49  ;;  %9027 = vst [vmem:[#allocation122_spill] sm:$0xff] %v7190_v23  ;;  %v2875_v29 = vrot.slane %v2827_v14, 1  ;;  %vm9028_vm15 = vcmp.gt.f32.partialorder %v8753_v42, 0.0  ;;  %vm9030_vm14 = vcmp.gt.f32.partialorder %v8755_v51, 0.0  ;;  %vm2966_vm2 = vcmp.ge.f32.partialorder %v9032_v41, 0.0  ;;  %v4076_v51 = vpop.eup %4075 }
 0x350   : > { %v7195_v40 = vsel %vm9028_vm15, %v2870_v16, 0.0  ;;  %v7199_v19 = vsel %vm9030_vm14, %v2871_v47, 0.0  ;;  %vm2967_vm6 = vcmp.ge.f32.partialorder %v8966_v0, 0.0  ;;  %v2833_v5 = vmul.f32 0.6931472, %v4072_v2 }
 0x351   : > { %9029 = vst [vmem:[#allocation123_spill] sm:$0xff] %v7195_v40  ;;  %9031 = vst [vmem:[#allocation124_spill] sm:$0xff] %v7199_v19  ;;  %v2876_v17 = vrot.slane %v2829_v58, 1  ;;  %vm9033_vm1 = vcmp.gt.f32.partialorder %v8756_v34, 0.0  ;;  %vm9035_vm7 = vcmp.gt.f32.partialorder %v8757_v48, 0.0  ;;  %vm2968_vm9 = vcmp.ge.f32.partialorder %v8967_v8, 0.0  ;;  %v4078_v48 = vpop.eup %4077 }
 0x352   : > { %v7205_v23 = vsel %vm9033_vm1, %v2872_v62, 0.0  ;;  %v7209_v42 = vsel %vm9035_vm7, %v2873_v9, 0.0  ;;  %v2835_v16 = vmul.f32 0.6931472, %v4074_v22  ;;  %v2877_v47 = vrot.slane %v2831_v20, 1 }
 0x353   : > { %9034 = vst [vmem:[#allocation125_spill] sm:$0xff] %v7205_v23  ;;  %9036 = vst [vmem:[#allocation126_spill] sm:$0xff] %v7209_v42  ;;  %vm9037_vm13 = vcmp.gt.f32.partialorder %v8759_v44, 0.0  ;;  %vm9039_vm3 = vcmp.gt.f32.partialorder %v8760_v52, 0.0  ;;  %v2837_v2 = vmul.f32 0.6931472, %v4076_v51  ;;  %v4080_v44 = vpop.eup %4079 }
 0x354   : > { %v7215_v14 = vsel %vm9037_vm13, %v2874_v45, 0.0  ;;  %v7219_v34 = vsel %vm9039_vm3, %v2875_v29, 0.0  ;;  %v2878_v62 = vrot.slane %v2833_v5, 1  ;;  %vm9041_vm7 = vcmp.gt.f32.partialorder %v8761_v4, 0.0  ;;  %v4082_v4 = vpop.eup %4081 }
 0x355   : > { %9038 = vst [vmem:[#allocation127_spill] sm:$0xff] %v7215_v14  ;;  %9040 = vst [vmem:[#allocation128_spill] sm:$0xff] %v7219_v34  ;;  %v7226_v9 = vsel %vm9041_vm7, %v2876_v17, 0.0  ;;  %vm2973_vm13 = vcmp.ge.f32.partialorder %v8972_v7, 0.0  ;;  %vm2974_vm5 = vcmp.ge.f32.partialorder %v8973_v3, 0.0  ;;  %vm2975_vm3 = vcmp.ge.f32.partialorder %v8976_v53, 0.0  ;;  %v4084_v5 = vpop.eup %4083 }
 0x356   : > { %9042 = vst [vmem:[#allocation129_spill] sm:$0xff] %v7226_v9  ;;  %v2839_v52 = vmul.f32 0.6931472, %v4078_v48  ;;  %v2879_v45 = vrot.slane %v2835_v16, 1  ;;  %vm9043_vm14 = vcmp.gt.f32.partialorder %v8762_v30, 0.0  ;;  %vm2976_vm1 = vcmp.ge.f32.partialorder %v8979_v59, 0.0 }
 0x357   : > { %v7233_v29 = vsel %vm9043_vm14, %v2877_v47, 0.0  ;;  %vm2977_vm15 = vcmp.ge.f32.partialorder %v8982_v32, 0.0  ;;  %v2841_v28 = vmul.f32 0.6931472, %v4080_v44  ;;  %v2880_v58 = vrot.slane %v2837_v2, 1 }
 0x358   : > { %9044 = vst [vmem:[#allocation74_spill] sm:$0xff] %v7233_v29  ;;  %vm9045_vm7 = vcmp.gt.f32.partialorder %v8879_v50, 0.0  ;;  %v7244_v22 = vsel %vm2960_vm12, 1.0, %v8974_v55  ;;  %v2843_v30 = vmul.f32 0.6931472, %v4082_v4  ;;  %v2881_v17 = vrot.slane %v2839_v52, 1  ;;  %v4086_v50 = vpop.eup %4085 }
 0x359   : > { %v7239_v20 = vsel %vm9045_vm7, %v2878_v62, 0.0  ;;  %9047 = vst [vmem:[#allocation76_spill] sm:$0xff] %v7244_v22  ;;  %vm9048_vm14 = vcmp.gt.f32.partialorder %v8882_v6, 0.0  ;;  %v7253_v16 = vsel %vm2961_vm10, 1.0, %v8974_v55  ;;  %v2845_v47 = vmul.f32 0.6931472, %v4084_v5  ;;  %v4088_v6 = vpop.eup %4087 }
 0x35a   : > { %9046 = vst [vmem:[#allocation75_spill] sm:$0xff] %v7239_v20  ;;  %v7248_v51 = vsel %vm9048_vm14, %v2879_v45, 0.0  ;;  %9050 = vst [vmem:[#allocation78_spill] sm:$0xff] %v7253_v16  ;;  %v2882_v48 = vrot.slane %v2841_v28, 1  ;;  %vm9051_vm7 = vcmp.gt.f32.partialorder %v8887_v31, 0.0  ;;  %v7262_v62 = vsel %vm2962_vm4, 1.0, %v8974_v55  ;;  %v4090_v31 = vpop.eup %4089 }
 0x35b   : > { %9049 = vst [vmem:[#allocation77_spill] sm:$0xff] %v7248_v51  ;;  %v7257_v2 = vsel %vm9051_vm7, %v2880_v58, 0.0  ;;  %9053 = vst [vmem:[#allocation81_spill] sm:$0xff] %v7262_v62  ;;  %v2847_v44 = vmul.f32 0.6931472, %v4086_v50  ;;  %v2883_v52 = vrot.slane %v2843_v30, 1 }
 0x35c   : > { %9052 = vst [vmem:[#allocation79_spill] sm:$0xff] %v7257_v2  ;;  %vm9054_vm12 = vcmp.gt.f32.partialorder %v8890_v38, 0.0  ;;  %v7271_v4 = vsel %vm2963_vm11, 1.0, %v8974_v55  ;;  %v2849_v28 = vmul.f32 0.6931472, %v4088_v6  ;;  %v2884_v58 = vrot.slane %v2845_v47, 1 }
 0x35d   : > { %v7266_v45 = vsel %vm9054_vm12, %v2881_v17, 0.0  ;;  %9056 = vst [vmem:[#allocation83_spill] sm:$0xff] %v7271_v4  ;;  %vm9057_vm10 = vcmp.gt.f32.partialorder %v8893_v36, 0.0  ;;  %v7280_v30 = vsel %vm2964_vm8, 1.0, %v8974_v55  ;;  %v2851_v38 = vmul.f32 0.6931472, %v4090_v31 }
 0x35e   : > { %9055 = vst [vmem:[#allocation82_spill] sm:$0xff] %v7266_v45  ;;  %v7275_v5 = vsel %vm9057_vm10, %v2882_v48, 0.0  ;;  %9059 = vst [vmem:[#allocation85_spill] sm:$0xff] %v7280_v30  ;;  %v2885_v17 = vrot.slane %v2847_v44, 1  ;;  %vm9060_vm4 = vcmp.gt.f32.partialorder %v8898_v56, 0.0  ;;  %v7289_v6 = vsel %vm2965_vm0, 1.0, %v8974_v55 }
 0x35f   : > { %9058 = vst [vmem:[#allocation84_spill] sm:$0xff] %v7275_v5  ;;  %v7284_v50 = vsel %vm9060_vm4, %v2883_v52, 0.0  ;;  %9062 = vst [vmem:[#allocation87_spill] sm:$0xff] %v7289_v6  ;;  %v2886_v47 = vrot.slane %v2849_v28, 1  ;;  %vm9063_vm11 = vcmp.gt.f32.partialorder %v8901_v11, 0.0  ;;  %v7298_v48 = vsel %vm2966_vm2, 1.0, %v8974_v55 }
 0x360   : > { %9061 = vst [vmem:[#allocation86_spill] sm:$0xff] %v7284_v50  ;;  %v7293_v36 = vsel %vm9063_vm11, %v2884_v58, 0.0  ;;  %9065 = vst [vmem:[#allocation89_spill] sm:$0xff] %v7298_v48  ;;  %v7303_v56 = vsel %vm2967_vm6, 1.0, %v8974_v55  ;;  %v2887_v44 = vrot.slane %v2851_v38, 1  ;;  %vm9067_vm8 = vcmp.gt.f32.partialorder %v9019_v39, 0.0 }
 0x361   : > { %9064 = vst [vmem:[#allocation88_spill] sm:$0xff] %v7293_v36  ;;  %9066 = vst [vmem:[#allocation90_spill] sm:$0xff] %v7303_v56  ;;  %v7307_v52 = vsel %vm9067_vm8, %v2885_v17, 0.0  ;;  %v7312_v11 = vsel %vm2968_vm9, 1.0, %v8974_v55  ;;  %vm9070_vm0 = vcmp.ge.f32.partialorder %v8968_v54, 0.0  ;;  %vm9072_vm2 = vcmp.gt.f32.partialorder %v9022_v35, 0.0 }
 0x362   : > { %9068 = vst [vmem:[#allocation91_spill] sm:$0xff] %v7307_v52  ;;  %9069 = vst [vmem:[#allocation80_spill] sm:$0xff] %v7312_v11  ;;  %v7317_v31 = vsel %vm9070_vm0, 1.0, %v8974_v55  ;;  %v7321_v28 = vsel %vm9072_vm2, %v2886_v47, 0.0  ;;  %vm9074_vm6 = vcmp.ge.f32.partialorder %v8969_v1, 0.0  ;;  %vm9076_vm14 = vcmp.ge.f32.partialorder %v8970_v26, 0.0 }
 0x363   : > { %9071 = vst [vmem:[#allocation164_spill] sm:$0xff] %v7317_v31  ;;  %9073 = vst [vmem:[#allocation165_spill] sm:$0xff] %v7321_v28  ;;  %v7326_v39 = vsel %vm9074_vm6, 1.0, %v8974_v55  ;;  %v7331_v58 = vsel %vm9076_vm14, 1.0, %v8974_v55  ;;  %vm9078_vm9 = vcmp.ge.f32.partialorder %v8971_v43, 0.0  ;;  %vm9080_vm7 = vcmp.gt.f32.partialorder %v9025_v18, 0.0 }
 0x364   : > { %9075 = vst [vmem:[#allocation166_spill] sm:$0xff] %v7326_v39  ;;  %9077 = vst [vmem:[#allocation167_spill] sm:$0xff] %v7331_v58  ;;  %v7336_v38 = vsel %vm9078_vm9, 1.0, %v8974_v55  ;;  %v7340_v35 = vsel %vm9080_vm7, %v2887_v44, 0.0  ;;  %v7345_v17 = vsel %vm2973_vm13, 1.0, %v8974_v55  ;;  %v7350_v47 = vsel %vm2974_vm5, 1.0, %v8974_v55 }
 0x365   : > { %9079 = vst [vmem:[#allocation168_spill] sm:$0xff] %v7336_v38  ;;  %9081 = vst [vmem:[#allocation169_spill] sm:$0xff] %v7340_v35  ;;  %v7355_v58 = vsel %vm2975_vm3, 1.0, %v8974_v55  ;;  %v7360_v18 = vsel %vm2976_vm1, 1.0, %v8974_v55  ;;  %v7365_v44 = vsel %vm2977_vm15, 1.0, %v8974_v55  ;;  %v9088_v38 = vld [vmem:[#allocation45_spill] sm:$0xff] }
 0x366   : > { %9082 = vst [vmem:[#allocation170_spill] sm:$0xff] %v7345_v17  ;;  %9083 = vst [vmem:[#allocation171_spill] sm:$0xff] %v7350_v47  ;;  %v9087_v17 = vld [vmem:[#allocation22_spill] sm:$0xff]  ;;  %v3000_v47 = vrot.slane %v8959_v21, %v9088_v38  ;;  %v3004_v39 = vrot.slane %v8960_v57, %v9088_v38  ;;  %v3012_v31 = vrot.slane %v8962_v60, %v9088_v38  ;;  %v9090_v11 = vld [vmem:[#allocation147_spill] sm:$0xff] }
 0x367   : > { %9084 = vst [vmem:[#allocation172_spill] sm:$0xff] %v7355_v58  ;;  %9085 = vst [vmem:[#allocation173_spill] sm:$0xff] %v7360_v18  ;;  %vm2996_vm13 = vcmp.eq.s32.totalorder %v9087_v17, 0  ;;  %v3008_v58 = vrot.slane %v8961_v10, %v9088_v38  ;;  %v3016_v18 = vrot.slane %v8963_v46, %v9088_v38  ;;  %v3020_v55 = vrot.slane %v8964_v63, %v9088_v38  ;;  %v9091_v56 = vld [vmem:[#allocation148_spill] sm:$0xff]  ;;  %v9092_v48 = vld [vmem:[#allocation149_spill] sm:$0xff] }
 0x368   : > { %9086 = vst [vmem:[#allocation174_spill] sm:$0xff] %v7365_v44  ;;  %v3024_v44 = vrot.slane %v9032_v41, %v9088_v38  ;;  %v3028_v21 = vrot.slane %v8966_v0, %v9088_v38  ;;  %v3032_v57 = vrot.slane %v8967_v8, %v9088_v38  ;;  %v3036_v10 = vrot.slane %v8968_v54, %v9088_v38  ;;  %v9093_v6 = vld [vmem:[#allocation150_spill] sm:$0xff]  ;;  %v9094_v30 = vld [vmem:[#allocation151_spill] sm:$0xff]  ;;  %v9095_v4 = vld [vmem:[#allocation152_spill] sm:$0xff] }
 0x369   : > { %v3040_v60 = vrot.slane %v8969_v1, %v9088_v38  ;;  %v3044_v46 = vrot.slane %v8970_v26, %v9088_v38  ;;  %v3048_v63 = vrot.slane %v8971_v43, %v9088_v38  ;;  %v3052_v41 = vrot.slane %v8972_v7, %v9088_v38 }
 0x36a   : > { %v3056_v0 = vrot.slane %v8973_v3, %v9088_v38  ;;  %v3060_v8 = vrot.slane %v8976_v53, %v9088_v38  ;;  %v3064_v54 = vrot.slane %v8979_v59, %v9088_v38  ;;  %v3068_v1 = vrot.slane %v8982_v32, %v9088_v38 }
 0x36b   : > { %v3069_v26 = vsel %vm2996_vm13, %v3000_v47, 0.0  ;;  %v3070_v43 = vsel %vm2996_vm13, %v3004_v39, 0.0  ;;  %v3071_v7 = vsel %vm2996_vm13, %v3008_v58, 0.0  ;;  %v3072_v3 = vsel %vm2996_vm13, %v3012_v31, 0.0 }
 0x36c   : > { %v3073_v53 = vsel %vm2996_vm13, %v3016_v18, 0.0  ;;  %v3074_v59 = vsel %vm2996_vm13, %v3020_v55, 0.0  ;;  %v3075_v32 = vsel %vm2996_vm13, %v3024_v44, 0.0  ;;  %v3076_v47 = vsel %vm2996_vm13, %v3028_v21, 0.0 }
 0x36d   : > { %v3077_v39 = vsel %vm2996_vm13, %v3032_v57, 0.0  ;;  %v3078_v58 = vsel %vm2996_vm13, %v3036_v10, 0.0  ;;  %v3079_v31 = vsel %vm2996_vm13, %v3040_v60, 0.0  ;;  %v3080_v18 = vsel %vm2996_vm13, %v3044_v46, 0.0  ;;  %v9089_v46 = vld [vmem:[#allocation146_spill] sm:$0xff] }
 0x36e   : > { %v3081_v55 = vsel %vm2996_vm13, %v3048_v63, 0.0  ;;  %v3082_v44 = vsel %vm2996_vm13, %v3052_v41, 0.0  ;;  %v3083_v21 = vsel %vm2996_vm13, %v3056_v0, 0.0  ;;  %v3084_v57 = vsel %vm2996_vm13, %v3060_v8, 0.0 }
 0x36f   : > { %v3085_v10 = vsel %vm2996_vm13, %v3064_v54, 0.0  ;;  %v3086_v60 = vsel %vm2996_vm13, %v3068_v1, 0.0  ;;  %vm3105_vm5 = vcmp.eq.s32.totalorder %v9087_v17, 1  ;;  %v3109_v63 = vrot.slane %v9089_v46, %v9088_v38  ;;  %v9096_v46 = vld [vmem:[#allocation153_spill] sm:$0xff] }
 0x370   : > { %v3113_v41 = vrot.slane %v9090_v11, %v9088_v38  ;;  %v3117_v0 = vrot.slane %v9091_v56, %v9088_v38  ;;  %v3121_v8 = vrot.slane %v9092_v48, %v9088_v38  ;;  %v3125_v54 = vrot.slane %v9093_v6, %v9088_v38  ;;  %v9097_v11 = vld [vmem:[#allocation154_spill] sm:$0xff]  ;;  %v9098_v56 = vld [vmem:[#allocation155_spill] sm:$0xff]  ;;  %v9099_v48 = vld [vmem:[#allocation156_spill] sm:$0xff] }
 0x371   : > { %v3129_v1 = vrot.slane %v9094_v30, %v9088_v38  ;;  %v3133_v62 = vrot.slane %v9095_v4, %v9088_v38  ;;  %v3137_v16 = vrot.slane %v9096_v46, %v9088_v38  ;;  %v3141_v22 = vrot.slane %v9097_v11, %v9088_v38  ;;  %v9100_v6 = vld [vmem:[#allocation157_spill] sm:$0xff]  ;;  %v9101_v30 = vld [vmem:[#allocation158_spill] sm:$0xff]  ;;  %v9102_v4 = vld [vmem:[#allocation159_spill] sm:$0xff] }
 0x372   : > { %v3145_v35 = vrot.slane %v9098_v56, %v9088_v38  ;;  %v3149_v28 = vrot.slane %v9099_v48, %v9088_v38  ;;  %v3153_v52 = vrot.slane %v9100_v6, %v9088_v38  ;;  %v3157_v36 = vrot.slane %v9101_v30, %v9088_v38  ;;  %v9103_v46 = vld [vmem:[#allocation160_spill] sm:$0xff]  ;;  %v9104_v11 = vld [vmem:[#allocation161_spill] sm:$0xff]  ;;  %v9105_v56 = vld [vmem:[#allocation162_spill] sm:$0xff] }
 0x373   : > { %v3161_v50 = vrot.slane %v9102_v4, %v9088_v38  ;;  %v3165_v5 = vrot.slane %v9103_v46, %v9088_v38  ;;  %v3169_v45 = vrot.slane %v9104_v11, %v9088_v38  ;;  %v3173_v2 = vrot.slane %v9105_v56, %v9088_v38  ;;  %v9106_v48 = vld [vmem:[#allocation163_spill] sm:$0xff] }
 0x374   : > { %v3177_v51 = vrot.slane %v9106_v48, %v9088_v38  ;;  %v3178_v6 = vsel %vm3105_vm5, %v3109_v63, 0.0  ;;  %v3179_v30 = vsel %vm3105_vm5, %v3113_v41, 0.0  ;;  %v3180_v4 = vsel %vm3105_vm5, %v3117_v0, 0.0 }
 0x375   : > { %v3181_v46 = vsel %vm3105_vm5, %v3121_v8, 0.0  ;;  %v3182_v11 = vsel %vm3105_vm5, %v3125_v54, 0.0  ;;  %v3183_v56 = vsel %vm3105_vm5, %v3129_v1, 0.0  ;;  %v3184_v48 = vsel %vm3105_vm5, %v3133_v62, 0.0 }
 0x376   : > { %v3185_v63 = vsel %vm3105_vm5, %v3137_v16, 0.0  ;;  %v3186_v41 = vsel %vm3105_vm5, %v3141_v22, 0.0  ;;  %v3187_v0 = vsel %vm3105_vm5, %v3145_v35, 0.0  ;;  %v3188_v8 = vsel %vm3105_vm5, %v3149_v28, 0.0 }
 0x377   : > { %v3189_v54 = vsel %vm3105_vm5, %v3153_v52, 0.0  ;;  %v3190_v1 = vsel %vm3105_vm5, %v3157_v36, 0.0  ;;  %v3191_v62 = vsel %vm3105_vm5, %v3161_v50, 0.0  ;;  %v3192_v16 = vsel %vm3105_vm5, %v3165_v5, 0.0 }
 0x378   : > { %v3193_v22 = vsel %vm3105_vm5, %v3169_v45, 0.0  ;;  %v3194_v35 = vsel %vm3105_vm5, %v3173_v2, 0.0  ;;  %v3195_v28 = vsel %vm3105_vm5, %v3177_v51, 0.0  ;;  %v3196_v20 = vadd.f32 %v3178_v6, %v3069_v26  ;;  %v9107_v51 = vld [vmem:[#allocation130_spill] sm:$0xff] }
 0x379   : > { %v3197_v52 = vadd.f32 %v3179_v30, %v3070_v43  ;;  %v3198_v29 = vadd.f32 %v3180_v4, %v3071_v7  ;;  %v3199_v9 = vadd.f32 %v3181_v46, %v3072_v3  ;;  %v3200_v36 = vadd.f32 %v3182_v11, %v3073_v53  ;;  %v9108_v43 = vld [vmem:[#allocation131_spill] sm:$0xff]  ;;  %v9109_v3 = vld [vmem:[#allocation132_spill] sm:$0xff]  ;;  %v9118_v46 = vld [vmem:[#allocation141_spill] sm:$0xff] }
 0x37a   : > { %v3201_v34 = vadd.f32 %v3183_v56, %v3074_v59  ;;  %v3202_v14 = vadd.f32 %v3184_v48, %v3075_v32  ;;  %v3203_v50 = vadd.f32 %v3185_v63, %v3076_v47  ;;  %v3204_v42 = vadd.f32 %v3186_v41, %v3077_v39  ;;  %v9110_v59 = vld [vmem:[#allocation133_spill] sm:$0xff]  ;;  %v9111_v47 = vld [vmem:[#allocation134_spill] sm:$0xff]  ;;  %v9117_v30 = vld [vmem:[#allocation140_spill] sm:$0xff] }
 0x37b   : > { %v3205_v23 = vadd.f32 %v3187_v0, %v3078_v58  ;;  %v3206_v5 = vadd.f32 %v3188_v8, %v3079_v31  ;;  %v3207_v19 = vadd.f32 %v3189_v54, %v3080_v18  ;;  %v3208_v40 = vadd.f32 %v3190_v1, %v3081_v55  ;;  %v9112_v58 = vld [vmem:[#allocation135_spill] sm:$0xff]  ;;  %v9113_v18 = vld [vmem:[#allocation136_spill] sm:$0xff]  ;;  %v9119_v56 = vld [vmem:[#allocation142_spill] sm:$0xff] }
 0x37c   : > { %v3209_v45 = vadd.f32 %v3191_v62, %v3082_v44  ;;  %v3210_v49 = vadd.f32 %v3192_v16, %v3083_v21  ;;  %v3211_v13 = vadd.f32 %v3193_v22, %v3084_v57  ;;  %v3212_v2 = vadd.f32 %v3194_v35, %v3085_v10  ;;  %v9114_v44 = vld [vmem:[#allocation137_spill] sm:$0xff]  ;;  %v9115_v57 = vld [vmem:[#allocation138_spill] sm:$0xff]  ;;  %v9120_v63 = vld [vmem:[#allocation143_spill] sm:$0xff] }
 0x37d   : > { %v3213_v33 = vadd.f32 %v3195_v28, %v3086_v60  ;;  %vm3214_vm15 = vcmp.eq.s32.totalorder %v9087_v17, 2  ;;  %v3218_v26 = vrot.slane %v9107_v51, %v9088_v38  ;;  %v3222_v7 = vrot.slane %v9108_v43, %v9088_v38  ;;  %v9116_v60 = vld [vmem:[#allocation139_spill] sm:$0xff]  ;;  %v9121_v0 = vld [vmem:[#allocation144_spill] sm:$0xff]  ;;  %v9122_v54 = vld [vmem:[#allocation145_spill] sm:$0xff] }
 0x37e   : > { %v3226_v53 = vrot.slane %v9109_v3, %v9088_v38  ;;  %v3230_v32 = vrot.slane %v9110_v59, %v9088_v38  ;;  %v3234_v39 = vrot.slane %v9111_v47, %v9088_v38  ;;  %v3238_v31 = vrot.slane %v9112_v58, %v9088_v38  ;;  %v9123_v62 = vld [vmem:[#allocation107_spill] sm:$0xff]  ;;  %v9124_v22 = vld [vmem:[#allocation108_spill] sm:$0xff] }
 0x37f   : > { %v3242_v55 = vrot.slane %v9113_v18, %v9088_v38  ;;  %v3246_v21 = vrot.slane %v9114_v44, %v9088_v38  ;;  %v3250_v10 = vrot.slane %v9115_v57, %v9088_v38  ;;  %v3254_v6 = vrot.slane %v9116_v60, %v9088_v38 }
 0x380   : > { %v3258_v4 = vrot.slane %v9117_v30, %v9088_v38  ;;  %v3262_v11 = vrot.slane %v9118_v46, %v9088_v38  ;;  %v3266_v48 = vrot.slane %v9119_v56, %v9088_v38  ;;  %v3270_v41 = vrot.slane %v9120_v63, %v9088_v38 }
 0x381   : > { %v3274_v8 = vrot.slane %v9121_v0, %v9088_v38  ;;  %v3278_v1 = vrot.slane %v9122_v54, %v9088_v38  ;;  %v3282_v16 = vrot.slane %v9123_v62, %v9088_v38  ;;  %v3286_v35 = vrot.slane %v9124_v22, %v9088_v38 }
 0x382   : > { %v3287_v28 = vsel %vm3214_vm15, %v3218_v26, 0.0  ;;  %v3288_v51 = vsel %vm3214_vm15, %v3222_v7, 0.0  ;;  %v3289_v43 = vsel %vm3214_vm15, %v3226_v53, 0.0  ;;  %v3290_v3 = vsel %vm3214_vm15, %v3230_v32, 0.0 }
 0x383   : > { %v3291_v59 = vsel %vm3214_vm15, %v3234_v39, 0.0  ;;  %v3292_v47 = vsel %vm3214_vm15, %v3238_v31, 0.0  ;;  %v3293_v58 = vsel %vm3214_vm15, %v3242_v55, 0.0  ;;  %v3294_v26 = vsel %vm3214_vm15, %v3246_v21, 0.0 }
 0x384   : > { %v3295_v7 = vsel %vm3214_vm15, %v3250_v10, 0.0  ;;  %v3296_v53 = vsel %vm3214_vm15, %v3254_v6, 0.0  ;;  %v3297_v32 = vsel %vm3214_vm15, %v3258_v4, 0.0  ;;  %v3298_v39 = vsel %vm3214_vm15, %v3262_v11, 0.0 }
 0x385   : > { %v3299_v31 = vsel %vm3214_vm15, %v3266_v48, 0.0  ;;  %v3300_v18 = vsel %vm3214_vm15, %v3270_v41, 0.0  ;;  %v3301_v55 = vsel %vm3214_vm15, %v3274_v8, 0.0  ;;  %v3302_v44 = vsel %vm3214_vm15, %v3278_v1, 0.0 }
 0x386   : > { %v3303_v21 = vsel %vm3214_vm15, %v3282_v16, 0.0  ;;  %v3304_v57 = vsel %vm3214_vm15, %v3286_v35, 0.0  ;;  %v3305_v10 = vadd.f32 %v3287_v28, %v3196_v20  ;;  %v3306_v60 = vadd.f32 %v3288_v51, %v3197_v52  ;;  %v9129_v52 = vld [vmem:[#allocation104_spill] sm:$0xff]  ;;  %v9134_v35 = vld [vmem:[#allocation121_spill] sm:$0xff]  ;;  %v9135_v51 = vld [vmem:[#allocation122_spill] sm:$0xff] }
 0x387   : > { %v3307_v6 = vadd.f32 %v3289_v43, %v3198_v29  ;;  %v3308_v30 = vadd.f32 %v3290_v3, %v3199_v9  ;;  %v3309_v4 = vadd.f32 %v3291_v59, %v3200_v36  ;;  %v3310_v46 = vadd.f32 %v3292_v47, %v3201_v34  ;;  %v9128_v9 = vld [vmem:[#allocation103_spill] sm:$0xff] }
 0x388   : > { %v3311_v11 = vadd.f32 %v3293_v58, %v3202_v14  ;;  %v3312_v56 = vadd.f32 %v3294_v26, %v3203_v50  ;;  %v3313_v48 = vadd.f32 %v3295_v7, %v3204_v42  ;;  %v3314_v63 = vadd.f32 %v3296_v53, %v3205_v23  ;;  %v9125_v23 = vld [vmem:[#allocation94_spill] sm:$0xff] }
 0x389   : > { %v3315_v41 = vadd.f32 %v3297_v32, %v3206_v5  ;;  %v3316_v0 = vadd.f32 %v3298_v39, %v3207_v19  ;;  %v3317_v8 = vadd.f32 %v3299_v31, %v3208_v40  ;;  %v3318_v54 = vadd.f32 %v3300_v18, %v3209_v45  ;;  %v9126_v40 = vld [vmem:[#allocation96_spill] sm:$0xff] }
 0x38a   : > { %v3319_v1 = vadd.f32 %v3301_v55, %v3210_v49  ;;  %v3320_v62 = vadd.f32 %v3302_v44, %v3211_v13  ;;  %v3321_v16 = vadd.f32 %v3303_v21, %v3212_v2  ;;  %v3322_v22 = vadd.f32 %v3304_v57, %v3213_v33 }
 0x38b   : > { %vm3323_vm1 = vcmp.eq.s32.totalorder %v9087_v17, 3  ;;  %v3327_v29 = vrot.slane %v7047_v12, %v9088_v38  ;;  %v3331_v34 = vrot.slane %v7057_v61, %v9088_v38  ;;  %v3335_v42 = vrot.slane %v7067_v24, %v9088_v38  ;;  %v9127_v24 = vld [vmem:[#allocation101_spill] sm:$0xff] }
 0x38c   : > { %v3339_v19 = vrot.slane %v9125_v23, %v9088_v38  ;;  %v3343_v49 = vrot.slane %v9126_v40, %v9088_v38  ;;  %v3347_v33 = vrot.slane %v7102_v25, %v9088_v38  ;;  %v3351_v13 = vrot.slane %v7113_v27, %v9088_v38  ;;  %v9130_v25 = vld [vmem:[#allocation106_spill] sm:$0xff]  ;;  %v9131_v27 = vld [vmem:[#allocation119_spill] sm:$0xff] }
 0x38d   : > { %v3355_v12 = vrot.slane %v7123_v15, %v9088_v38  ;;  %v3359_v61 = vrot.slane %v7133_v37, %v9088_v38  ;;  %v3363_v14 = vrot.slane %v9127_v24, %v9088_v38  ;;  %v3367_v20 = vrot.slane %v9128_v9, %v9088_v38  ;;  %v9132_v15 = vld [vmem:[#allocation120_spill] sm:$0xff] }
 0x38e   : > { %v3371_v36 = vrot.slane %v9129_v52, %v9088_v38  ;;  %v3375_v50 = vrot.slane %v9130_v25, %v9088_v38  ;;  %v3379_v5 = vrot.slane %v9131_v27, %v9088_v38  ;;  %v3383_v45 = vrot.slane %v9132_v15, %v9088_v38  ;;  %v9133_v37 = vld [vmem:[#allocation92_spill] sm:$0xff]  ;;  %v9145_v15 = vld [vmem:[#allocation77_spill] sm:$0xff] }
 0x38f   : > { %v3387_v2 = vrot.slane %v9133_v37, %v9088_v38  ;;  %v3391_v28 = vrot.slane %v9134_v35, %v9088_v38  ;;  %v3395_v43 = vrot.slane %v9135_v51, %v9088_v38  ;;  %v3396_v3 = vsel %vm3323_vm1, %v3327_v29, 0.0  ;;  %v9146_v37 = vld [vmem:[#allocation79_spill] sm:$0xff]  ;;  %v9147_v35 = vld [vmem:[#allocation82_spill] sm:$0xff]  ;;  %v9148_v51 = vld [vmem:[#allocation84_spill] sm:$0xff] }
 0x390   : > { %v3397_v59 = vsel %vm3323_vm1, %v3331_v34, 0.0  ;;  %v3398_v47 = vsel %vm3323_vm1, %v3335_v42, 0.0  ;;  %v3399_v58 = vsel %vm3323_vm1, %v3339_v19, 0.0  ;;  %v3400_v26 = vsel %vm3323_vm1, %v3343_v49, 0.0 }
 0x391   : > { %v3401_v7 = vsel %vm3323_vm1, %v3347_v33, 0.0  ;;  %v3402_v53 = vsel %vm3323_vm1, %v3351_v13, 0.0  ;;  %v3403_v32 = vsel %vm3323_vm1, %v3355_v12, 0.0  ;;  %v3404_v39 = vsel %vm3323_vm1, %v3359_v61, 0.0 }
 0x392   : > { %v3405_v31 = vsel %vm3323_vm1, %v3363_v14, 0.0  ;;  %v3406_v18 = vsel %vm3323_vm1, %v3367_v20, 0.0  ;;  %v3407_v55 = vsel %vm3323_vm1, %v3371_v36, 0.0  ;;  %v3408_v44 = vsel %vm3323_vm1, %v3375_v50, 0.0 }
 0x393   : > { %v3409_v21 = vsel %vm3323_vm1, %v3379_v5, 0.0  ;;  %v3410_v57 = vsel %vm3323_vm1, %v3383_v45, 0.0  ;;  %v3411_v29 = vsel %vm3323_vm1, %v3387_v2, 0.0  ;;  %v3412_v34 = vsel %vm3323_vm1, %v3391_v28, 0.0 }
 0x394   : > { %v3413_v42 = vsel %vm3323_vm1, %v3395_v43, 0.0  ;;  %v3414_v23 = vadd.f32 %v3396_v3, %v3305_v10  ;;  %v3415_v19 = vadd.f32 %v3397_v59, %v3306_v60  ;;  %v3416_v40 = vadd.f32 %v3398_v47, %v3307_v6  ;;  %v9136_v10 = vld [vmem:[#allocation123_spill] sm:$0xff]  ;;  %v9137_v6 = vld [vmem:[#allocation124_spill] sm:$0xff]  ;;  %v9149_v3 = vld [vmem:[#allocation86_spill] sm:$0xff] }
 0x395   : > { %v3417_v49 = vadd.f32 %v3399_v58, %v3308_v30  ;;  %v3418_v33 = vadd.f32 %v3400_v26, %v3309_v4  ;;  %v3419_v13 = vadd.f32 %v3401_v7, %v3310_v46  ;;  %v3420_v12 = vadd.f32 %v3402_v53, %v3311_v11  ;;  %v9138_v4 = vld [vmem:[#allocation125_spill] sm:$0xff]  ;;  %v9139_v11 = vld [vmem:[#allocation126_spill] sm:$0xff]  ;;  %v9150_v47 = vld [vmem:[#allocation88_spill] sm:$0xff] }
 0x396   : > { %v3421_v61 = vadd.f32 %v3403_v32, %v3312_v56  ;;  %v3422_v24 = vadd.f32 %v3404_v39, %v3313_v48  ;;  %v3423_v14 = vadd.f32 %v3405_v31, %v3314_v63  ;;  %v3424_v9 = vadd.f32 %v3406_v18, %v3315_v41  ;;  %v9140_v48 = vld [vmem:[#allocation127_spill] sm:$0xff]  ;;  %v9141_v41 = vld [vmem:[#allocation128_spill] sm:$0xff]  ;;  %v9152_v53 = vld [vmem:[#allocation165_spill] sm:$0xff] }
 0x397   : > { %v3425_v20 = vadd.f32 %v3407_v55, %v3316_v0  ;;  %v3426_v52 = vadd.f32 %v3408_v44, %v3317_v8  ;;  %v3427_v36 = vadd.f32 %v3409_v21, %v3318_v54  ;;  %v3428_v25 = vadd.f32 %v3410_v57, %v3319_v1  ;;  %v9142_v8 = vld [vmem:[#allocation129_spill] sm:$0xff]  ;;  %v9143_v1 = vld [vmem:[#allocation74_spill] sm:$0xff]  ;;  %v9151_v26 = vld [vmem:[#allocation91_spill] sm:$0xff] }
 0x398   : > { %v3429_v50 = vadd.f32 %v3411_v29, %v3320_v62  ;;  %v3430_v27 = vadd.f32 %v3412_v34, %v3321_v16  ;;  %v3431_v5 = vadd.f32 %v3413_v42, %v3322_v22  ;;  %vm3432_vm3 = vcmp.eq.s32.totalorder %v9087_v17, 4  ;;  %v9144_v16 = vld [vmem:[#allocation75_spill] sm:$0xff]  ;;  %v9153_v39 = vld [vmem:[#allocation169_spill] sm:$0xff] }
 0x399   : > { %v3436_v60 = vrot.slane %v9136_v10, %v9088_v38  ;;  %v3440_v30 = vrot.slane %v9137_v6, %v9088_v38  ;;  %v3444_v46 = vrot.slane %v9138_v4, %v9088_v38  ;;  %v3448_v56 = vrot.slane %v9139_v11, %v9088_v38 }
 0x39a   : > { %v3452_v63 = vrot.slane %v9140_v48, %v9088_v38  ;;  %v3456_v0 = vrot.slane %v9141_v41, %v9088_v38  ;;  %v3460_v54 = vrot.slane %v9142_v8, %v9088_v38  ;;  %v3464_v62 = vrot.slane %v9143_v1, %v9088_v38 }
 0x39b   : > { %v3468_v22 = vrot.slane %v9144_v16, %v9088_v38  ;;  %v3472_v45 = vrot.slane %v9145_v15, %v9088_v38  ;;  %v3476_v2 = vrot.slane %v9146_v37, %v9088_v38  ;;  %v3480_v28 = vrot.slane %v9147_v35, %v9088_v38 }
 0x39c   : > { %v3484_v43 = vrot.slane %v9148_v51, %v9088_v38  ;;  %v3488_v59 = vrot.slane %v9149_v3, %v9088_v38  ;;  %v3492_v58 = vrot.slane %v9150_v47, %v9088_v38  ;;  %v3496_v7 = vrot.slane %v9151_v26, %v9088_v38  ;;  %v9163_v47 = vld [vmem:[#allocation118_spill] sm:$0xff]  ;;  %v9164_v26 = vld [vmem:[#allocation93_spill] sm:$0xff] }
 0x39d   : > { %v3500_v32 = vrot.slane %v9152_v53, %v9088_v38  ;;  %v3504_v31 = vrot.slane %v9153_v39, %v9088_v38  ;;  %v3505_v18 = vsel %vm3432_vm3, %v3436_v60, 0.0  ;;  %v3506_v55 = vsel %vm3432_vm3, %v3440_v30, 0.0  ;;  %v9165_v53 = vld [vmem:[#allocation95_spill] sm:$0xff]  ;;  %v9166_v39 = vld [vmem:[#allocation97_spill] sm:$0xff] }
 0x39e   : > { %v3507_v44 = vsel %vm3432_vm3, %v3444_v46, 0.0  ;;  %v3508_v21 = vsel %vm3432_vm3, %v3448_v56, 0.0  ;;  %v3509_v57 = vsel %vm3432_vm3, %v3452_v63, 0.0  ;;  %v3510_v29 = vsel %vm3432_vm3, %v3456_v0, 0.0 }
 0x39f   : > { %v3511_v34 = vsel %vm3432_vm3, %v3460_v54, 0.0  ;;  %v3512_v42 = vsel %vm3432_vm3, %v3464_v62, 0.0  ;;  %v3513_v10 = vsel %vm3432_vm3, %v3468_v22, 0.0  ;;  %v3514_v60 = vsel %vm3432_vm3, %v3472_v45, 0.0 }
 0x3a0   : > { %v3515_v6 = vsel %vm3432_vm3, %v3476_v2, 0.0  ;;  %v3516_v30 = vsel %vm3432_vm3, %v3480_v28, 0.0  ;;  %v3517_v4 = vsel %vm3432_vm3, %v3484_v43, 0.0  ;;  %v3518_v46 = vsel %vm3432_vm3, %v3488_v59, 0.0 }
 0x3a1   : > { %v3519_v11 = vsel %vm3432_vm3, %v3492_v58, 0.0  ;;  %v3520_v56 = vsel %vm3432_vm3, %v3496_v7, 0.0  ;;  %v3521_v48 = vsel %vm3432_vm3, %v3500_v32, 0.0  ;;  %v3522_v63 = vsel %vm3432_vm3, %v3504_v31, 0.0 }
 0x3a2   : > { %v3523_v41 = vadd.f32 %v3505_v18, %v3414_v23  ;;  %v3524_v0 = vadd.f32 %v3506_v55, %v3415_v19  ;;  %v3525_v8 = vadd.f32 %v3507_v44, %v3416_v40  ;;  %v3526_v54 = vadd.f32 %v3508_v21, %v3417_v49  ;;  %v9154_v23 = vld [vmem:[#allocation109_spill] sm:$0xff]  ;;  %v9155_v40 = vld [vmem:[#allocation110_spill] sm:$0xff]  ;;  %v9168_v44 = vld [vmem:[#allocation99_spill] sm:$0xff] }
 0x3a3   : > { %v3527_v1 = vadd.f32 %v3509_v57, %v3418_v33  ;;  %v3528_v62 = vadd.f32 %v3510_v29, %v3419_v13  ;;  %v3529_v16 = vadd.f32 %v3511_v34, %v3420_v12  ;;  %v3530_v22 = vadd.f32 %v3512_v42, %v3421_v61  ;;  %v9156_v33 = vld [vmem:[#allocation111_spill] sm:$0xff]  ;;  %v9157_v12 = vld [vmem:[#allocation112_spill] sm:$0xff]  ;;  %v9167_v18 = vld [vmem:[#allocation98_spill] sm:$0xff] }
 0x3a4   : > { %v3531_v15 = vadd.f32 %v3513_v10, %v3422_v24  ;;  %v3532_v45 = vadd.f32 %v3514_v60, %v3423_v14  ;;  %v3533_v37 = vadd.f32 %v3515_v6, %v3424_v9  ;;  %v3534_v2 = vadd.f32 %v3516_v30, %v3425_v20  ;;  %v9158_v24 = vld [vmem:[#allocation113_spill] sm:$0xff]  ;;  %v9159_v9 = vld [vmem:[#allocation114_spill] sm:$0xff]  ;;  %v9169_v57 = vld [vmem:[#allocation100_spill] sm:$0xff] }
 0x3a5   : > { %v3535_v35 = vadd.f32 %v3517_v4, %v3426_v52  ;;  %v3536_v28 = vadd.f32 %v3518_v46, %v3427_v36  ;;  %v3537_v51 = vadd.f32 %v3519_v11, %v3428_v25  ;;  %v3538_v43 = vadd.f32 %v3520_v56, %v3429_v50  ;;  %v9160_v52 = vld [vmem:[#allocation115_spill] sm:$0xff]  ;;  %v9161_v25 = vld [vmem:[#allocation116_spill] sm:$0xff]  ;;  %v9170_v34 = vld [vmem:[#allocation102_spill] sm:$0xff] }
 0x3a6   : > { %v3539_v3 = vadd.f32 %v3521_v48, %v3430_v27  ;;  %v3540_v59 = vadd.f32 %v3522_v63, %v3431_v5  ;;  %vm3541_vm12 = vcmp.eq.s32.totalorder %v9087_v17, 5  ;;  %v3545_v19 = vrot.slane %v9154_v23, %v9088_v38  ;;  %v9162_v27 = vld [vmem:[#allocation117_spill] sm:$0xff] }
 0x3a7   : > { %v3549_v49 = vrot.slane %v9155_v40, %v9088_v38  ;;  %v3553_v13 = vrot.slane %v9156_v33, %v9088_v38  ;;  %v3557_v61 = vrot.slane %v9157_v12, %v9088_v38  ;;  %v3561_v14 = vrot.slane %v9158_v24, %v9088_v38  ;;  %v9171_v10 = vld [vmem:[#allocation105_spill] sm:$0xff] }
 0x3a8   : > { %v3565_v20 = vrot.slane %v9159_v9, %v9088_v38  ;;  %v3569_v36 = vrot.slane %v9160_v52, %v9088_v38  ;;  %v3573_v50 = vrot.slane %v9161_v25, %v9088_v38  ;;  %v3577_v5 = vrot.slane %v9162_v27, %v9088_v38 }
 0x3a9   : > { %v3581_v58 = vrot.slane %v9163_v47, %v9088_v38  ;;  %v3585_v7 = vrot.slane %v9164_v26, %v9088_v38  ;;  %v3589_v32 = vrot.slane %v9165_v53, %v9088_v38  ;;  %v3593_v31 = vrot.slane %v9166_v39, %v9088_v38 }
 0x3aa   : > { %v3597_v55 = vrot.slane %v9167_v18, %v9088_v38  ;;  %v3601_v21 = vrot.slane %v9168_v44, %v9088_v38  ;;  %v3605_v29 = vrot.slane %v9169_v57, %v9088_v38  ;;  %v3609_v42 = vrot.slane %v9170_v34, %v9088_v38  ;;  %v9181_v44 = vld [vmem:[#allocation164_spill] sm:$0xff]  ;;  %v9182_v57 = vld [vmem:[#allocation166_spill] sm:$0xff]  ;;  %v9183_v34 = vld [vmem:[#allocation167_spill] sm:$0xff] }
 0x3ab   : > { %v3613_v60 = vrot.slane %v9171_v10, %v9088_v38  ;;  %v3614_v6 = vsel %vm3541_vm12, %v3545_v19, 0.0  ;;  %v3615_v30 = vsel %vm3541_vm12, %v3549_v49, 0.0  ;;  %v3616_v4 = vsel %vm3541_vm12, %v3553_v13, 0.0  ;;  %v9184_v10 = vld [vmem:[#allocation168_spill] sm:$0xff] }
 0x3ac   : > { %v3617_v46 = vsel %vm3541_vm12, %v3557_v61, 0.0  ;;  %v3618_v11 = vsel %vm3541_vm12, %v3561_v14, 0.0  ;;  %v3619_v56 = vsel %vm3541_vm12, %v3565_v20, 0.0  ;;  %v3620_v48 = vsel %vm3541_vm12, %v3569_v36, 0.0 }
 0x3ad   : > { %v3621_v63 = vsel %vm3541_vm12, %v3573_v50, 0.0  ;;  %v3622_v23 = vsel %vm3541_vm12, %v3577_v5, 0.0  ;;  %v3623_v19 = vsel %vm3541_vm12, %v3581_v58, 0.0  ;;  %v3624_v40 = vsel %vm3541_vm12, %v3585_v7, 0.0 }
 0x3ae   : > { %v3625_v49 = vsel %vm3541_vm12, %v3589_v32, 0.0  ;;  %v3626_v33 = vsel %vm3541_vm12, %v3593_v31, 0.0  ;;  %v3627_v13 = vsel %vm3541_vm12, %v3597_v55, 0.0  ;;  %v3628_v12 = vsel %vm3541_vm12, %v3601_v21, 0.0 }
 0x3af   : > { %v3629_v61 = vsel %vm3541_vm12, %v3605_v29, 0.0  ;;  %v3630_v24 = vsel %vm3541_vm12, %v3609_v42, 0.0  ;;  %v3631_v14 = vsel %vm3541_vm12, %v3613_v60, 0.0  ;;  %v3632_v9 = vadd.f32 %v3614_v6, %v3523_v41  ;;  %v9172_v41 = vld [vmem:[#allocation76_spill] sm:$0xff]  ;;  %v9185_v6 = vld [vmem:[#allocation170_spill] sm:$0xff] }
 0x3b0   : > { %v3633_v20 = vadd.f32 %v3615_v30, %v3524_v0  ;;  %v3634_v52 = vadd.f32 %v3616_v4, %v3525_v8  ;;  %v3635_v36 = vadd.f32 %v3617_v46, %v3526_v54  ;;  %v3636_v25 = vadd.f32 %v3618_v11, %v3527_v1  ;;  %v9173_v8 = vld [vmem:[#allocation78_spill] sm:$0xff]  ;;  %v9174_v1 = vld [vmem:[#allocation81_spill] sm:$0xff]  ;;  %v9186_v4 = vld [vmem:[#allocation171_spill] sm:$0xff] }
 0x3b1   : > { %v3637_v50 = vadd.f32 %v3619_v56, %v3528_v62  ;;  %v3638_v27 = vadd.f32 %v3620_v48, %v3529_v16  ;;  %v3639_v5 = vadd.f32 %v3621_v63, %v3530_v22  ;;  %v3640_v47 = vadd.f32 %v3622_v23, %v3531_v15  ;;  %v9175_v16 = vld [vmem:[#allocation83_spill] sm:$0xff]  ;;  %v9176_v15 = vld [vmem:[#allocation85_spill] sm:$0xff]  ;;  %v9187_v11 = vld [vmem:[#allocation172_spill] sm:$0xff] }
 0x3b2   : > { %v3641_v58 = vadd.f32 %v3623_v19, %v3532_v45  ;;  %v3642_v26 = vadd.f32 %v3624_v40, %v3533_v37  ;;  %v3643_v7 = vadd.f32 %v3625_v49, %v3534_v2  ;;  %v3644_v53 = vadd.f32 %v3626_v33, %v3535_v35  ;;  %v9177_v37 = vld [vmem:[#allocation87_spill] sm:$0xff]  ;;  %v9178_v35 = vld [vmem:[#allocation89_spill] sm:$0xff]  ;;  %v9189_v23 = vld [vmem:[#allocation174_spill] sm:$0xff] }
 0x3b3   : > { %v3645_v32 = vadd.f32 %v3627_v13, %v3536_v28  ;;  %v3646_v39 = vadd.f32 %v3628_v12, %v3537_v51  ;;  %v3647_v31 = vadd.f32 %v3629_v61, %v3538_v43  ;;  %v3648_v18 = vadd.f32 %v3630_v24, %v3539_v3  ;;  %v9179_v51 = vld [vmem:[#allocation90_spill] sm:$0xff]  ;;  %v9180_v3 = vld [vmem:[#allocation80_spill] sm:$0xff]  ;;  %v9188_v48 = vld [vmem:[#allocation173_spill] sm:$0xff] }
 0x3b4   : > { %v7805_v55 = vadd.f32 %v3631_v14, %v3540_v59  ;;  %vm3650_vm10 = vcmp.eq.s32.totalorder %v9087_v17, 6  ;;  %v3654_v0 = vrot.slane %v9172_v41, %v9088_v38  ;;  %v3658_v54 = vrot.slane %v9173_v8, %v9088_v38 }
 0x3b5   : > { %v3662_v62 = vrot.slane %v9174_v1, %v9088_v38  ;;  %v3666_v22 = vrot.slane %v9175_v16, %v9088_v38  ;;  %v3670_v45 = vrot.slane %v9176_v15, %v9088_v38  ;;  %v3674_v2 = vrot.slane %v9177_v37, %v9088_v38 }
 0x3b6   : > { %v3678_v28 = vrot.slane %v9178_v35, %v9088_v38  ;;  %v3682_v43 = vrot.slane %v9179_v51, %v9088_v38  ;;  %v3686_v59 = vrot.slane %v9180_v3, %v9088_v38  ;;  %v3690_v21 = vrot.slane %v9181_v44, %v9088_v38 }
 0x3b7   : > { %v3694_v29 = vrot.slane %v9182_v57, %v9088_v38  ;;  %v3698_v42 = vrot.slane %v9183_v34, %v9088_v38  ;;  %v3702_v60 = vrot.slane %v9184_v10, %v9088_v38  ;;  %v3706_v30 = vrot.slane %v9185_v6, %v9088_v38 }
 0x3b8   : > { %v3710_v46 = vrot.slane %v9186_v4, %v9088_v38  ;;  %v3714_v56 = vrot.slane %v9187_v11, %v9088_v38  ;;  %v3718_v63 = vrot.slane %v9188_v48, %v9088_v38  ;;  %v3722_v19 = vrot.slane %v9189_v23, %v9088_v38 }
 0x3b9   : > { %v3723_v40 = vsel %vm3650_vm10, %v3654_v0, 0.0  ;;  %v3724_v49 = vsel %vm3650_vm10, %v3658_v54, 0.0  ;;  %v3725_v33 = vsel %vm3650_vm10, %v3662_v62, 0.0  ;;  %v3726_v13 = vsel %vm3650_vm10, %v3666_v22, 0.0 }
 0x3ba   : > { %v3727_v12 = vsel %vm3650_vm10, %v3670_v45, 0.0  ;;  %v3728_v61 = vsel %vm3650_vm10, %v3674_v2, 0.0  ;;  %v3729_v38 = vsel %vm3650_vm10, %v3678_v28, 0.0  ;;  %v3730_v24 = vsel %vm3650_vm10, %v3682_v43, 0.0 }
 0x3bb   : > { %v3731_v14 = vsel %vm3650_vm10, %v3686_v59, 0.0  ;;  %v3732_v41 = vsel %vm3650_vm10, %v3690_v21, 0.0  ;;  %v3733_v0 = vsel %vm3650_vm10, %v3694_v29, 0.0  ;;  %v3734_v8 = vsel %vm3650_vm10, %v3698_v42, 0.0 }
 0x3bc   : > { %v3735_v54 = vsel %vm3650_vm10, %v3702_v60, 0.0  ;;  %v3736_v1 = vsel %vm3650_vm10, %v3706_v30, 0.0  ;;  %v3737_v62 = vsel %vm3650_vm10, %v3710_v46, 0.0  ;;  %v3738_v16 = vsel %vm3650_vm10, %v3714_v56, 0.0 }
 0x3bd   : > { %v3739_v22 = vsel %vm3650_vm10, %v3718_v63, 0.0  ;;  %v3740_v15 = vsel %vm3650_vm10, %v3722_v19, 0.0  ;;  %v3741_v45 = vadd.f32 %v3723_v40, %v3632_v9  ;;  %v3742_v37 = vadd.f32 %v3724_v49, %v3633_v20 }
 0x3be   : > { %v3743_v2 = vadd.f32 %v3725_v33, %v3634_v52  ;;  %v3744_v35 = vadd.f32 %v3726_v13, %v3635_v36  ;;  %v3745_v28 = vadd.f32 %v3727_v12, %v3636_v25  ;;  %v3746_v51 = vadd.f32 %v3728_v61, %v3637_v50 }
 0x3bf   : > { %v3747_v43 = vadd.f32 %v3729_v38, %v3638_v27  ;;  %v3748_v3 = vadd.f32 %v3730_v24, %v3639_v5  ;;  %v3749_v59 = vadd.f32 %v3731_v14, %v3640_v47  ;;  %3759 = vst [vmem:[%s4197_s23] sm:$0xff] %v3741_v45  ;;  %v3750_v17 = vadd.f32 %v3732_v41, %v3641_v58 }
 0x3c0   : > { %v3751_v44 = vadd.f32 %v3733_v0, %v3642_v26  ;;  %v3752_v21 = vadd.f32 %v3734_v8, %v3643_v7  ;;  %v3753_v9 = vadd.f32 %v3735_v54, %v3644_v53  ;;  %3760 = vst [vmem:[%s4197_s23 + $0x8] sm:$0xff] %v3742_v37  ;;  %3761 = vst [vmem:[%s4197_s23 + $0x10] sm:$0xff] %v3743_v2 }
 0x3c1   : > { %3762 = vst [vmem:[%s4197_s23 + $0x18] sm:$0xff] %v3744_v35  ;;  %3763 = vst [vmem:[%s4197_s23 + $0x20] sm:$0xff] %v3745_v28  ;;  %v3754_v20 = vadd.f32 %v3736_v1, %v3645_v32  ;;  %v3755_v52 = vadd.f32 %v3737_v62, %v3646_v39  ;;  %v3756_v36 = vadd.f32 %v3738_v16, %v3647_v31 }
 0x3c2   : > { %v3757_v25 = vadd.f32 %v3739_v22, %v3648_v18  ;;  %3764 = vst [vmem:[%s4197_s23 + $0x28] sm:$0xff] %v3746_v51  ;;  %3765 = vst [vmem:[%s4197_s23 + $0x30] sm:$0xff] %v3747_v43  ;;  %v3758_v50 = vadd.f32 %v3740_v15, %v7805_v55 }
 0x3c3   : > { %3766 = vst [vmem:[%s4197_s23 + $0x38] sm:$0xff] %v3748_v3  ;;  %3767 = vst [vmem:[%s4197_s23 + $0x40] sm:$0xff] %v3749_v59 }
 0x3c4   : > { %3768 = vst [vmem:[%s4197_s23 + $0x48] sm:$0xff] %v3750_v17  ;;  %3769 = vst [vmem:[%s4197_s23 + $0x50] sm:$0xff] %v3751_v44 }
 0x3c5   : > { %3770 = vst [vmem:[%s4197_s23 + $0x58] sm:$0xff] %v3752_v21  ;;  %3771 = vst [vmem:[%s4197_s23 + $0x60] sm:$0xff] %v3753_v9 }
 0x3c6   : > { %3772 = vst [vmem:[%s4197_s23 + $0x68] sm:$0xff] %v3754_v20  ;;  %3773 = vst [vmem:[%s4197_s23 + $0x70] sm:$0xff] %v3755_v52 }
 0x3c7   : > { %3774 = vst [vmem:[%s4197_s23 + $0x78] sm:$0xff] %v3756_v36  ;;  %3775 = vst [vmem:[%s4197_s23 + $0x80] sm:$0xff] %v3757_v25 }
 0x3c8   : > { %3776 = vst [vmem:[%s4197_s23 + $0x88] sm:$0xff] %v3758_v50 }
 0x3c9 PF: > { %s12_s13 = sadd.s32 1, %s4129_s13   ;;  %s9190_s9 = smov %s4121_s11 }
 0x3ca   : > { %p9_p8 = scmp.ge.s32.totalorder %s12_s13, 6   ;;  %s9191_s10 = smov %s4125_s12 }
 0x3cb   : > { %s9192_s11 = smov %s9195_s14  ;;  %s9193_s12 = smov %s9199_s15 }
 0x3cc   :  { %11 = sbr.rel (!%p9_p8) target bundleno = 3 (0x3), region = 75 }

</bundles_post_ra>
